<compile_context>
chip_gen: v6e
topology: v6e:2x2x1
jax: 0.10.0
libtpu: 0.0.40
codegen_flags: <defaults>
</compile_context>

<pallas_src>
import functools

import jax
import jax.numpy as jnp
from jax import lax
from jax.experimental import pallas as pl
from jax.experimental.pallas import tpu as pltpu


_MM_DTYPE = jnp.bfloat16     # MXU operand dtype; accumulation + all elementwise math stay f32


def _round_up(x, m):
    return -(-x // m) * m


@functools.lru_cache(maxsize=None)
def _vmem_caps():
    """Per-chip (vmem_limit_bytes, per-chunk working-set budget)."""
    cap = 64 * 1024 * 1024                     # conservative fallback = v7x per-TC VMEM
    try:
        cap = int(pltpu.get_tpu_info().vmem_capacity_bytes)
    except Exception:
        pass
    vmem_limit = min(int(cap * 0.8), 100 * 1024 * 1024)
    chunk_budget = min(int(cap * 0.3), 40 * 1024 * 1024)
    return vmem_limit, chunk_budget


def _unroll_for(tc):
    if tc <= 32:
        return tc
    if tc % 4 == 0:
        return 4
    if tc % 2 == 0:
        return 2
    return 1


# ---------------------------------------------------------------------------
# Shared in-kernel helpers
# ---------------------------------------------------------------------------
def _input_proj(x3, w, b):
    """Hoisted per-chunk input projection -> f32 (Tc, Dp, G).

    For tiny input feature dims (layer 0, I=1) a K=1 MXU matmul wastes the whole
    contraction depth and forces a lane-1 relayout, so we use a pure-VPU broadcast
    multiply instead.  Otherwise: one bf16 MXU matmul with f32 accumulation.
    """
    Tc, Dp, I = x3.shape
    G = w.shape[-1]
    b3 = b.astype(jnp.float32).reshape(1, 1, G)
    if I <= 4:
        x32 = x3.astype(jnp.float32)
        acc = x32[:, :, 0:1] * w[0:1, :].astype(jnp.float32).reshape(1, 1, G)
        for i in range(1, I):
            acc = acc + x32[:, :, i:i + 1] * w[i:i + 1, :].astype(jnp.float32).reshape(1, 1, G)
        return acc + b3
    x2 = x3.reshape(Tc * Dp, I).astype(w.dtype)
    r = jnp.dot(x2, w, preferred_element_type=jnp.float32)
    return r.reshape(Tc, Dp, G) + b3


# ---------------------------------------------------------------------------
# Pallas kernels
# ---------------------------------------------------------------------------
def _bilstm_layer_kernel(H, T_real, Tc, NC, fused, *refs):
    """One bidirectional LSTM layer, one time-chunk per grid step.

    fused (NC==1):  refs = (x, w_in, w_rec, b, out, h_s, cf_s, cb_s, gx)
        x:   (T, Dp, I)        out: (T, Dp, 2H)  (fwd -> [:, :, :H], bwd -> [:, :, H:])
    chunked (NC>1): refs = (x_f, x_b, w_in, w_rec, b, out_f, out_b, h_s, cf_s, cb_s, gx)
        x_f / x_b: (Tc, Dp, I) forward chunk c / backward chunk NC-1-c
    w_in:  (I, 8H)   [Wih_f | Wih_b]                       (bf16 MXU operand)
    w_rec: (2H, 8H)  block-diag [[Whh_f, 0], [0, Whh_b]]   (bf16 MXU operand)
    b:     (1, 8H)   f32  (b_ih + b_hh, both directions)
    h_s: (Dp, 2H) f32 packed state [h_f | h_b]; cf_s/cb_s: (Dp, H) f32;
    gx:  (Tc, Dp, 8H) f32 hoisted input-projection scratch.
    """
    if fused:
        (x_f_ref, w_in_ref, w_rec_ref, b_ref, out_ref,
         h_s, cf_s, cb_s, gx) = refs
        x_b_ref = x_f_ref
    else:
        (x_f_ref, x_b_ref, w_in_ref, w_rec_ref, b_ref, out_f_ref, out_b_ref,
         h_s, cf_s, cb_s, gx) = refs

    G4 = 4 * H
    needs_mask = (NC * Tc) != T_real

    @pl.when(pl.program_id(0) == 0)
    def _():
        h_s[...] = jnp.zeros_like(h_s)
        cf_s[...] = jnp.zeros_like(cf_s)
        cb_s[...] = jnp.zeros_like(cb_s)

    # Hoisted input projection (off the serial per-step dependency chain).
    w_in = w_in_ref[...]
    bias = b_ref[...].astype(jnp.float32)
    if fused:
        gx[...] = _input_proj(x_f_ref[...], w_in, bias)
    else:
        gf = _input_proj(x_f_ref[...], w_in[:, :G4], bias[:, :G4])
        gb = _input_proj(x_b_ref[...], w_in[:, G4:], bias[:, G4:])
        gx[...] = jnp.concatenate([gf, gb], axis=-1)

    w_rec = w_rec_ref[...]
    mm_dt = w_rec.dtype

    def step(t, carry):
        h2, c_f, c_b = carry                   # (Dp,2H), (Dp,H), (Dp,H)  all f32, in vregs
        tb = Tc - 1 - t
        # Both directions' gate pre-activations from ONE block-diagonal MXU matmul.
        gxt = jnp.concatenate([gx[t, :, 0:G4], gx[tb, :, G4:]], axis=-1)      # (Dp, 8H)
        g = gxt + jnp.dot(h2.astype(mm_dt), w_rec, preferred_element_type=jnp.float32)
        # Fused full-tensor EUP nonlinearities, gates sliced afterwards.
        sig = jax.nn.sigmoid(g)
        th = jnp.tanh(g)
        c_f_new = sig[:, 1 * H:2 * H] * c_f + sig[:, 0 * H:1 * H] * th[:, 2 * H:3 * H]
        c_b_new = sig[:, 5 * H:6 * H] * c_b + sig[:, 4 * H:5 * H] * th[:, 6 * H:7 * H]
        h_f_new = sig[:, 3 * H:4 * H] * jnp.tanh(c_f_new)
        h_b_new = sig[:, 7 * H:8 * H] * jnp.tanh(c_b_new)
        if needs_mask:
            # Backward direction traverses the zero-padded tail of time first; keep its
            # state frozen (zero) until it reaches real timesteps.
            abs_tb = (NC - 1 - pl.program_id(0)) * Tc + tb
            valid = abs_tb < T_real
            h_b_new = jnp.where(valid, h_b_new, h2[:, H:])
            c_b_new = jnp.where(valid, c_b_new, c_b)
        if fused:
            out_ref[t, :, 0:H] = h_f_new.astype(out_ref.dtype)
            out_ref[tb, :, H:2 * H] = h_b_new.astype(out_ref.dtype)
        else:
            out_f_ref[t] = h_f_new.astype(out_f_ref.dtype)
            out_b_ref[tb] = h_b_new.astype(out_b_ref.dtype)
        return (jnp.concatenate([h_f_new, h_b_new], axis=-1), c_f_new, c_b_new)

    h2_fin, cf_fin, cb_fin = lax.fori_loop(
        0, Tc, step, (h_s[...], cf_s[...], cb_s[...]), unroll=_unroll_for(Tc))
    h_s[...] = h2_fin
    cf_s[...] = cf_fin
    cb_s[...] = cb_fin


def _unilstm_layer_kernel(H, Tc, *refs):
    """One unidirectional LSTM layer, one time-chunk per grid step."""
    x_ref, w_in_ref, w_rec_ref, b_ref, out_ref, h_s, c_s, gx = refs

    @pl.when(pl.program_id(0) == 0)
    def _():
        h_s[...] = jnp.zeros_like(h_s)
        c_s[...] = jnp.zeros_like(c_s)

    gx[...] = _input_proj(x_ref[...], w_in_ref[...], b_ref[...])
    w_rec = w_rec_ref[...]
    mm_dt = w_rec.dtype

    def step(t, carry):
        h, c = carry
        g = gx[t] + jnp.dot(h.astype(mm_dt), w_rec, preferred_element_type=jnp.float32)
        sig = jax.nn.sigmoid(g)
        th = jnp.tanh(g)
        c_new = sig[:, H:2 * H] * c + sig[:, 0:H] * th[:, 2 * H:3 * H]
        h_new = sig[:, 3 * H:4 * H] * jnp.tanh(c_new)
        out_ref[t] = h_new.astype(out_ref.dtype)
        return (h_new, c_new)

    h_fin, c_fin = lax.fori_loop(0, Tc, step, (h_s[...], c_s[...]),
                                 unroll=_unroll_for(Tc))
    h_s[...] = h_fin
    c_s[...] = c_fin


def _proj1_kernel(h_ref, w_ref, b_ref, o_ref):
    """Fused output_dim=1 projection: lane-dense (Dp, Tc) output, no (N,1) matmul.

    h: (Tc, Dp, F);  w: (1, F);  b: (1, 1);  o: (Dp, Tc)
    """
    h = h_ref[...].astype(jnp.float32)
    w = w_ref[...].astype(jnp.float32)
    y = jnp.sum(h * w[None, :, :], axis=-1) + b_ref[...]      # (Tc, Dp)
    o_ref[...] = jnp.transpose(y, (1, 0)).astype(o_ref.dtype)


def _linear_kernel(x_ref, w_ref, b_ref, o_ref):
    """Generic fallback projection: (bs, F) @ (F, O) + (1, O)."""
    o_ref[...] = (
        jnp.dot(x_ref[...].astype(jnp.float32), w_ref[...].astype(jnp.float32),
                preferred_element_type=jnp.float32)
        + b_ref[...]
    ).astype(o_ref.dtype)


# ---------------------------------------------------------------------------
# Chunk planning (per-chip VMEM budget; padded T, no divisibility requirement)
# ---------------------------------------------------------------------------
def _plan_bidir(T, Dp, I, H, budget):
    ip = _round_up(I, 128)
    h2p = _round_up(2 * H, 128)
    hp = _round_up(H, 128)
    g8p = _round_up(8 * H, 128)
    per_t_fused = Dp * 4 * (2 * ip + 2 * h2p + g8p)        # x + combined out (dbuf) + gx
    if T * per_t_fused <= budget:
        return T, 1, T, True
    per_t = Dp * 4 * (4 * ip + 4 * hp + g8p)               # x streamed twice + 2 outs + gx
    tc = int(max(1, min(T, budget // per_t)))
    nc = -(-T // tc)
    return tc, nc, nc * tc, False


def _plan_uni(T, Dp, I, H, budget):
    per_t = Dp * 4 * (2 * _round_up(I, 128) + 2 * _round_up(H, 128)
                      + _round_up(4 * H, 128))
    tc = int(max(1, min(T, budget // per_t)))
    nc = -(-T // tc)
    return tc, nc, nc * tc


# ---------------------------------------------------------------------------
# pallas_call wrappers
# ---------------------------------------------------------------------------
def _pack_bidir_weights(p_f, p_b, H):
    wih_f, whh_f, b_f = p_f
    wih_b, whh_b, b_b = p_b
    w_in = jnp.concatenate([wih_f, wih_b], axis=1).astype(_MM_DTYPE)          # (I, 8H)
    z = jnp.zeros((H, 4 * H), whh_f.dtype)
    w_rec = jnp.concatenate(
        [jnp.concatenate([whh_f, z], axis=1),
         jnp.concatenate([z, whh_b], axis=1)], axis=0).astype(_MM_DTYPE)      # (2H, 8H)
    b = jnp.concatenate([b_f, b_b], axis=1).astype(jnp.float32)               # (1, 8H)
    return w_in, w_rec, b


def _run_bilstm_layer(x_tm, p_f, p_b, H, budget, vmem_limit):
    """x_tm: (T, Dp, I) time-major.  Returns combined (T, Dp, 2H) activations."""
    T, Dp, I = x_tm.shape
    w_in, w_rec, b = _pack_bidir_weights(p_f, p_b, H)
    Tc, NC, T_pad, fused = _plan_bidir(T, Dp, I, H, budget)
    if T_pad != T:
        x_tm = jnp.pad(x_tm, ((0, T_pad - T), (0, 0), (0, 0)))

    kernel = functools.partial(_bilstm_layer_kernel, H, T, Tc, NC, fused)
    w_specs = [pl.BlockSpec((I, 8 * H), lambda c: (0, 0)),
               pl.BlockSpec((2 * H, 8 * H), lambda c: (0, 0)),
               pl.BlockSpec((1, 8 * H), lambda c: (0, 0))]
    # TODO(synk): on v7x, single-buffer the constant weight specs (pipeline_mode=Buffered(1))
    # and/or split the two directions across the 2 TensorCores (core_map) for ~2x; kept the
    # fused single-core block-diagonal form here since it benefits all generations.
    scratch = [pltpu.VMEM((Dp, 2 * H), jnp.float32),
               pltpu.VMEM((Dp, H), jnp.float32),
               pltpu.VMEM((Dp, H), jnp.float32),
               pltpu.VMEM((Tc, Dp, 8 * H), jnp.float32)]
    cp = pltpu.CompilerParams(dimension_semantics=("arbitrary",),
                              vmem_limit_bytes=vmem_limit)
    ce = pl.CostEstimate(
        flops=2 * T_pad * Dp * (I * 8 * H + 2 * H * 8 * H),
        transcendentals=T_pad * Dp * (2 * 8 * H + 2 * H),
        bytes_accessed=4 * (T_pad * Dp * (I + 2 * H)) + 2 * (I + 2 * H) * 8 * H)

    if fused:
        grid_spec = pltpu.PrefetchScalarGridSpec(
            num_scalar_prefetch=0, grid=(1,),
            in_specs=[pl.BlockSpec((T_pad, Dp, I), lambda c: (0, 0, 0))] + w_specs,
            out_specs=pl.BlockSpec((T_pad, Dp, 2 * H), lambda c: (0, 0, 0)),
            scratch_shapes=scratch)
        out = pl.pallas_call(
            kernel,
            out_shape=jax.ShapeDtypeStruct((T_pad, Dp, 2 * H), jnp.float32),
            grid_spec=grid_spec, compiler_params=cp, cost_estimate=ce,
        )(x_tm, w_in, w_rec, b)
    else:
        grid_spec = pltpu.PrefetchScalarGridSpec(
            num_scalar_prefetch=0, grid=(NC,),
            in_specs=[pl.BlockSpec((Tc, Dp, I), lambda c: (c, 0, 0)),
                      pl.BlockSpec((Tc, Dp, I), lambda c: (NC - 1 - c, 0, 0))] + w_specs,
            out_specs=[pl.BlockSpec((Tc, Dp, H), lambda c: (c, 0, 0)),
                       pl.BlockSpec((Tc, Dp, H), lambda c: (NC - 1 - c, 0, 0))],
            scratch_shapes=scratch)
        out_f, out_b = pl.pallas_call(
            kernel,
            out_shape=(jax.ShapeDtypeStruct((T_pad, Dp, H), jnp.float32),
                       jax.ShapeDtypeStruct((T_pad, Dp, H), jnp.float32)),
            grid_spec=grid_spec, compiler_params=cp, cost_estimate=ce,
        )(x_tm, x_tm, w_in, w_rec, b)
        out = jnp.concatenate([out_f, out_b], axis=-1)     # rare path: only when NC > 1

    if T_pad != T:
        out = out[:T]
    return out


def _run_unilstm_layer(x_tm, p, H, budget, vmem_limit):
    """x_tm: (T, Dp, I).  Returns (T, Dp, H)."""
    T, Dp, I = x_tm.shape
    wih, whh, b = p
    w_in = wih.astype(_MM_DTYPE)
    w_rec = whh.astype(_MM_DTYPE)
    bias = b.astype(jnp.float32)
    Tc, NC, T_pad = _plan_uni(T, Dp, I, H, budget)
    if T_pad != T:
        x_tm = jnp.pad(x_tm, ((0, T_pad - T), (0, 0), (0, 0)))

    grid_spec = pltpu.PrefetchScalarGridSpec(
        num_scalar_prefetch=0, grid=(NC,),
        in_specs=[pl.BlockSpec((Tc, Dp, I), lambda c: (c, 0, 0)),
                  pl.BlockSpec((I, 4 * H), lambda c: (0, 0)),
                  pl.BlockSpec((H, 4 * H), lambda c: (0, 0)),
                  pl.BlockSpec((1, 4 * H), lambda c: (0, 0))],
        out_specs=pl.BlockSpec((Tc, Dp, H), lambda c: (c, 0, 0)),
        scratch_shapes=[pltpu.VMEM((Dp, H), jnp.float32),
                        pltpu.VMEM((Dp, H), jnp.float32),
                        pltpu.VMEM((Tc, Dp, 4 * H), jnp.float32)])
    out = pl.pallas_call(
        functools.partial(_unilstm_layer_kernel, H, Tc),
        out_shape=jax.ShapeDtypeStruct((T_pad, Dp, H), jnp.float32),
        grid_spec=grid_spec,
        compiler_params=pltpu.CompilerParams(dimension_semantics=("arbitrary",),
                                             vmem_limit_bytes=vmem_limit),
    )(x_tm, w_in, w_rec, bias)
    if T_pad != T:
        out = out[:T]
    return out


def _run_proj1(h_tm, w_row, b11, budget, vmem_limit):
    """h_tm: (T, Dp, F).  Returns lane-dense (Dp, T) projection (output_dim == 1)."""
    T, Dp, F = h_tm.shape
    per_t = Dp * 4 * 2 * _round_up(F, 128) + Dp * 4
    if T * per_t <= budget:
        Tc, T_pad = T, T
    else:
        Tc = max(128, (budget // per_t) // 128 * 128)
        T_pad = _round_up(T, Tc)
    if T_pad != T:
        h_tm = jnp.pad(h_tm, ((0, T_pad - T), (0, 0), (0, 0)))
    NC = T_pad // Tc
    out = pl.pallas_call(
        _proj1_kernel,
        out_shape=jax.ShapeDtypeStruct((Dp, T_pad), h_tm.dtype),
        grid_spec=pltpu.PrefetchScalarGridSpec(
            num_scalar_prefetch=0, grid=(NC,),
            in_specs=[pl.BlockSpec((Tc, Dp, F), lambda c: (c, 0, 0)),
                      pl.BlockSpec((1, F), lambda c: (0, 0)),
                      pl.BlockSpec((1, 1), lambda c: (0, 0))],
            out_specs=pl.BlockSpec((Dp, Tc), lambda c: (0, c))),
        compiler_params=pltpu.CompilerParams(dimension_semantics=("parallel",),
                                             vmem_limit_bytes=vmem_limit),
    )(h_tm, w_row, b11)
    return out[:, :T]


def _run_linear(x2d, w_t, b, vmem_limit):
    """Tiled generic projection: (N, F) @ (F, O) + b, grid over N."""
    N, F = x2d.shape
    O = w_t.shape[1]
    blk = 512
    if N <= blk:
        Np = _round_up(max(N, 8), 8)
        bs, nb = Np, 1
    else:
        Np = _round_up(N, blk)
        bs, nb = blk, Np // blk
    if Np != N:
        x2d = jnp.pad(x2d, ((0, Np - N), (0, 0)))
    out = pl.pallas_call(
        _linear_kernel,
        out_shape=jax.ShapeDtypeStruct((Np, O), x2d.dtype),
        grid_spec=pltpu.PrefetchScalarGridSpec(
            num_scalar_prefetch=0, grid=(nb,),
            in_specs=[pl.BlockSpec((bs, F), lambda i: (i, 0)),
                      pl.BlockSpec((F, O), lambda i: (0, 0)),
                      pl.BlockSpec((1, O), lambda i: (0, 0))],
            out_specs=pl.BlockSpec((bs, O), lambda i: (i, 0))),
        compiler_params=pltpu.CompilerParams(dimension_semantics=("parallel",),
                                             vmem_limit_bytes=vmem_limit),
    )(x2d, w_t, b)
    return out[:N]


# ---------------------------------------------------------------------------
# Forward pass (matches PyTorch module's inference semantics)
# ---------------------------------------------------------------------------
def lstm_forward(x, params, *, hidden_dim, num_layers=3, bidirect=True,
                 output_dim=1, reduction=None):
    if x.ndim == 1:
        x = x.reshape(1, -1, 1)
    elif x.ndim == 2:
        x = x.reshape(*x.shape, 1)
    D, T, _ = x.shape
    H = hidden_dim
    vmem_limit, budget = _vmem_caps()

    # Time-major layout across all layers; batch padded to >=8 sublanes so every in-kernel
    # reshape / per-step tile is sublane aligned.  Padded batch rows pick up bias-only
    # dynamics but are sliced off before any reduction or return.
    Dp = max(8, _round_up(D, 8))
    x_tm = jnp.transpose(x, (1, 0, 2)).astype(jnp.float32)           # (T, D, I)
    if Dp != D:
        x_tm = jnp.pad(x_tm, ((0, 0), (0, Dp - D), (0, 0)))

    h_tm = x_tm
    for layer in range(num_layers):
        if bidirect:
            h_tm = _run_bilstm_layer(h_tm, params["lstm"][layer][0],
                                     params["lstm"][layer][1], H, budget, vmem_limit)
        else:
            h_tm = _run_unilstm_layer(h_tm, params["lstm"][layer][0], H,
                                      budget, vmem_limit)
        # TODO(synk): nn.LSTM inter-layer dropout is train-time-only; omitted (inference).

    w_lin_t, b_lin = params["lin"]                                   # (F, O), (1, O)
    none_red = reduction is None or reduction == "none"

    if output_dim == 1 and none_red:
        # Fused lane-dense projection straight off the last layer's activations.
        w_row = jnp.transpose(w_lin_t)                               # (1, F)
        out_pad = _run_proj1(h_tm, w_row, b_lin.reshape(1, 1), budget, vmem_limit)
        return out_pad[:D]                                           # (D, T)

    # Generic fallback path (other reductions / output_dim > 1).
    h_tm = h_tm[:, :D, :]                                            # (T, D, F)
    if isinstance(reduction, int):
        h2 = h_tm[reduction]
        lead = (D,)
    elif reduction == "mean":
        h2 = jnp.mean(h_tm, axis=0)
        lead = (D,)
    elif reduction == "sum":
        h2 = jnp.sum(h_tm, axis=0)
        lead = (D,)
    elif none_red:
        h2 = jnp.transpose(h_tm, (1, 0, 2)).reshape(D * T, -1)
        lead = (D, T)
    else:
        raise ValueError(f"reduction {reduction} is not supported.")  # torch min/max ill-posed

    out = _run_linear(h2.reshape(-1, h2.shape[-1]), w_lin_t, b_lin, vmem_limit)
    out = out.reshape(*lead, output_dim)
    if output_dim == 1 and out.ndim == 3:
        out = out[..., 0]
    return out


# ---------------------------------------------------------------------------
# Deterministic parameter init (matches nn.LSTM / nn.Linear shapes & init range)
# ---------------------------------------------------------------------------
def init_params(key, hidden_dim, input_dim=1, num_layers=3, bidirect=True,
                output_dim=1, dtype=jnp.float32):
    num_dirs = 2 if bidirect else 1
    H = hidden_dim
    k_lstm = 1.0 / jnp.sqrt(H)
    params = {"lstm": []}
    for layer in range(num_layers):
        in_size = input_dim if layer == 0 else num_dirs * H
        layer_dirs = []
        for _ in range(num_dirs):
            key, k1, k2, k3, k4 = jax.random.split(key, 5)
            w_ih = jax.random.uniform(k1, (4 * H, in_size), dtype, -k_lstm, k_lstm)
            w_hh = jax.random.uniform(k2, (4 * H, H), dtype, -k_lstm, k_lstm)
            b_ih = jax.random.uniform(k3, (4 * H,), dtype, -k_lstm, k_lstm)
            b_hh = jax.random.uniform(k4, (4 * H,), dtype, -k_lstm, k_lstm)
            layer_dirs.append((w_ih.T, w_hh.T, (b_ih + b_hh).reshape(1, 4 * H)))
        params["lstm"].append(layer_dirs)

    feat = num_dirs * H
    k_lin = 1.0 / jnp.sqrt(feat)
    key, k1, k2 = jax.random.split(key, 3)
    w_lin = jax.random.uniform(k1, (output_dim, feat), dtype, -k_lin, k_lin)
    b_lin = jax.random.uniform(k2, (output_dim,), dtype, -k_lin, k_lin)
    params["lin"] = (w_lin.T, b_lin.reshape(1, output_dim))
    return params


# ---------------------------------------------------------------------------
# Pure-JAX f32 reference (for correctness check)
# ---------------------------------------------------------------------------
def lstm_forward_ref(x, params, *, hidden_dim, num_layers=3, bidirect=True,
                     output_dim=1, reduction=None):
    if x.ndim == 1:
        x = x.reshape(1, -1, 1)
    elif x.ndim == 2:
        x = x.reshape(*x.shape, 1)
    num_dirs = 2 if bidirect else 1
    H = hidden_dim
    h = x
    for layer in range(num_layers):
        dir_outs = []
        for d in range(num_dirs):
            w_ih_t, w_hh_t, b = params["lstm"][layer][d]
            inp = h if d == 0 else jnp.flip(h, axis=1)
            D = inp.shape[0]

            def step(carry, x_t):
                hp, cp = carry
                g = x_t @ w_ih_t + hp @ w_hh_t + b
                i = jax.nn.sigmoid(g[:, 0 * H:1 * H])
                f = jax.nn.sigmoid(g[:, 1 * H:2 * H])
                gg = jnp.tanh(g[:, 2 * H:3 * H])
                o = jax.nn.sigmoid(g[:, 3 * H:4 * H])
                cn = f * cp + i * gg
                hn = o * jnp.tanh(cn)
                return (hn, cn), hn

            init = (jnp.zeros((D, H), x.dtype), jnp.zeros((D, H), x.dtype))
            _, ys = lax.scan(step, init, jnp.transpose(inp, (1, 0, 2)))
            out = jnp.transpose(ys, (1, 0, 2))
            if d == 1:
                out = jnp.flip(out, axis=1)
            dir_outs.append(out)
        h = jnp.concatenate(dir_outs, axis=-1) if num_dirs == 2 else dir_outs[0]
    w_lin_t, b_lin = params["lin"]
    out = h @ w_lin_t + b_lin
    if output_dim == 1 and out.ndim == 3:
        out = out[..., 0]
    return out


# ---------------------------------------------------------------------------
if __name__ == "__main__":
    hidden_dim = 32
    num_layers = 3
    bidirect = True
    output_dim = 1
    D, T = 2, 8

    key = jax.random.PRNGKey(0)
    key, pkey, xkey = jax.random.split(key, 3)
    params = init_params(pkey, hidden_dim, input_dim=1, num_layers=num_layers,
                         bidirect=bidirect, output_dim=output_dim)
    x = jax.random.normal(xkey, (D, T), dtype=jnp.float32)   # (D, T) -> (D, T, 1) inside

    fwd = jax.jit(functools.partial(lstm_forward, hidden_dim=hidden_dim,
                                    num_layers=num_layers, bidirect=bidirect,
                                    output_dim=output_dim, reduction=None))
    out = jax.block_until_ready(fwd(x, params))

    ref = jax.block_until_ready(
        lstm_forward_ref(x, params, hidden_dim=hidden_dim, num_layers=num_layers,
                         bidirect=bidirect, output_dim=output_dim, reduction=None))

    assert out.shape == (D, T), out.shape
    # Matmul operands are bf16 (f32 accumulation), so compare against the f32 reference
    # with a bf16-appropriate tolerance.
    err = float(jnp.max(jnp.abs(out - ref)))
    assert jnp.allclose(out, ref, rtol=2e-2, atol=2e-2), f"max abs err = {err}"
    print("KERNEL_OK")
</pallas_src>

<mosaic_0001>
module attributes {stable_mosaic.version = 11 : i64} {
  func.func @_proj1_kernel(%arg0: i32, %arg1: memref<8x8x64xf32, #tpu.memory_space<vmem>>, %arg2: memref<1x64xf32, #tpu.memory_space<vmem>>, %arg3: memref<1x1xf32, #tpu.memory_space<vmem>>, %arg4: memref<8x8xf32, #tpu.memory_space<vmem>>) attributes {dimension_semantics = [#tpu.dimension_semantics<parallel>], iteration_bounds = array<i64: 1>, scalar_prefetch = 0 : i64, scratch_operands = 0 : i64, tpu.core_type = #tpu.core_type<tc>, window_params = [{transform_indices = @transform_0, window_bounds = array<i64: 8, 8, 64>}, {pipeline_mode = #tpu.pipeline_mode<synchronous>, transform_indices = @transform_1, window_bounds = array<i64: 1, 64>}, {pipeline_mode = #tpu.pipeline_mode<synchronous>, transform_indices = @transform_2, window_bounds = array<i64: 1, 1>}, {transform_indices = @transform_3, window_bounds = array<i64: 8, 8>}]} {
    %c0 = arith.constant 0 : index
    %c0_0 = arith.constant 0 : index
    %c0_1 = arith.constant 0 : index
    %0 = vector.load %arg1[%c0, %c0_0, %c0_1] : memref<8x8x64xf32, #tpu.memory_space<vmem>>, vector<8x8x64xf32>
    %c0_2 = arith.constant 0 : index
    %c0_3 = arith.constant 0 : index
    %1 = vector.load %arg2[%c0_2, %c0_3] : memref<1x64xf32, #tpu.memory_space<vmem>>, vector<1x64xf32>
    %2 = vector.shape_cast %1 : vector<1x64xf32> to vector<1x1x64xf32>
    %3 = vector.broadcast %2 : vector<1x1x64xf32> to vector<8x8x64xf32>
    %4 = arith.mulf %0, %3 : vector<8x8x64xf32>
    %cst = arith.constant dense<0.000000e+00> : vector<8x8xf32>
    %5 = vector.multi_reduction <add>, %4, %cst [2] : vector<8x8x64xf32> to vector<8x8xf32>
    %c0_4 = arith.constant 0 : index
    %c0_5 = arith.constant 0 : index
    %6 = vector.load %arg3[%c0_4, %c0_5] : memref<1x1xf32, #tpu.memory_space<vmem>>, vector<1x1xf32>
    %7 = vector.broadcast %6 : vector<1x1xf32> to vector<8x8xf32>
    %8 = arith.addf %5, %7 : vector<8x8xf32>
    %9 = tpu.transpose %8, [1, 0] : vector<8x8xf32> -> vector<8x8xf32>
    %c0_6 = arith.constant 0 : index
    %c0_7 = arith.constant 0 : index
    %10 = vector.load %arg4[%c0_6, %c0_7] : memref<8x8xf32, #tpu.memory_space<vmem>>, vector<8x8xf32>
    tpu.vector_store %arg4[%c0_6, %c0_7], %9 {strides = array<i32>} : memref<8x8xf32, #tpu.memory_space<vmem>>, vector<8x8xf32>,
    return
  }
  func.func @transform_0(%arg0: i32) -> (i32, i32, i32) {
    %c0_i32 = arith.constant 0 : i32
    %c0_i32_0 = arith.constant 0 : i32
    %c0_i32_1 = arith.constant 0 : i32
    return %arg0, %c0_i32, %c0_i32_0 : i32, i32, i32
  }
  func.func @transform_1(%arg0: i32) -> (i32, i32) {
    %c0_i32 = arith.constant 0 : i32
    %c0_i32_0 = arith.constant 0 : i32
    %c0_i32_1 = arith.constant 0 : i32
    return %c0_i32, %c0_i32_0 : i32, i32
  }
  func.func @transform_2(%arg0: i32) -> (i32, i32) {
    %c0_i32 = arith.constant 0 : i32
    %c0_i32_0 = arith.constant 0 : i32
    %c0_i32_1 = arith.constant 0 : i32
    return %c0_i32, %c0_i32_0 : i32, i32
  }
  func.func @transform_3(%arg0: i32) -> (i32, i32) {
    %c0_i32 = arith.constant 0 : i32
    %c0_i32_0 = arith.constant 0 : i32
    return %c0_i32, %arg0 : i32, i32
  }
}

module attributes {stable_mosaic.version = 11 : i64} {
  func.func @_bilstm_layer_kernel(%arg0: i32, %arg1: memref<8x8x64xf32, #tpu.memory_space<vmem>>, %arg2: memref<64x256xbf16, #tpu.memory_space<vmem>>, %arg3: memref<64x256xbf16, #tpu.memory_space<vmem>>, %arg4: memref<1x256xf32, #tpu.memory_space<vmem>>, %arg5: memref<8x8x64xf32, #tpu.memory_space<vmem>>, %arg6: memref<8x64xf32, #tpu.memory_space<vmem>>, %arg7: memref<8x32xf32, #tpu.memory_space<vmem>>, %arg8: memref<8x32xf32, #tpu.memory_space<vmem>>, %arg9: memref<8x8x256xf32, #tpu.memory_space<vmem>>) attributes {dimension_semantics = [#tpu.dimension_semantics<arbitrary>], iteration_bounds = array<i64: 1>, scalar_prefetch = 0 : i64, scratch_operands = 4 : i64, tpu.core_type = #tpu.core_type<tc>, window_params = [{pipeline_mode = #tpu.pipeline_mode<synchronous>, transform_indices = @transform_0, window_bounds = array<i64: 8, 8, 64>}, {pipeline_mode = #tpu.pipeline_mode<synchronous>, transform_indices = @transform_1, window_bounds = array<i64: 64, 256>}, {pipeline_mode = #tpu.pipeline_mode<synchronous>, transform_indices = @transform_2, window_bounds = array<i64: 64, 256>}, {pipeline_mode = #tpu.pipeline_mode<synchronous>, transform_indices = @transform_3, window_bounds = array<i64: 1, 256>}, {pipeline_mode = #tpu.pipeline_mode<synchronous>, transform_indices = @transform_4, window_bounds = array<i64: 8, 8, 64>}]} {
    %c0_i32 = arith.constant 0 : i32
    %0 = arith.cmpi eq, %arg0, %c0_i32 : i32
    %1 = arith.extui %0 : i1 to i32
    %c0_i32_0 = arith.constant 0 : i32
    %2 = arith.cmpi ne, %1, %c0_i32_0 : i32
    scf.if %2 {
      %cst_111 = arith.constant 0.000000e+00 : f32
      %373 = vector.broadcast %cst_111 : f32 to vector<8x64xf32>
      %c0_112 = arith.constant 0 : index
      %c0_113 = arith.constant 0 : index
      %374 = vector.load %arg6[%c0_112, %c0_113] : memref<8x64xf32, #tpu.memory_space<vmem>>, vector<8x64xf32>
      tpu.vector_store %arg6[%c0_112, %c0_113], %373 {strides = array<i32>} : memref<8x64xf32, #tpu.memory_space<vmem>>, vector<8x64xf32>,
      %cst_114 = arith.constant 0.000000e+00 : f32
      %375 = vector.broadcast %cst_114 : f32 to vector<8x32xf32>
      %c0_115 = arith.constant 0 : index
      %c0_116 = arith.constant 0 : index
      %376 = vector.load %arg7[%c0_115, %c0_116] : memref<8x32xf32, #tpu.memory_space<vmem>>, vector<8x32xf32>
      tpu.vector_store %arg7[%c0_115, %c0_116], %375 {strides = array<i32>} : memref<8x32xf32, #tpu.memory_space<vmem>>, vector<8x32xf32>,
      %cst_117 = arith.constant 0.000000e+00 : f32
      %377 = vector.broadcast %cst_117 : f32 to vector<8x32xf32>
      %c0_118 = arith.constant 0 : index
      %c0_119 = arith.constant 0 : index
      %378 = vector.load %arg8[%c0_118, %c0_119] : memref<8x32xf32, #tpu.memory_space<vmem>>, vector<8x32xf32>
      tpu.vector_store %arg8[%c0_118, %c0_119], %377 {strides = array<i32>} : memref<8x32xf32, #tpu.memory_space<vmem>>, vector<8x32xf32>,
    } else {
    }
    %c0 = arith.constant 0 : index
    %c0_1 = arith.constant 0 : index
    %3 = vector.load %arg2[%c0, %c0_1] : memref<64x256xbf16, #tpu.memory_space<vmem>>, vector<64x256xbf16>
    %c0_2 = arith.constant 0 : index
    %c0_3 = arith.constant 0 : index
    %4 = vector.load %arg4[%c0_2, %c0_3] : memref<1x256xf32, #tpu.memory_space<vmem>>, vector<1x256xf32>
    %c0_4 = arith.constant 0 : index
    %c0_5 = arith.constant 0 : index
    %c0_6 = arith.constant 0 : index
    %5 = vector.load %arg1[%c0_4, %c0_5, %c0_6] : memref<8x8x64xf32, #tpu.memory_space<vmem>>, vector<8x8x64xf32>
    %6 = vector.shape_cast %4 : vector<1x256xf32> to vector<1x1x256xf32>
    %7 = vector.shape_cast %5 : vector<8x8x64xf32> to vector<64x64xf32>
    %8 = arith.truncf %7 : vector<64x64xf32> to vector<64x64xbf16>
    %cst = arith.constant dense<0.000000e+00> : vector<64x256xf32>
    %9 = tpu.matmul %8, %3, %cst {dimension_numbers = #tpu.dot_dimension_numbers<[1], [0], [0], [1], [0, 0, 1, 1], [], []>} : vector<64x64xbf16>, vector<64x256xbf16>, vector<64x256xf32> -> vector<64x256xf32>
    %10 = vector.shape_cast %9 : vector<64x256xf32> to vector<8x8x256xf32>
    %11 = vector.broadcast %6 : vector<1x1x256xf32> to vector<8x8x256xf32>
    %12 = arith.addf %10, %11 : vector<8x8x256xf32>
    %c0_7 = arith.constant 0 : index
    %c0_8 = arith.constant 0 : index
    %c0_9 = arith.constant 0 : index
    %13 = vector.load %arg9[%c0_7, %c0_8, %c0_9] : memref<8x8x256xf32, #tpu.memory_space<vmem>>, vector<8x8x256xf32>
    tpu.vector_store %arg9[%c0_7, %c0_8, %c0_9], %12 {strides = array<i32>} : memref<8x8x256xf32, #tpu.memory_space<vmem>>, vector<8x8x256xf32>,
    %c0_10 = arith.constant 0 : index
    %c0_11 = arith.constant 0 : index
    %14 = vector.load %arg3[%c0_10, %c0_11] : memref<64x256xbf16, #tpu.memory_space<vmem>>, vector<64x256xbf16>
    %c0_12 = arith.constant 0 : index
    %c0_13 = arith.constant 0 : index
    %15 = vector.load %arg6[%c0_12, %c0_13] : memref<8x64xf32, #tpu.memory_space<vmem>>, vector<8x64xf32>
    %c0_14 = arith.constant 0 : index
    %c0_15 = arith.constant 0 : index
    %16 = vector.load %arg7[%c0_14, %c0_15] : memref<8x32xf32, #tpu.memory_space<vmem>>, vector<8x32xf32>
    %c0_16 = arith.constant 0 : index
    %c0_17 = arith.constant 0 : index
    %17 = vector.load %arg8[%c0_16, %c0_17] : memref<8x32xf32, #tpu.memory_space<vmem>>, vector<8x32xf32>
    %c0_i32_18 = arith.constant 0 : i32
    %c7_i32 = arith.constant 7 : i32
    %18 = arith.subi %c7_i32, %c0_i32_18 : i32
    %19 = arith.index_cast %c0_i32_18 : i32 to index
    %c0_19 = arith.constant 0 : index
    %c0_20 = arith.constant 0 : index
    %20 = vector.load %arg9[%19, %c0_19, %c0_20] : memref<8x8x256xf32, #tpu.memory_space<vmem>>, vector<1x8x128xf32>
    %21 = vector.shape_cast %20 : vector<1x8x128xf32> to vector<8x128xf32>
    %22 = arith.index_cast %18 : i32 to index
    %c0_21 = arith.constant 0 : index
    %c128 = arith.constant 128 : index
    %23 = vector.load %arg9[%22, %c0_21, %c128] : memref<8x8x256xf32, #tpu.memory_space<vmem>>, vector<1x8x128xf32>
    %24 = vector.shape_cast %23 : vector<1x8x128xf32> to vector<8x128xf32>
    %25 = tpu.concatenate %21, %24 in 1 : vector<8x128xf32>, vector<8x128xf32> -> vector<8x256xf32>
    %26 = arith.truncf %15 : vector<8x64xf32> to vector<8x64xbf16>
    %cst_22 = arith.constant dense<0.000000e+00> : vector<8x256xf32>
    %27 = tpu.matmul %26, %14, %cst_22 {dimension_numbers = #tpu.dot_dimension_numbers<[1], [0], [0], [1], [0, 0, 1, 1], [], []>} : vector<8x64xbf16>, vector<64x256xbf16>, vector<8x256xf32> -> vector<8x256xf32>
    %28 = arith.addf %25, %27 : vector<8x256xf32>
    %29 = arith.negf %28 : vector<8x256xf32>
    %30 = math.exp %29 : vector<8x256xf32>
    %cst_23 = arith.constant 1.000000e+00 : f32
    %31 = vector.broadcast %cst_23 : f32 to vector<8x256xf32>
    %32 = arith.addf %31, %30 : vector<8x256xf32>
    %33 = arith.divf %31, %32 : vector<8x256xf32>
    %34 = math.tanh %28 : vector<8x256xf32>
    %35 = vector.extract_strided_slice %33 {offsets = [0, 32], sizes = [8, 32], strides = [1, 1]} : vector<8x256xf32> to vector<8x32xf32>
    %36 = arith.mulf %35, %16 : vector<8x32xf32>
    %37 = vector.extract_strided_slice %33 {offsets = [0, 0], sizes = [8, 32], strides = [1, 1]} : vector<8x256xf32> to vector<8x32xf32>
    %38 = vector.extract_strided_slice %34 {offsets = [0, 64], sizes = [8, 32], strides = [1, 1]} : vector<8x256xf32> to vector<8x32xf32>
    %39 = arith.mulf %37, %38 : vector<8x32xf32>
    %40 = arith.addf %36, %39 : vector<8x32xf32>
    %41 = vector.extract_strided_slice %33 {offsets = [0, 160], sizes = [8, 32], strides = [1, 1]} : vector<8x256xf32> to vector<8x32xf32>
    %42 = arith.mulf %41, %17 : vector<8x32xf32>
    %43 = vector.extract_strided_slice %33 {offsets = [0, 128], sizes = [8, 32], strides = [1, 1]} : vector<8x256xf32> to vector<8x32xf32>
    %44 = vector.extract_strided_slice %34 {offsets = [0, 192], sizes = [8, 32], strides = [1, 1]} : vector<8x256xf32> to vector<8x32xf32>
    %45 = arith.mulf %43, %44 : vector<8x32xf32>
    %46 = arith.addf %42, %45 : vector<8x32xf32>
    %47 = vector.extract_strided_slice %33 {offsets = [0, 96], sizes = [8, 32], strides = [1, 1]} : vector<8x256xf32> to vector<8x32xf32>
    %48 = math.tanh %40 : vector<8x32xf32>
    %49 = arith.mulf %47, %48 : vector<8x32xf32>
    %50 = vector.extract_strided_slice %33 {offsets = [0, 224], sizes = [8, 32], strides = [1, 1]} : vector<8x256xf32> to vector<8x32xf32>
    %51 = math.tanh %46 : vector<8x32xf32>
    %52 = arith.mulf %50, %51 : vector<8x32xf32>
    %53 = arith.index_cast %c0_i32_18 : i32 to index
    %c0_24 = arith.constant 0 : index
    %c0_25 = arith.constant 0 : index
    %54 = vector.load %arg5[%53, %c0_24, %c0_25] : memref<8x8x64xf32, #tpu.memory_space<vmem>>, vector<1x8x32xf32>
    %55 = vector.shape_cast %54 : vector<1x8x32xf32> to vector<8x32xf32>
    %56 = vector.shape_cast %49 : vector<8x32xf32> to vector<1x8x32xf32>
    tpu.vector_store %arg5[%53, %c0_24, %c0_25], %56 {strides = array<i32>} : memref<8x8x64xf32, #tpu.memory_space<vmem>>, vector<1x8x32xf32>,
    %57 = arith.index_cast %18 : i32 to index
    %c0_26 = arith.constant 0 : index
    %c32 = arith.constant 32 : index
    %58 = vector.load %arg5[%57, %c0_26, %c32] : memref<8x8x64xf32, #tpu.memory_space<vmem>>, vector<1x8x32xf32>
    %59 = vector.shape_cast %58 : vector<1x8x32xf32> to vector<8x32xf32>
    %60 = vector.shape_cast %52 : vector<8x32xf32> to vector<1x8x32xf32>
    tpu.vector_store %arg5[%57, %c0_26, %c32], %60 {strides = array<i32>} : memref<8x8x64xf32, #tpu.memory_space<vmem>>, vector<1x8x32xf32>,
    %61 = tpu.concatenate %49, %52 in 1 : vector<8x32xf32>, vector<8x32xf32> -> vector<8x64xf32>
    %c1_i32 = arith.constant 1 : i32
    %c7_i32_27 = arith.constant 7 : i32
    %62 = arith.subi %c7_i32_27, %c1_i32 : i32
    %63 = arith.index_cast %c1_i32 : i32 to index
    %c0_28 = arith.constant 0 : index
    %c0_29 = arith.constant 0 : index
    %64 = vector.load %arg9[%63, %c0_28, %c0_29] : memref<8x8x256xf32, #tpu.memory_space<vmem>>, vector<1x8x128xf32>
    %65 = vector.shape_cast %64 : vector<1x8x128xf32> to vector<8x128xf32>
    %66 = arith.index_cast %62 : i32 to index
    %c0_30 = arith.constant 0 : index
    %c128_31 = arith.constant 128 : index
    %67 = vector.load %arg9[%66, %c0_30, %c128_31] : memref<8x8x256xf32, #tpu.memory_space<vmem>>, vector<1x8x128xf32>
    %68 = vector.shape_cast %67 : vector<1x8x128xf32> to vector<8x128xf32>
    %69 = tpu.concatenate %65, %68 in 1 : vector<8x128xf32>, vector<8x128xf32> -> vector<8x256xf32>
    %70 = arith.truncf %61 : vector<8x64xf32> to vector<8x64xbf16>
    %cst_32 = arith.constant dense<0.000000e+00> : vector<8x256xf32>
    %71 = tpu.matmul %70, %14, %cst_32 {dimension_numbers = #tpu.dot_dimension_numbers<[1], [0], [0], [1], [0, 0, 1, 1], [], []>} : vector<8x64xbf16>, vector<64x256xbf16>, vector<8x256xf32> -> vector<8x256xf32>
    %72 = arith.addf %69, %71 : vector<8x256xf32>
    %73 = arith.negf %72 : vector<8x256xf32>
    %74 = math.exp %73 : vector<8x256xf32>
    %cst_33 = arith.constant 1.000000e+00 : f32
    %75 = vector.broadcast %cst_33 : f32 to vector<8x256xf32>
    %76 = arith.addf %75, %74 : vector<8x256xf32>
    %77 = arith.divf %75, %76 : vector<8x256xf32>
    %78 = math.tanh %72 : vector<8x256xf32>
    %79 = vector.extract_strided_slice %77 {offsets = [0, 32], sizes = [8, 32], strides = [1, 1]} : vector<8x256xf32> to vector<8x32xf32>
    %80 = arith.mulf %79, %40 : vector<8x32xf32>
    %81 = vector.extract_strided_slice %77 {offsets = [0, 0], sizes = [8, 32], strides = [1, 1]} : vector<8x256xf32> to vector<8x32xf32>
    %82 = vector.extract_strided_slice %78 {offsets = [0, 64], sizes = [8, 32], strides = [1, 1]} : vector<8x256xf32> to vector<8x32xf32>
    %83 = arith.mulf %81, %82 : vector<8x32xf32>
    %84 = arith.addf %80, %83 : vector<8x32xf32>
    %85 = vector.extract_strided_slice %77 {offsets = [0, 160], sizes = [8, 32], strides = [1, 1]} : vector<8x256xf32> to vector<8x32xf32>
    %86 = arith.mulf %85, %46 : vector<8x32xf32>
    %87 = vector.extract_strided_slice %77 {offsets = [0, 128], sizes = [8, 32], strides = [1, 1]} : vector<8x256xf32> to vector<8x32xf32>
    %88 = vector.extract_strided_slice %78 {offsets = [0, 192], sizes = [8, 32], strides = [1, 1]} : vector<8x256xf32> to vector<8x32xf32>
    %89 = arith.mulf %87, %88 : vector<8x32xf32>
    %90 = arith.addf %86, %89 : vector<8x32xf32>
    %91 = vector.extract_strided_slice %77 {offsets = [0, 96], sizes = [8, 32], strides = [1, 1]} : vector<8x256xf32> to vector<8x32xf32>
    %92 = math.tanh %84 : vector<8x32xf32>
    %93 = arith.mulf %91, %92 : vector<8x32xf32>
    %94 = vector.extract_strided_slice %77 {offsets = [0, 224], sizes = [8, 32], strides = [1, 1]} : vector<8x256xf32> to vector<8x32xf32>
    %95 = math.tanh %90 : vector<8x32xf32>
    %96 = arith.mulf %94, %95 : vector<8x32xf32>
    %97 = arith.index_cast %c1_i32 : i32 to index
    %c0_34 = arith.constant 0 : index
    %c0_35 = arith.constant 0 : index
    %98 = vector.load %arg5[%97, %c0_34, %c0_35] : memref<8x8x64xf32, #tpu.memory_space<vmem>>, vector<1x8x32xf32>
    %99 = vector.shape_cast %98 : vector<1x8x32xf32> to vector<8x32xf32>
    %100 = vector.shape_cast %93 : vector<8x32xf32> to vector<1x8x32xf32>
    tpu.vector_store %arg5[%97, %c0_34, %c0_35], %100 {strides = array<i32>} : memref<8x8x64xf32, #tpu.memory_space<vmem>>, vector<1x8x32xf32>,
    %101 = arith.index_cast %62 : i32 to index
    %c0_36 = arith.constant 0 : index
    %c32_37 = arith.constant 32 : index
    %102 = vector.load %arg5[%101, %c0_36, %c32_37] : memref<8x8x64xf32, #tpu.memory_space<vmem>>, vector<1x8x32xf32>
    %103 = vector.shape_cast %102 : vector<1x8x32xf32> to vector<8x32xf32>
    %104 = vector.shape_cast %96 : vector<8x32xf32> to vector<1x8x32xf32>
    tpu.vector_store %arg5[%101, %c0_36, %c32_37], %104 {strides = array<i32>} : memref<8x8x64xf32, #tpu.memory_space<vmem>>, vector<1x8x32xf32>,
    %105 = tpu.concatenate %93, %96 in 1 : vector<8x32xf32>, vector<8x32xf32> -> vector<8x64xf32>
    %c2_i32 = arith.constant 2 : i32
    %c7_i32_38 = arith.constant 7 : i32
    %106 = arith.subi %c7_i32_38, %c2_i32 : i32
    %107 = arith.index_cast %c2_i32 : i32 to index
    %c0_39 = arith.constant 0 : index
    %c0_40 = arith.constant 0 : index
    %108 = vector.load %arg9[%107, %c0_39, %c0_40] : memref<8x8x256xf32, #tpu.memory_space<vmem>>, vector<1x8x128xf32>
    %109 = vector.shape_cast %108 : vector<1x8x128xf32> to vector<8x128xf32>
    %110 = arith.index_cast %106 : i32 to index
    %c0_41 = arith.constant 0 : index
    %c128_42 = arith.constant 128 : index
    %111 = vector.load %arg9[%110, %c0_41, %c128_42] : memref<8x8x256xf32, #tpu.memory_space<vmem>>, vector<1x8x128xf32>
    %112 = vector.shape_cast %111 : vector<1x8x128xf32> to vector<8x128xf32>
    %113 = tpu.concatenate %109, %112 in 1 : vector<8x128xf32>, vector<8x128xf32> -> vector<8x256xf32>
    %114 = arith.truncf %105 : vector<8x64xf32> to vector<8x64xbf16>
    %cst_43 = arith.constant dense<0.000000e+00> : vector<8x256xf32>
    %115 = tpu.matmul %114, %14, %cst_43 {dimension_numbers = #tpu.dot_dimension_numbers<[1], [0], [0], [1], [0, 0, 1, 1], [], []>} : vector<8x64xbf16>, vector<64x256xbf16>, vector<8x256xf32> -> vector<8x256xf32>
    %116 = arith.addf %113, %115 : vector<8x256xf32>
    %117 = arith.negf %116 : vector<8x256xf32>
    %118 = math.exp %117 : vector<8x256xf32>
    %cst_44 = arith.constant 1.000000e+00 : f32
    %119 = vector.broadcast %cst_44 : f32 to vector<8x256xf32>
    %120 = arith.addf %119, %118 : vector<8x256xf32>
    %121 = arith.divf %119, %120 : vector<8x256xf32>
    %122 = math.tanh %116 : vector<8x256xf32>
    %123 = vector.extract_strided_slice %121 {offsets = [0, 32], sizes = [8, 32], strides = [1, 1]} : vector<8x256xf32> to vector<8x32xf32>
    %124 = arith.mulf %123, %84 : vector<8x32xf32>
    %125 = vector.extract_strided_slice %121 {offsets = [0, 0], sizes = [8, 32], strides = [1, 1]} : vector<8x256xf32> to vector<8x32xf32>
    %126 = vector.extract_strided_slice %122 {offsets = [0, 64], sizes = [8, 32], strides = [1, 1]} : vector<8x256xf32> to vector<8x32xf32>
    %127 = arith.mulf %125, %126 : vector<8x32xf32>
    %128 = arith.addf %124, %127 : vector<8x32xf32>
    %129 = vector.extract_strided_slice %121 {offsets = [0, 160], sizes = [8, 32], strides = [1, 1]} : vector<8x256xf32> to vector<8x32xf32>
    %130 = arith.mulf %129, %90 : vector<8x32xf32>
    %131 = vector.extract_strided_slice %121 {offsets = [0, 128], sizes = [8, 32], strides = [1, 1]} : vector<8x256xf32> to vector<8x32xf32>
    %132 = vector.extract_strided_slice %122 {offsets = [0, 192], sizes = [8, 32], strides = [1, 1]} : vector<8x256xf32> to vector<8x32xf32>
    %133 = arith.mulf %131, %132 : vector<8x32xf32>
    %134 = arith.addf %130, %133 : vector<8x32xf32>
    %135 = vector.extract_strided_slice %121 {offsets = [0, 96], sizes = [8, 32], strides = [1, 1]} : vector<8x256xf32> to vector<8x32xf32>
    %136 = math.tanh %128 : vector<8x32xf32>
    %137 = arith.mulf %135, %136 : vector<8x32xf32>
    %138 = vector.extract_strided_slice %121 {offsets = [0, 224], sizes = [8, 32], strides = [1, 1]} : vector<8x256xf32> to vector<8x32xf32>
    %139 = math.tanh %134 : vector<8x32xf32>
    %140 = arith.mulf %138, %139 : vector<8x32xf32>
    %141 = arith.index_cast %c2_i32 : i32 to index
    %c0_45 = arith.constant 0 : index
    %c0_46 = arith.constant 0 : index
    %142 = vector.load %arg5[%141, %c0_45, %c0_46] : memref<8x8x64xf32, #tpu.memory_space<vmem>>, vector<1x8x32xf32>
    %143 = vector.shape_cast %142 : vector<1x8x32xf32> to vector<8x32xf32>
    %144 = vector.shape_cast %137 : vector<8x32xf32> to vector<1x8x32xf32>
    tpu.vector_store %arg5[%141, %c0_45, %c0_46], %144 {strides = array<i32>} : memref<8x8x64xf32, #tpu.memory_space<vmem>>, vector<1x8x32xf32>,
    %145 = arith.index_cast %106 : i32 to index
    %c0_47 = arith.constant 0 : index
    %c32_48 = arith.constant 32 : index
    %146 = vector.load %arg5[%145, %c0_47, %c32_48] : memref<8x8x64xf32, #tpu.memory_space<vmem>>, vector<1x8x32xf32>
    %147 = vector.shape_cast %146 : vector<1x8x32xf32> to vector<8x32xf32>
    %148 = vector.shape_cast %140 : vector<8x32xf32> to vector<1x8x32xf32>
    tpu.vector_store %arg5[%145, %c0_47, %c32_48], %148 {strides = array<i32>} : memref<8x8x64xf32, #tpu.memory_space<vmem>>, vector<1x8x32xf32>,
    %149 = tpu.concatenate %137, %140 in 1 : vector<8x32xf32>, vector<8x32xf32> -> vector<8x64xf32>
    %c3_i32 = arith.constant 3 : i32
    %c7_i32_49 = arith.constant 7 : i32
    %150 = arith.subi %c7_i32_49, %c3_i32 : i32
    %151 = arith.index_cast %c3_i32 : i32 to index
    %c0_50 = arith.constant 0 : index
    %c0_51 = arith.constant 0 : index
    %152 = vector.load %arg9[%151, %c0_50, %c0_51] : memref<8x8x256xf32, #tpu.memory_space<vmem>>, vector<1x8x128xf32>
    %153 = vector.shape_cast %152 : vector<1x8x128xf32> to vector<8x128xf32>
    %154 = arith.index_cast %150 : i32 to index
    %c0_52 = arith.constant 0 : index
    %c128_53 = arith.constant 128 : index
    %155 = vector.load %arg9[%154, %c0_52, %c128_53] : memref<8x8x256xf32, #tpu.memory_space<vmem>>, vector<1x8x128xf32>
    %156 = vector.shape_cast %155 : vector<1x8x128xf32> to vector<8x128xf32>
    %157 = tpu.concatenate %153, %156 in 1 : vector<8x128xf32>, vector<8x128xf32> -> vector<8x256xf32>
    %158 = arith.truncf %149 : vector<8x64xf32> to vector<8x64xbf16>
    %cst_54 = arith.constant dense<0.000000e+00> : vector<8x256xf32>
    %159 = tpu.matmul %158, %14, %cst_54 {dimension_numbers = #tpu.dot_dimension_numbers<[1], [0], [0], [1], [0, 0, 1, 1], [], []>} : vector<8x64xbf16>, vector<64x256xbf16>, vector<8x256xf32> -> vector<8x256xf32>
    %160 = arith.addf %157, %159 : vector<8x256xf32>
    %161 = arith.negf %160 : vector<8x256xf32>
    %162 = math.exp %161 : vector<8x256xf32>
    %cst_55 = arith.constant 1.000000e+00 : f32
    %163 = vector.broadcast %cst_55 : f32 to vector<8x256xf32>
    %164 = arith.addf %163, %162 : vector<8x256xf32>
    %165 = arith.divf %163, %164 : vector<8x256xf32>
    %166 = math.tanh %160 : vector<8x256xf32>
    %167 = vector.extract_strided_slice %165 {offsets = [0, 32], sizes = [8, 32], strides = [1, 1]} : vector<8x256xf32> to vector<8x32xf32>
    %168 = arith.mulf %167, %128 : vector<8x32xf32>
    %169 = vector.extract_strided_slice %165 {offsets = [0, 0], sizes = [8, 32], strides = [1, 1]} : vector<8x256xf32> to vector<8x32xf32>
    %170 = vector.extract_strided_slice %166 {offsets = [0, 64], sizes = [8, 32], strides = [1, 1]} : vector<8x256xf32> to vector<8x32xf32>
    %171 = arith.mulf %169, %170 : vector<8x32xf32>
    %172 = arith.addf %168, %171 : vector<8x32xf32>
    %173 = vector.extract_strided_slice %165 {offsets = [0, 160], sizes = [8, 32], strides = [1, 1]} : vector<8x256xf32> to vector<8x32xf32>
    %174 = arith.mulf %173, %134 : vector<8x32xf32>
    %175 = vector.extract_strided_slice %165 {offsets = [0, 128], sizes = [8, 32], strides = [1, 1]} : vector<8x256xf32> to vector<8x32xf32>
    %176 = vector.extract_strided_slice %166 {offsets = [0, 192], sizes = [8, 32], strides = [1, 1]} : vector<8x256xf32> to vector<8x32xf32>
    %177 = arith.mulf %175, %176 : vector<8x32xf32>
    %178 = arith.addf %174, %177 : vector<8x32xf32>
    %179 = vector.extract_strided_slice %165 {offsets = [0, 96], sizes = [8, 32], strides = [1, 1]} : vector<8x256xf32> to vector<8x32xf32>
    %180 = math.tanh %172 : vector<8x32xf32>
    %181 = arith.mulf %179, %180 : vector<8x32xf32>
    %182 = vector.extract_strided_slice %165 {offsets = [0, 224], sizes = [8, 32], strides = [1, 1]} : vector<8x256xf32> to vector<8x32xf32>
    %183 = math.tanh %178 : vector<8x32xf32>
    %184 = arith.mulf %182, %183 : vector<8x32xf32>
    %185 = arith.index_cast %c3_i32 : i32 to index
    %c0_56 = arith.constant 0 : index
    %c0_57 = arith.constant 0 : index
    %186 = vector.load %arg5[%185, %c0_56, %c0_57] : memref<8x8x64xf32, #tpu.memory_space<vmem>>, vector<1x8x32xf32>
    %187 = vector.shape_cast %186 : vector<1x8x32xf32> to vector<8x32xf32>
    %188 = vector.shape_cast %181 : vector<8x32xf32> to vector<1x8x32xf32>
    tpu.vector_store %arg5[%185, %c0_56, %c0_57], %188 {strides = array<i32>} : memref<8x8x64xf32, #tpu.memory_space<vmem>>, vector<1x8x32xf32>,
    %189 = arith.index_cast %150 : i32 to index
    %c0_58 = arith.constant 0 : index
    %c32_59 = arith.constant 32 : index
    %190 = vector.load %arg5[%189, %c0_58, %c32_59] : memref<8x8x64xf32, #tpu.memory_space<vmem>>, vector<1x8x32xf32>
    %191 = vector.shape_cast %190 : vector<1x8x32xf32> to vector<8x32xf32>
    %192 = vector.shape_cast %184 : vector<8x32xf32> to vector<1x8x32xf32>
    tpu.vector_store %arg5[%189, %c0_58, %c32_59], %192 {strides = array<i32>} : memref<8x8x64xf32, #tpu.memory_space<vmem>>, vector<1x8x32xf32>,
    %193 = tpu.concatenate %181, %184 in 1 : vector<8x32xf32>, vector<8x32xf32> -> vector<8x64xf32>
    %c4_i32 = arith.constant 4 : i32
    %c7_i32_60 = arith.constant 7 : i32
    %194 = arith.subi %c7_i32_60, %c4_i32 : i32
    %195 = arith.index_cast %c4_i32 : i32 to index
    %c0_61 = arith.constant 0 : index
    %c0_62 = arith.constant 0 : index
    %196 = vector.load %arg9[%195, %c0_61, %c0_62] : memref<8x8x256xf32, #tpu.memory_space<vmem>>, vector<1x8x128xf32>
    %197 = vector.shape_cast %196 : vector<1x8x128xf32> to vector<8x128xf32>
    %198 = arith.index_cast %194 : i32 to index
    %c0_63 = arith.constant 0 : index
    %c128_64 = arith.constant 128 : index
    %199 = vector.load %arg9[%198, %c0_63, %c128_64] : memref<8x8x256xf32, #tpu.memory_space<vmem>>, vector<1x8x128xf32>
    %200 = vector.shape_cast %199 : vector<1x8x128xf32> to vector<8x128xf32>
    %201 = tpu.concatenate %197, %200 in 1 : vector<8x128xf32>, vector<8x128xf32> -> vector<8x256xf32>
    %202 = arith.truncf %193 : vector<8x64xf32> to vector<8x64xbf16>
    %cst_65 = arith.constant dense<0.000000e+00> : vector<8x256xf32>
    %203 = tpu.matmul %202, %14, %cst_65 {dimension_numbers = #tpu.dot_dimension_numbers<[1], [0], [0], [1], [0, 0, 1, 1], [], []>} : vector<8x64xbf16>, vector<64x256xbf16>, vector<8x256xf32> -> vector<8x256xf32>
    %204 = arith.addf %201, %203 : vector<8x256xf32>
    %205 = arith.negf %204 : vector<8x256xf32>
    %206 = math.exp %205 : vector<8x256xf32>
    %cst_66 = arith.constant 1.000000e+00 : f32
    %207 = vector.broadcast %cst_66 : f32 to vector<8x256xf32>
    %208 = arith.addf %207, %206 : vector<8x256xf32>
    %209 = arith.divf %207, %208 : vector<8x256xf32>
    %210 = math.tanh %204 : vector<8x256xf32>
    %211 = vector.extract_strided_slice %209 {offsets = [0, 32], sizes = [8, 32], strides = [1, 1]} : vector<8x256xf32> to vector<8x32xf32>
    %212 = arith.mulf %211, %172 : vector<8x32xf32>
    %213 = vector.extract_strided_slice %209 {offsets = [0, 0], sizes = [8, 32], strides = [1, 1]} : vector<8x256xf32> to vector<8x32xf32>
    %214 = vector.extract_strided_slice %210 {offsets = [0, 64], sizes = [8, 32], strides = [1, 1]} : vector<8x256xf32> to vector<8x32xf32>
    %215 = arith.mulf %213, %214 : vector<8x32xf32>
    %216 = arith.addf %212, %215 : vector<8x32xf32>
    %217 = vector.extract_strided_slice %209 {offsets = [0, 160], sizes = [8, 32], strides = [1, 1]} : vector<8x256xf32> to vector<8x32xf32>
    %218 = arith.mulf %217, %178 : vector<8x32xf32>
    %219 = vector.extract_strided_slice %209 {offsets = [0, 128], sizes = [8, 32], strides = [1, 1]} : vector<8x256xf32> to vector<8x32xf32>
    %220 = vector.extract_strided_slice %210 {offsets = [0, 192], sizes = [8, 32], strides = [1, 1]} : vector<8x256xf32> to vector<8x32xf32>
    %221 = arith.mulf %219, %220 : vector<8x32xf32>
    %222 = arith.addf %218, %221 : vector<8x32xf32>
    %223 = vector.extract_strided_slice %209 {offsets = [0, 96], sizes = [8, 32], strides = [1, 1]} : vector<8x256xf32> to vector<8x32xf32>
    %224 = math.tanh %216 : vector<8x32xf32>
    %225 = arith.mulf %223, %224 : vector<8x32xf32>
    %226 = vector.extract_strided_slice %209 {offsets = [0, 224], sizes = [8, 32], strides = [1, 1]} : vector<8x256xf32> to vector<8x32xf32>
    %227 = math.tanh %222 : vector<8x32xf32>
    %228 = arith.mulf %226, %227 : vector<8x32xf32>
    %229 = arith.index_cast %c4_i32 : i32 to index
    %c0_67 = arith.constant 0 : index
    %c0_68 = arith.constant 0 : index
    %230 = vector.load %arg5[%229, %c0_67, %c0_68] : memref<8x8x64xf32, #tpu.memory_space<vmem>>, vector<1x8x32xf32>
    %231 = vector.shape_cast %230 : vector<1x8x32xf32> to vector<8x32xf32>
    %232 = vector.shape_cast %225 : vector<8x32xf32> to vector<1x8x32xf32>
    tpu.vector_store %arg5[%229, %c0_67, %c0_68], %232 {strides = array<i32>} : memref<8x8x64xf32, #tpu.memory_space<vmem>>, vector<1x8x32xf32>,
    %233 = arith.index_cast %194 : i32 to index
    %c0_69 = arith.constant 0 : index
    %c32_70 = arith.constant 32 : index
    %234 = vector.load %arg5[%233, %c0_69, %c32_70] : memref<8x8x64xf32, #tpu.memory_space<vmem>>, vector<1x8x32xf32>
    %235 = vector.shape_cast %234 : vector<1x8x32xf32> to vector<8x32xf32>
    %236 = vector.shape_cast %228 : vector<8x32xf32> to vector<1x8x32xf32>
    tpu.vector_store %arg5[%233, %c0_69, %c32_70], %236 {strides = array<i32>} : memref<8x8x64xf32, #tpu.memory_space<vmem>>, vector<1x8x32xf32>,
    %237 = tpu.concatenate %225, %228 in 1 : vector<8x32xf32>, vector<8x32xf32> -> vector<8x64xf32>
    %c5_i32 = arith.constant 5 : i32
    %c7_i32_71 = arith.constant 7 : i32
    %238 = arith.subi %c7_i32_71, %c5_i32 : i32
    %239 = arith.index_cast %c5_i32 : i32 to index
    %c0_72 = arith.constant 0 : index
    %c0_73 = arith.constant 0 : index
    %240 = vector.load %arg9[%239, %c0_72, %c0_73] : memref<8x8x256xf32, #tpu.memory_space<vmem>>, vector<1x8x128xf32>
    %241 = vector.shape_cast %240 : vector<1x8x128xf32> to vector<8x128xf32>
    %242 = arith.index_cast %238 : i32 to index
    %c0_74 = arith.constant 0 : index
    %c128_75 = arith.constant 128 : index
    %243 = vector.load %arg9[%242, %c0_74, %c128_75] : memref<8x8x256xf32, #tpu.memory_space<vmem>>, vector<1x8x128xf32>
    %244 = vector.shape_cast %243 : vector<1x8x128xf32> to vector<8x128xf32>
    %245 = tpu.concatenate %241, %244 in 1 : vector<8x128xf32>, vector<8x128xf32> -> vector<8x256xf32>
    %246 = arith.truncf %237 : vector<8x64xf32> to vector<8x64xbf16>
    %cst_76 = arith.constant dense<0.000000e+00> : vector<8x256xf32>
    %247 = tpu.matmul %246, %14, %cst_76 {dimension_numbers = #tpu.dot_dimension_numbers<[1], [0], [0], [1], [0, 0, 1, 1], [], []>} : vector<8x64xbf16>, vector<64x256xbf16>, vector<8x256xf32> -> vector<8x256xf32>
    %248 = arith.addf %245, %247 : vector<8x256xf32>
    %249 = arith.negf %248 : vector<8x256xf32>
    %250 = math.exp %249 : vector<8x256xf32>
    %cst_77 = arith.constant 1.000000e+00 : f32
    %251 = vector.broadcast %cst_77 : f32 to vector<8x256xf32>
    %252 = arith.addf %251, %250 : vector<8x256xf32>
    %253 = arith.divf %251, %252 : vector<8x256xf32>
    %254 = math.tanh %248 : vector<8x256xf32>
    %255 = vector.extract_strided_slice %253 {offsets = [0, 32], sizes = [8, 32], strides = [1, 1]} : vector<8x256xf32> to vector<8x32xf32>
    %256 = arith.mulf %255, %216 : vector<8x32xf32>
    %257 = vector.extract_strided_slice %253 {offsets = [0, 0], sizes = [8, 32], strides = [1, 1]} : vector<8x256xf32> to vector<8x32xf32>
    %258 = vector.extract_strided_slice %254 {offsets = [0, 64], sizes = [8, 32], strides = [1, 1]} : vector<8x256xf32> to vector<8x32xf32>
    %259 = arith.mulf %257, %258 : vector<8x32xf32>
    %260 = arith.addf %256, %259 : vector<8x32xf32>
    %261 = vector.extract_strided_slice %253 {offsets = [0, 160], sizes = [8, 32], strides = [1, 1]} : vector<8x256xf32> to vector<8x32xf32>
    %262 = arith.mulf %261, %222 : vector<8x32xf32>
    %263 = vector.extract_strided_slice %253 {offsets = [0, 128], sizes = [8, 32], strides = [1, 1]} : vector<8x256xf32> to vector<8x32xf32>
    %264 = vector.extract_strided_slice %254 {offsets = [0, 192], sizes = [8, 32], strides = [1, 1]} : vector<8x256xf32> to vector<8x32xf32>
    %265 = arith.mulf %263, %264 : vector<8x32xf32>
    %266 = arith.addf %262, %265 : vector<8x32xf32>
    %267 = vector.extract_strided_slice %253 {offsets = [0, 96], sizes = [8, 32], strides = [1, 1]} : vector<8x256xf32> to vector<8x32xf32>
    %268 = math.tanh %260 : vector<8x32xf32>
    %269 = arith.mulf %267, %268 : vector<8x32xf32>
    %270 = vector.extract_strided_slice %253 {offsets = [0, 224], sizes = [8, 32], strides = [1, 1]} : vector<8x256xf32> to vector<8x32xf32>
    %271 = math.tanh %266 : vector<8x32xf32>
    %272 = arith.mulf %270, %271 : vector<8x32xf32>
    %273 = arith.index_cast %c5_i32 : i32 to index
    %c0_78 = arith.constant 0 : index
    %c0_79 = arith.constant 0 : index
    %274 = vector.load %arg5[%273, %c0_78, %c0_79] : memref<8x8x64xf32, #tpu.memory_space<vmem>>, vector<1x8x32xf32>
    %275 = vector.shape_cast %274 : vector<1x8x32xf32> to vector<8x32xf32>
    %276 = vector.shape_cast %269 : vector<8x32xf32> to vector<1x8x32xf32>
    tpu.vector_store %arg5[%273, %c0_78, %c0_79], %276 {strides = array<i32>} : memref<8x8x64xf32, #tpu.memory_space<vmem>>, vector<1x8x32xf32>,
    %277 = arith.index_cast %238 : i32 to index
    %c0_80 = arith.constant 0 : index
    %c32_81 = arith.constant 32 : index
    %278 = vector.load %arg5[%277, %c0_80, %c32_81] : memref<8x8x64xf32, #tpu.memory_space<vmem>>, vector<1x8x32xf32>
    %279 = vector.shape_cast %278 : vector<1x8x32xf32> to vector<8x32xf32>
    %280 = vector.shape_cast %272 : vector<8x32xf32> to vector<1x8x32xf32>
    tpu.vector_store %arg5[%277, %c0_80, %c32_81], %280 {strides = array<i32>} : memref<8x8x64xf32, #tpu.memory_space<vmem>>, vector<1x8x32xf32>,
    %281 = tpu.concatenate %269, %272 in 1 : vector<8x32xf32>, vector<8x32xf32> -> vector<8x64xf32>
    %c6_i32 = arith.constant 6 : i32
    %c7_i32_82 = arith.constant 7 : i32
    %282 = arith.subi %c7_i32_82, %c6_i32 : i32
    %283 = arith.index_cast %c6_i32 : i32 to index
    %c0_83 = arith.constant 0 : index
    %c0_84 = arith.constant 0 : index
    %284 = vector.load %arg9[%283, %c0_83, %c0_84] : memref<8x8x256xf32, #tpu.memory_space<vmem>>, vector<1x8x128xf32>
    %285 = vector.shape_cast %284 : vector<1x8x128xf32> to vector<8x128xf32>
    %286 = arith.index_cast %282 : i32 to index
    %c0_85 = arith.constant 0 : index
    %c128_86 = arith.constant 128 : index
    %287 = vector.load %arg9[%286, %c0_85, %c128_86] : memref<8x8x256xf32, #tpu.memory_space<vmem>>, vector<1x8x128xf32>
    %288 = vector.shape_cast %287 : vector<1x8x128xf32> to vector<8x128xf32>
    %289 = tpu.concatenate %285, %288 in 1 : vector<8x128xf32>, vector<8x128xf32> -> vector<8x256xf32>
    %290 = arith.truncf %281 : vector<8x64xf32> to vector<8x64xbf16>
    %cst_87 = arith.constant dense<0.000000e+00> : vector<8x256xf32>
    %291 = tpu.matmul %290, %14, %cst_87 {dimension_numbers = #tpu.dot_dimension_numbers<[1], [0], [0], [1], [0, 0, 1, 1], [], []>} : vector<8x64xbf16>, vector<64x256xbf16>, vector<8x256xf32> -> vector<8x256xf32>
    %292 = arith.addf %289, %291 : vector<8x256xf32>
    %293 = arith.negf %292 : vector<8x256xf32>
    %294 = math.exp %293 : vector<8x256xf32>
    %cst_88 = arith.constant 1.000000e+00 : f32
    %295 = vector.broadcast %cst_88 : f32 to vector<8x256xf32>
    %296 = arith.addf %295, %294 : vector<8x256xf32>
    %297 = arith.divf %295, %296 : vector<8x256xf32>
    %298 = math.tanh %292 : vector<8x256xf32>
    %299 = vector.extract_strided_slice %297 {offsets = [0, 32], sizes = [8, 32], strides = [1, 1]} : vector<8x256xf32> to vector<8x32xf32>
    %300 = arith.mulf %299, %260 : vector<8x32xf32>
    %301 = vector.extract_strided_slice %297 {offsets = [0, 0], sizes = [8, 32], strides = [1, 1]} : vector<8x256xf32> to vector<8x32xf32>
    %302 = vector.extract_strided_slice %298 {offsets = [0, 64], sizes = [8, 32], strides = [1, 1]} : vector<8x256xf32> to vector<8x32xf32>
    %303 = arith.mulf %301, %302 : vector<8x32xf32>
    %304 = arith.addf %300, %303 : vector<8x32xf32>
    %305 = vector.extract_strided_slice %297 {offsets = [0, 160], sizes = [8, 32], strides = [1, 1]} : vector<8x256xf32> to vector<8x32xf32>
    %306 = arith.mulf %305, %266 : vector<8x32xf32>
    %307 = vector.extract_strided_slice %297 {offsets = [0, 128], sizes = [8, 32], strides = [1, 1]} : vector<8x256xf32> to vector<8x32xf32>
    %308 = vector.extract_strided_slice %298 {offsets = [0, 192], sizes = [8, 32], strides = [1, 1]} : vector<8x256xf32> to vector<8x32xf32>
    %309 = arith.mulf %307, %308 : vector<8x32xf32>
    %310 = arith.addf %306, %309 : vector<8x32xf32>
    %311 = vector.extract_strided_slice %297 {offsets = [0, 96], sizes = [8, 32], strides = [1, 1]} : vector<8x256xf32> to vector<8x32xf32>
    %312 = math.tanh %304 : vector<8x32xf32>
    %313 = arith.mulf %311, %312 : vector<8x32xf32>
    %314 = vector.extract_strided_slice %297 {offsets = [0, 224], sizes = [8, 32], strides = [1, 1]} : vector<8x256xf32> to vector<8x32xf32>
    %315 = math.tanh %310 : vector<8x32xf32>
    %316 = arith.mulf %314, %315 : vector<8x32xf32>
    %317 = arith.index_cast %c6_i32 : i32 to index
    %c0_89 = arith.constant 0 : index
    %c0_90 = arith.constant 0 : index
    %318 = vector.load %arg5[%317, %c0_89, %c0_90] : memref<8x8x64xf32, #tpu.memory_space<vmem>>, vector<1x8x32xf32>
    %319 = vector.shape_cast %318 : vector<1x8x32xf32> to vector<8x32xf32>
    %320 = vector.shape_cast %313 : vector<8x32xf32> to vector<1x8x32xf32>
    tpu.vector_store %arg5[%317, %c0_89, %c0_90], %320 {strides = array<i32>} : memref<8x8x64xf32, #tpu.memory_space<vmem>>, vector<1x8x32xf32>,
    %321 = arith.index_cast %282 : i32 to index
    %c0_91 = arith.constant 0 : index
    %c32_92 = arith.constant 32 : index
    %322 = vector.load %arg5[%321, %c0_91, %c32_92] : memref<8x8x64xf32, #tpu.memory_space<vmem>>, vector<1x8x32xf32>
    %323 = vector.shape_cast %322 : vector<1x8x32xf32> to vector<8x32xf32>
    %324 = vector.shape_cast %316 : vector<8x32xf32> to vector<1x8x32xf32>
    tpu.vector_store %arg5[%321, %c0_91, %c32_92], %324 {strides = array<i32>} : memref<8x8x64xf32, #tpu.memory_space<vmem>>, vector<1x8x32xf32>,
    %325 = tpu.concatenate %313, %316 in 1 : vector<8x32xf32>, vector<8x32xf32> -> vector<8x64xf32>
    %c7_i32_93 = arith.constant 7 : i32
    %c7_i32_94 = arith.constant 7 : i32
    %326 = arith.subi %c7_i32_94, %c7_i32_93 : i32
    %327 = arith.index_cast %c7_i32_93 : i32 to index
    %c0_95 = arith.constant 0 : index
    %c0_96 = arith.constant 0 : index
    %328 = vector.load %arg9[%327, %c0_95, %c0_96] : memref<8x8x256xf32, #tpu.memory_space<vmem>>, vector<1x8x128xf32>
    %329 = vector.shape_cast %328 : vector<1x8x128xf32> to vector<8x128xf32>
    %330 = arith.index_cast %326 : i32 to index
    %c0_97 = arith.constant 0 : index
    %c128_98 = arith.constant 128 : index
    %331 = vector.load %arg9[%330, %c0_97, %c128_98] : memref<8x8x256xf32, #tpu.memory_space<vmem>>, vector<1x8x128xf32>
    %332 = vector.shape_cast %331 : vector<1x8x128xf32> to vector<8x128xf32>
    %333 = tpu.concatenate %329, %332 in 1 : vector<8x128xf32>, vector<8x128xf32> -> vector<8x256xf32>
    %334 = arith.truncf %325 : vector<8x64xf32> to vector<8x64xbf16>
    %cst_99 = arith.constant dense<0.000000e+00> : vector<8x256xf32>
    %335 = tpu.matmul %334, %14, %cst_99 {dimension_numbers = #tpu.dot_dimension_numbers<[1], [0], [0], [1], [0, 0, 1, 1], [], []>} : vector<8x64xbf16>, vector<64x256xbf16>, vector<8x256xf32> -> vector<8x256xf32>
    %336 = arith.addf %333, %335 : vector<8x256xf32>
    %337 = arith.negf %336 : vector<8x256xf32>
    %338 = math.exp %337 : vector<8x256xf32>
    %cst_100 = arith.constant 1.000000e+00 : f32
    %339 = vector.broadcast %cst_100 : f32 to vector<8x256xf32>
    %340 = arith.addf %339, %338 : vector<8x256xf32>
    %341 = arith.divf %339, %340 : vector<8x256xf32>
    %342 = math.tanh %336 : vector<8x256xf32>
    %343 = vector.extract_strided_slice %341 {offsets = [0, 32], sizes = [8, 32], strides = [1, 1]} : vector<8x256xf32> to vector<8x32xf32>
    %344 = arith.mulf %343, %304 : vector<8x32xf32>
    %345 = vector.extract_strided_slice %341 {offsets = [0, 0], sizes = [8, 32], strides = [1, 1]} : vector<8x256xf32> to vector<8x32xf32>
    %346 = vector.extract_strided_slice %342 {offsets = [0, 64], sizes = [8, 32], strides = [1, 1]} : vector<8x256xf32> to vector<8x32xf32>
    %347 = arith.mulf %345, %346 : vector<8x32xf32>
    %348 = arith.addf %344, %347 : vector<8x32xf32>
    %349 = vector.extract_strided_slice %341 {offsets = [0, 160], sizes = [8, 32], strides = [1, 1]} : vector<8x256xf32> to vector<8x32xf32>
    %350 = arith.mulf %349, %310 : vector<8x32xf32>
    %351 = vector.extract_strided_slice %341 {offsets = [0, 128], sizes = [8, 32], strides = [1, 1]} : vector<8x256xf32> to vector<8x32xf32>
    %352 = vector.extract_strided_slice %342 {offsets = [0, 192], sizes = [8, 32], strides = [1, 1]} : vector<8x256xf32> to vector<8x32xf32>
    %353 = arith.mulf %351, %352 : vector<8x32xf32>
    %354 = arith.addf %350, %353 : vector<8x32xf32>
    %355 = vector.extract_strided_slice %341 {offsets = [0, 96], sizes = [8, 32], strides = [1, 1]} : vector<8x256xf32> to vector<8x32xf32>
    %356 = math.tanh %348 : vector<8x32xf32>
    %357 = arith.mulf %355, %356 : vector<8x32xf32>
    %358 = vector.extract_strided_slice %341 {offsets = [0, 224], sizes = [8, 32], strides = [1, 1]} : vector<8x256xf32> to vector<8x32xf32>
    %359 = math.tanh %354 : vector<8x32xf32>
    %360 = arith.mulf %358, %359 : vector<8x32xf32>
    %361 = arith.index_cast %c7_i32_93 : i32 to index
    %c0_101 = arith.constant 0 : index
    %c0_102 = arith.constant 0 : index
    %362 = vector.load %arg5[%361, %c0_101, %c0_102] : memref<8x8x64xf32, #tpu.memory_space<vmem>>, vector<1x8x32xf32>
    %363 = vector.shape_cast %362 : vector<1x8x32xf32> to vector<8x32xf32>
    %364 = vector.shape_cast %357 : vector<8x32xf32> to vector<1x8x32xf32>
    tpu.vector_store %arg5[%361, %c0_101, %c0_102], %364 {strides = array<i32>} : memref<8x8x64xf32, #tpu.memory_space<vmem>>, vector<1x8x32xf32>,
    %365 = arith.index_cast %326 : i32 to index
    %c0_103 = arith.constant 0 : index
    %c32_104 = arith.constant 32 : index
    %366 = vector.load %arg5[%365, %c0_103, %c32_104] : memref<8x8x64xf32, #tpu.memory_space<vmem>>, vector<1x8x32xf32>
    %367 = vector.shape_cast %366 : vector<1x8x32xf32> to vector<8x32xf32>
    %368 = vector.shape_cast %360 : vector<8x32xf32> to vector<1x8x32xf32>
    tpu.vector_store %arg5[%365, %c0_103, %c32_104], %368 {strides = array<i32>} : memref<8x8x64xf32, #tpu.memory_space<vmem>>, vector<1x8x32xf32>,
    %369 = tpu.concatenate %357, %360 in 1 : vector<8x32xf32>, vector<8x32xf32> -> vector<8x64xf32>
    %c8_i32 = arith.constant 8 : i32
    %c0_105 = arith.constant 0 : index
    %c0_106 = arith.constant 0 : index
    %370 = vector.load %arg6[%c0_105, %c0_106] : memref<8x64xf32, #tpu.memory_space<vmem>>, vector<8x64xf32>
    tpu.vector_store %arg6[%c0_105, %c0_106], %369 {strides = array<i32>} : memref<8x64xf32, #tpu.memory_space<vmem>>, vector<8x64xf32>,
    %c0_107 = arith.constant 0 : index
    %c0_108 = arith.constant 0 : index
    %371 = vector.load %arg7[%c0_107, %c0_108] : memref<8x32xf32, #tpu.memory_space<vmem>>, vector<8x32xf32>
    tpu.vector_store %arg7[%c0_107, %c0_108], %348 {strides = array<i32>} : memref<8x32xf32, #tpu.memory_space<vmem>>, vector<8x32xf32>,
    %c0_109 = arith.constant 0 : index
    %c0_110 = arith.constant 0 : index
    %372 = vector.load %arg8[%c0_109, %c0_110] : memref<8x32xf32, #tpu.memory_space<vmem>>, vector<8x32xf32>
    tpu.vector_store %arg8[%c0_109, %c0_110], %354 {strides = array<i32>} : memref<8x32xf32, #tpu.memory_space<vmem>>, vector<8x32xf32>,
    return
  }
  func.func @transform_0(%arg0: i32) -> (i32, i32, i32) {
    %c0_i32 = arith.constant 0 : i32
    %c0_i32_0 = arith.constant 0 : i32
    %c0_i32_1 = arith.constant 0 : i32
    %c0_i32_2 = arith.constant 0 : i32
    return %c0_i32, %c0_i32_0, %c0_i32_1 : i32, i32, i32
  }
  func.func @transform_1(%arg0: i32) -> (i32, i32) {
    %c0_i32 = arith.constant 0 : i32
    %c0_i32_0 = arith.constant 0 : i32
    %c0_i32_1 = arith.constant 0 : i32
    return %c0_i32, %c0_i32_0 : i32, i32
  }
  func.func @transform_2(%arg0: i32) -> (i32, i32) {
    %c0_i32 = arith.constant 0 : i32
    %c0_i32_0 = arith.constant 0 : i32
    %c0_i32_1 = arith.constant 0 : i32
    return %c0_i32, %c0_i32_0 : i32, i32
  }
  func.func @transform_3(%arg0: i32) -> (i32, i32) {
    %c0_i32 = arith.constant 0 : i32
    %c0_i32_0 = arith.constant 0 : i32
    %c0_i32_1 = arith.constant 0 : i32
    return %c0_i32, %c0_i32_0 : i32, i32
  }
  func.func @transform_4(%arg0: i32) -> (i32, i32, i32) {
    %c0_i32 = arith.constant 0 : i32
    %c0_i32_0 = arith.constant 0 : i32
    %c0_i32_1 = arith.constant 0 : i32
    %c0_i32_2 = arith.constant 0 : i32
    return %c0_i32, %c0_i32_0, %c0_i32_1 : i32, i32, i32
  }
}

module attributes {stable_mosaic.version = 11 : i64} {
  func.func @_bilstm_layer_kernel(%arg0: i32, %arg1: memref<8x8x1xf32, #tpu.memory_space<vmem>>, %arg2: memref<1x256xbf16, #tpu.memory_space<vmem>>, %arg3: memref<64x256xbf16, #tpu.memory_space<vmem>>, %arg4: memref<1x256xf32, #tpu.memory_space<vmem>>, %arg5: memref<8x8x64xf32, #tpu.memory_space<vmem>>, %arg6: memref<8x64xf32, #tpu.memory_space<vmem>>, %arg7: memref<8x32xf32, #tpu.memory_space<vmem>>, %arg8: memref<8x32xf32, #tpu.memory_space<vmem>>, %arg9: memref<8x8x256xf32, #tpu.memory_space<vmem>>) attributes {dimension_semantics = [#tpu.dimension_semantics<arbitrary>], iteration_bounds = array<i64: 1>, scalar_prefetch = 0 : i64, scratch_operands = 4 : i64, tpu.core_type = #tpu.core_type<tc>, window_params = [{pipeline_mode = #tpu.pipeline_mode<synchronous>, transform_indices = @transform_0, window_bounds = array<i64: 8, 8, 1>}, {pipeline_mode = #tpu.pipeline_mode<synchronous>, transform_indices = @transform_1, window_bounds = array<i64: 1, 256>}, {pipeline_mode = #tpu.pipeline_mode<synchronous>, transform_indices = @transform_2, window_bounds = array<i64: 64, 256>}, {pipeline_mode = #tpu.pipeline_mode<synchronous>, transform_indices = @transform_3, window_bounds = array<i64: 1, 256>}, {pipeline_mode = #tpu.pipeline_mode<synchronous>, transform_indices = @transform_4, window_bounds = array<i64: 8, 8, 64>}]} {
    %c0_i32 = arith.constant 0 : i32
    %0 = arith.cmpi eq, %arg0, %c0_i32 : i32
    %1 = arith.extui %0 : i1 to i32
    %c0_i32_0 = arith.constant 0 : i32
    %2 = arith.cmpi ne, %1, %c0_i32_0 : i32
    scf.if %2 {
      %cst_110 = arith.constant 0.000000e+00 : f32
      %374 = vector.broadcast %cst_110 : f32 to vector<8x64xf32>
      %c0_111 = arith.constant 0 : index
      %c0_112 = arith.constant 0 : index
      %375 = vector.load %arg6[%c0_111, %c0_112] : memref<8x64xf32, #tpu.memory_space<vmem>>, vector<8x64xf32>
      tpu.vector_store %arg6[%c0_111, %c0_112], %374 {strides = array<i32>} : memref<8x64xf32, #tpu.memory_space<vmem>>, vector<8x64xf32>,
      %cst_113 = arith.constant 0.000000e+00 : f32
      %376 = vector.broadcast %cst_113 : f32 to vector<8x32xf32>
      %c0_114 = arith.constant 0 : index
      %c0_115 = arith.constant 0 : index
      %377 = vector.load %arg7[%c0_114, %c0_115] : memref<8x32xf32, #tpu.memory_space<vmem>>, vector<8x32xf32>
      tpu.vector_store %arg7[%c0_114, %c0_115], %376 {strides = array<i32>} : memref<8x32xf32, #tpu.memory_space<vmem>>, vector<8x32xf32>,
      %cst_116 = arith.constant 0.000000e+00 : f32
      %378 = vector.broadcast %cst_116 : f32 to vector<8x32xf32>
      %c0_117 = arith.constant 0 : index
      %c0_118 = arith.constant 0 : index
      %379 = vector.load %arg8[%c0_117, %c0_118] : memref<8x32xf32, #tpu.memory_space<vmem>>, vector<8x32xf32>
      tpu.vector_store %arg8[%c0_117, %c0_118], %378 {strides = array<i32>} : memref<8x32xf32, #tpu.memory_space<vmem>>, vector<8x32xf32>,
    } else {
    }
    %c0 = arith.constant 0 : index
    %c0_1 = arith.constant 0 : index
    %3 = vector.load %arg2[%c0, %c0_1] : memref<1x256xbf16, #tpu.memory_space<vmem>>, vector<1x256xbf16>
    %c0_2 = arith.constant 0 : index
    %c0_3 = arith.constant 0 : index
    %4 = vector.load %arg4[%c0_2, %c0_3] : memref<1x256xf32, #tpu.memory_space<vmem>>, vector<1x256xf32>
    %c0_4 = arith.constant 0 : index
    %c0_5 = arith.constant 0 : index
    %c0_6 = arith.constant 0 : index
    %5 = vector.load %arg1[%c0_4, %c0_5, %c0_6] : memref<8x8x1xf32, #tpu.memory_space<vmem>>, vector<8x8x1xf32>
    %6 = vector.shape_cast %4 : vector<1x256xf32> to vector<1x1x256xf32>
    %7 = arith.extf %3 : vector<1x256xbf16> to vector<1x256xf32>
    %8 = vector.shape_cast %7 : vector<1x256xf32> to vector<1x1x256xf32>
    %9 = vector.broadcast %5 : vector<8x8x1xf32> to vector<8x8x256xf32>
    %10 = vector.broadcast %8 : vector<1x1x256xf32> to vector<8x8x256xf32>
    %11 = arith.mulf %9, %10 : vector<8x8x256xf32>
    %12 = vector.broadcast %6 : vector<1x1x256xf32> to vector<8x8x256xf32>
    %13 = arith.addf %11, %12 : vector<8x8x256xf32>
    %c0_7 = arith.constant 0 : index
    %c0_8 = arith.constant 0 : index
    %c0_9 = arith.constant 0 : index
    %14 = vector.load %arg9[%c0_7, %c0_8, %c0_9] : memref<8x8x256xf32, #tpu.memory_space<vmem>>, vector<8x8x256xf32>
    tpu.vector_store %arg9[%c0_7, %c0_8, %c0_9], %13 {strides = array<i32>} : memref<8x8x256xf32, #tpu.memory_space<vmem>>, vector<8x8x256xf32>,
    %c0_10 = arith.constant 0 : index
    %c0_11 = arith.constant 0 : index
    %15 = vector.load %arg3[%c0_10, %c0_11] : memref<64x256xbf16, #tpu.memory_space<vmem>>, vector<64x256xbf16>
    %c0_12 = arith.constant 0 : index
    %c0_13 = arith.constant 0 : index
    %16 = vector.load %arg6[%c0_12, %c0_13] : memref<8x64xf32, #tpu.memory_space<vmem>>, vector<8x64xf32>
    %c0_14 = arith.constant 0 : index
    %c0_15 = arith.constant 0 : index
    %17 = vector.load %arg7[%c0_14, %c0_15] : memref<8x32xf32, #tpu.memory_space<vmem>>, vector<8x32xf32>
    %c0_16 = arith.constant 0 : index
    %c0_17 = arith.constant 0 : index
    %18 = vector.load %arg8[%c0_16, %c0_17] : memref<8x32xf32, #tpu.memory_space<vmem>>, vector<8x32xf32>
    %c0_i32_18 = arith.constant 0 : i32
    %c7_i32 = arith.constant 7 : i32
    %19 = arith.subi %c7_i32, %c0_i32_18 : i32
    %20 = arith.index_cast %c0_i32_18 : i32 to index
    %c0_19 = arith.constant 0 : index
    %c0_20 = arith.constant 0 : index
    %21 = vector.load %arg9[%20, %c0_19, %c0_20] : memref<8x8x256xf32, #tpu.memory_space<vmem>>, vector<1x8x128xf32>
    %22 = vector.shape_cast %21 : vector<1x8x128xf32> to vector<8x128xf32>
    %23 = arith.index_cast %19 : i32 to index
    %c0_21 = arith.constant 0 : index
    %c128 = arith.constant 128 : index
    %24 = vector.load %arg9[%23, %c0_21, %c128] : memref<8x8x256xf32, #tpu.memory_space<vmem>>, vector<1x8x128xf32>
    %25 = vector.shape_cast %24 : vector<1x8x128xf32> to vector<8x128xf32>
    %26 = tpu.concatenate %22, %25 in 1 : vector<8x128xf32>, vector<8x128xf32> -> vector<8x256xf32>
    %27 = arith.truncf %16 : vector<8x64xf32> to vector<8x64xbf16>
    %cst = arith.constant dense<0.000000e+00> : vector<8x256xf32>
    %28 = tpu.matmul %27, %15, %cst {dimension_numbers = #tpu.dot_dimension_numbers<[1], [0], [0], [1], [0, 0, 1, 1], [], []>} : vector<8x64xbf16>, vector<64x256xbf16>, vector<8x256xf32> -> vector<8x256xf32>
    %29 = arith.addf %26, %28 : vector<8x256xf32>
    %30 = arith.negf %29 : vector<8x256xf32>
    %31 = math.exp %30 : vector<8x256xf32>
    %cst_22 = arith.constant 1.000000e+00 : f32
    %32 = vector.broadcast %cst_22 : f32 to vector<8x256xf32>
    %33 = arith.addf %32, %31 : vector<8x256xf32>
    %34 = arith.divf %32, %33 : vector<8x256xf32>
    %35 = math.tanh %29 : vector<8x256xf32>
    %36 = vector.extract_strided_slice %34 {offsets = [0, 32], sizes = [8, 32], strides = [1, 1]} : vector<8x256xf32> to vector<8x32xf32>
    %37 = arith.mulf %36, %17 : vector<8x32xf32>
    %38 = vector.extract_strided_slice %34 {offsets = [0, 0], sizes = [8, 32], strides = [1, 1]} : vector<8x256xf32> to vector<8x32xf32>
    %39 = vector.extract_strided_slice %35 {offsets = [0, 64], sizes = [8, 32], strides = [1, 1]} : vector<8x256xf32> to vector<8x32xf32>
    %40 = arith.mulf %38, %39 : vector<8x32xf32>
    %41 = arith.addf %37, %40 : vector<8x32xf32>
    %42 = vector.extract_strided_slice %34 {offsets = [0, 160], sizes = [8, 32], strides = [1, 1]} : vector<8x256xf32> to vector<8x32xf32>
    %43 = arith.mulf %42, %18 : vector<8x32xf32>
    %44 = vector.extract_strided_slice %34 {offsets = [0, 128], sizes = [8, 32], strides = [1, 1]} : vector<8x256xf32> to vector<8x32xf32>
    %45 = vector.extract_strided_slice %35 {offsets = [0, 192], sizes = [8, 32], strides = [1, 1]} : vector<8x256xf32> to vector<8x32xf32>
    %46 = arith.mulf %44, %45 : vector<8x32xf32>
    %47 = arith.addf %43, %46 : vector<8x32xf32>
    %48 = vector.extract_strided_slice %34 {offsets = [0, 96], sizes = [8, 32], strides = [1, 1]} : vector<8x256xf32> to vector<8x32xf32>
    %49 = math.tanh %41 : vector<8x32xf32>
    %50 = arith.mulf %48, %49 : vector<8x32xf32>
    %51 = vector.extract_strided_slice %34 {offsets = [0, 224], sizes = [8, 32], strides = [1, 1]} : vector<8x256xf32> to vector<8x32xf32>
    %52 = math.tanh %47 : vector<8x32xf32>
    %53 = arith.mulf %51, %52 : vector<8x32xf32>
    %54 = arith.index_cast %c0_i32_18 : i32 to index
    %c0_23 = arith.constant 0 : index
    %c0_24 = arith.constant 0 : index
    %55 = vector.load %arg5[%54, %c0_23, %c0_24] : memref<8x8x64xf32, #tpu.memory_space<vmem>>, vector<1x8x32xf32>
    %56 = vector.shape_cast %55 : vector<1x8x32xf32> to vector<8x32xf32>
    %57 = vector.shape_cast %50 : vector<8x32xf32> to vector<1x8x32xf32>
    tpu.vector_store %arg5[%54, %c0_23, %c0_24], %57 {strides = array<i32>} : memref<8x8x64xf32, #tpu.memory_space<vmem>>, vector<1x8x32xf32>,
    %58 = arith.index_cast %19 : i32 to index
    %c0_25 = arith.constant 0 : index
    %c32 = arith.constant 32 : index
    %59 = vector.load %arg5[%58, %c0_25, %c32] : memref<8x8x64xf32, #tpu.memory_space<vmem>>, vector<1x8x32xf32>
    %60 = vector.shape_cast %59 : vector<1x8x32xf32> to vector<8x32xf32>
    %61 = vector.shape_cast %53 : vector<8x32xf32> to vector<1x8x32xf32>
    tpu.vector_store %arg5[%58, %c0_25, %c32], %61 {strides = array<i32>} : memref<8x8x64xf32, #tpu.memory_space<vmem>>, vector<1x8x32xf32>,
    %62 = tpu.concatenate %50, %53 in 1 : vector<8x32xf32>, vector<8x32xf32> -> vector<8x64xf32>
    %c1_i32 = arith.constant 1 : i32
    %c7_i32_26 = arith.constant 7 : i32
    %63 = arith.subi %c7_i32_26, %c1_i32 : i32
    %64 = arith.index_cast %c1_i32 : i32 to index
    %c0_27 = arith.constant 0 : index
    %c0_28 = arith.constant 0 : index
    %65 = vector.load %arg9[%64, %c0_27, %c0_28] : memref<8x8x256xf32, #tpu.memory_space<vmem>>, vector<1x8x128xf32>
    %66 = vector.shape_cast %65 : vector<1x8x128xf32> to vector<8x128xf32>
    %67 = arith.index_cast %63 : i32 to index
    %c0_29 = arith.constant 0 : index
    %c128_30 = arith.constant 128 : index
    %68 = vector.load %arg9[%67, %c0_29, %c128_30] : memref<8x8x256xf32, #tpu.memory_space<vmem>>, vector<1x8x128xf32>
    %69 = vector.shape_cast %68 : vector<1x8x128xf32> to vector<8x128xf32>
    %70 = tpu.concatenate %66, %69 in 1 : vector<8x128xf32>, vector<8x128xf32> -> vector<8x256xf32>
    %71 = arith.truncf %62 : vector<8x64xf32> to vector<8x64xbf16>
    %cst_31 = arith.constant dense<0.000000e+00> : vector<8x256xf32>
    %72 = tpu.matmul %71, %15, %cst_31 {dimension_numbers = #tpu.dot_dimension_numbers<[1], [0], [0], [1], [0, 0, 1, 1], [], []>} : vector<8x64xbf16>, vector<64x256xbf16>, vector<8x256xf32> -> vector<8x256xf32>
    %73 = arith.addf %70, %72 : vector<8x256xf32>
    %74 = arith.negf %73 : vector<8x256xf32>
    %75 = math.exp %74 : vector<8x256xf32>
    %cst_32 = arith.constant 1.000000e+00 : f32
    %76 = vector.broadcast %cst_32 : f32 to vector<8x256xf32>
    %77 = arith.addf %76, %75 : vector<8x256xf32>
    %78 = arith.divf %76, %77 : vector<8x256xf32>
    %79 = math.tanh %73 : vector<8x256xf32>
    %80 = vector.extract_strided_slice %78 {offsets = [0, 32], sizes = [8, 32], strides = [1, 1]} : vector<8x256xf32> to vector<8x32xf32>
    %81 = arith.mulf %80, %41 : vector<8x32xf32>
    %82 = vector.extract_strided_slice %78 {offsets = [0, 0], sizes = [8, 32], strides = [1, 1]} : vector<8x256xf32> to vector<8x32xf32>
    %83 = vector.extract_strided_slice %79 {offsets = [0, 64], sizes = [8, 32], strides = [1, 1]} : vector<8x256xf32> to vector<8x32xf32>
    %84 = arith.mulf %82, %83 : vector<8x32xf32>
    %85 = arith.addf %81, %84 : vector<8x32xf32>
    %86 = vector.extract_strided_slice %78 {offsets = [0, 160], sizes = [8, 32], strides = [1, 1]} : vector<8x256xf32> to vector<8x32xf32>
    %87 = arith.mulf %86, %47 : vector<8x32xf32>
    %88 = vector.extract_strided_slice %78 {offsets = [0, 128], sizes = [8, 32], strides = [1, 1]} : vector<8x256xf32> to vector<8x32xf32>
    %89 = vector.extract_strided_slice %79 {offsets = [0, 192], sizes = [8, 32], strides = [1, 1]} : vector<8x256xf32> to vector<8x32xf32>
    %90 = arith.mulf %88, %89 : vector<8x32xf32>
    %91 = arith.addf %87, %90 : vector<8x32xf32>
    %92 = vector.extract_strided_slice %78 {offsets = [0, 96], sizes = [8, 32], strides = [1, 1]} : vector<8x256xf32> to vector<8x32xf32>
    %93 = math.tanh %85 : vector<8x32xf32>
    %94 = arith.mulf %92, %93 : vector<8x32xf32>
    %95 = vector.extract_strided_slice %78 {offsets = [0, 224], sizes = [8, 32], strides = [1, 1]} : vector<8x256xf32> to vector<8x32xf32>
    %96 = math.tanh %91 : vector<8x32xf32>
    %97 = arith.mulf %95, %96 : vector<8x32xf32>
    %98 = arith.index_cast %c1_i32 : i32 to index
    %c0_33 = arith.constant 0 : index
    %c0_34 = arith.constant 0 : index
    %99 = vector.load %arg5[%98, %c0_33, %c0_34] : memref<8x8x64xf32, #tpu.memory_space<vmem>>, vector<1x8x32xf32>
    %100 = vector.shape_cast %99 : vector<1x8x32xf32> to vector<8x32xf32>
    %101 = vector.shape_cast %94 : vector<8x32xf32> to vector<1x8x32xf32>
    tpu.vector_store %arg5[%98, %c0_33, %c0_34], %101 {strides = array<i32>} : memref<8x8x64xf32, #tpu.memory_space<vmem>>, vector<1x8x32xf32>,
    %102 = arith.index_cast %63 : i32 to index
    %c0_35 = arith.constant 0 : index
    %c32_36 = arith.constant 32 : index
    %103 = vector.load %arg5[%102, %c0_35, %c32_36] : memref<8x8x64xf32, #tpu.memory_space<vmem>>, vector<1x8x32xf32>
    %104 = vector.shape_cast %103 : vector<1x8x32xf32> to vector<8x32xf32>
    %105 = vector.shape_cast %97 : vector<8x32xf32> to vector<1x8x32xf32>
    tpu.vector_store %arg5[%102, %c0_35, %c32_36], %105 {strides = array<i32>} : memref<8x8x64xf32, #tpu.memory_space<vmem>>, vector<1x8x32xf32>,
    %106 = tpu.concatenate %94, %97 in 1 : vector<8x32xf32>, vector<8x32xf32> -> vector<8x64xf32>
    %c2_i32 = arith.constant 2 : i32
    %c7_i32_37 = arith.constant 7 : i32
    %107 = arith.subi %c7_i32_37, %c2_i32 : i32
    %108 = arith.index_cast %c2_i32 : i32 to index
    %c0_38 = arith.constant 0 : index
    %c0_39 = arith.constant 0 : index
    %109 = vector.load %arg9[%108, %c0_38, %c0_39] : memref<8x8x256xf32, #tpu.memory_space<vmem>>, vector<1x8x128xf32>
    %110 = vector.shape_cast %109 : vector<1x8x128xf32> to vector<8x128xf32>
    %111 = arith.index_cast %107 : i32 to index
    %c0_40 = arith.constant 0 : index
    %c128_41 = arith.constant 128 : index
    %112 = vector.load %arg9[%111, %c0_40, %c128_41] : memref<8x8x256xf32, #tpu.memory_space<vmem>>, vector<1x8x128xf32>
    %113 = vector.shape_cast %112 : vector<1x8x128xf32> to vector<8x128xf32>
    %114 = tpu.concatenate %110, %113 in 1 : vector<8x128xf32>, vector<8x128xf32> -> vector<8x256xf32>
    %115 = arith.truncf %106 : vector<8x64xf32> to vector<8x64xbf16>
    %cst_42 = arith.constant dense<0.000000e+00> : vector<8x256xf32>
    %116 = tpu.matmul %115, %15, %cst_42 {dimension_numbers = #tpu.dot_dimension_numbers<[1], [0], [0], [1], [0, 0, 1, 1], [], []>} : vector<8x64xbf16>, vector<64x256xbf16>, vector<8x256xf32> -> vector<8x256xf32>
    %117 = arith.addf %114, %116 : vector<8x256xf32>
    %118 = arith.negf %117 : vector<8x256xf32>
    %119 = math.exp %118 : vector<8x256xf32>
    %cst_43 = arith.constant 1.000000e+00 : f32
    %120 = vector.broadcast %cst_43 : f32 to vector<8x256xf32>
    %121 = arith.addf %120, %119 : vector<8x256xf32>
    %122 = arith.divf %120, %121 : vector<8x256xf32>
    %123 = math.tanh %117 : vector<8x256xf32>
    %124 = vector.extract_strided_slice %122 {offsets = [0, 32], sizes = [8, 32], strides = [1, 1]} : vector<8x256xf32> to vector<8x32xf32>
    %125 = arith.mulf %124, %85 : vector<8x32xf32>
    %126 = vector.extract_strided_slice %122 {offsets = [0, 0], sizes = [8, 32], strides = [1, 1]} : vector<8x256xf32> to vector<8x32xf32>
    %127 = vector.extract_strided_slice %123 {offsets = [0, 64], sizes = [8, 32], strides = [1, 1]} : vector<8x256xf32> to vector<8x32xf32>
    %128 = arith.mulf %126, %127 : vector<8x32xf32>
    %129 = arith.addf %125, %128 : vector<8x32xf32>
    %130 = vector.extract_strided_slice %122 {offsets = [0, 160], sizes = [8, 32], strides = [1, 1]} : vector<8x256xf32> to vector<8x32xf32>
    %131 = arith.mulf %130, %91 : vector<8x32xf32>
    %132 = vector.extract_strided_slice %122 {offsets = [0, 128], sizes = [8, 32], strides = [1, 1]} : vector<8x256xf32> to vector<8x32xf32>
    %133 = vector.extract_strided_slice %123 {offsets = [0, 192], sizes = [8, 32], strides = [1, 1]} : vector<8x256xf32> to vector<8x32xf32>
    %134 = arith.mulf %132, %133 : vector<8x32xf32>
    %135 = arith.addf %131, %134 : vector<8x32xf32>
    %136 = vector.extract_strided_slice %122 {offsets = [0, 96], sizes = [8, 32], strides = [1, 1]} : vector<8x256xf32> to vector<8x32xf32>
    %137 = math.tanh %129 : vector<8x32xf32>
    %138 = arith.mulf %136, %137 : vector<8x32xf32>
    %139 = vector.extract_strided_slice %122 {offsets = [0, 224], sizes = [8, 32], strides = [1, 1]} : vector<8x256xf32> to vector<8x32xf32>
    %140 = math.tanh %135 : vector<8x32xf32>
    %141 = arith.mulf %139, %140 : vector<8x32xf32>
    %142 = arith.index_cast %c2_i32 : i32 to index
    %c0_44 = arith.constant 0 : index
    %c0_45 = arith.constant 0 : index
    %143 = vector.load %arg5[%142, %c0_44, %c0_45] : memref<8x8x64xf32, #tpu.memory_space<vmem>>, vector<1x8x32xf32>
    %144 = vector.shape_cast %143 : vector<1x8x32xf32> to vector<8x32xf32>
    %145 = vector.shape_cast %138 : vector<8x32xf32> to vector<1x8x32xf32>
    tpu.vector_store %arg5[%142, %c0_44, %c0_45], %145 {strides = array<i32>} : memref<8x8x64xf32, #tpu.memory_space<vmem>>, vector<1x8x32xf32>,
    %146 = arith.index_cast %107 : i32 to index
    %c0_46 = arith.constant 0 : index
    %c32_47 = arith.constant 32 : index
    %147 = vector.load %arg5[%146, %c0_46, %c32_47] : memref<8x8x64xf32, #tpu.memory_space<vmem>>, vector<1x8x32xf32>
    %148 = vector.shape_cast %147 : vector<1x8x32xf32> to vector<8x32xf32>
    %149 = vector.shape_cast %141 : vector<8x32xf32> to vector<1x8x32xf32>
    tpu.vector_store %arg5[%146, %c0_46, %c32_47], %149 {strides = array<i32>} : memref<8x8x64xf32, #tpu.memory_space<vmem>>, vector<1x8x32xf32>,
    %150 = tpu.concatenate %138, %141 in 1 : vector<8x32xf32>, vector<8x32xf32> -> vector<8x64xf32>
    %c3_i32 = arith.constant 3 : i32
    %c7_i32_48 = arith.constant 7 : i32
    %151 = arith.subi %c7_i32_48, %c3_i32 : i32
    %152 = arith.index_cast %c3_i32 : i32 to index
    %c0_49 = arith.constant 0 : index
    %c0_50 = arith.constant 0 : index
    %153 = vector.load %arg9[%152, %c0_49, %c0_50] : memref<8x8x256xf32, #tpu.memory_space<vmem>>, vector<1x8x128xf32>
    %154 = vector.shape_cast %153 : vector<1x8x128xf32> to vector<8x128xf32>
    %155 = arith.index_cast %151 : i32 to index
    %c0_51 = arith.constant 0 : index
    %c128_52 = arith.constant 128 : index
    %156 = vector.load %arg9[%155, %c0_51, %c128_52] : memref<8x8x256xf32, #tpu.memory_space<vmem>>, vector<1x8x128xf32>
    %157 = vector.shape_cast %156 : vector<1x8x128xf32> to vector<8x128xf32>
    %158 = tpu.concatenate %154, %157 in 1 : vector<8x128xf32>, vector<8x128xf32> -> vector<8x256xf32>
    %159 = arith.truncf %150 : vector<8x64xf32> to vector<8x64xbf16>
    %cst_53 = arith.constant dense<0.000000e+00> : vector<8x256xf32>
    %160 = tpu.matmul %159, %15, %cst_53 {dimension_numbers = #tpu.dot_dimension_numbers<[1], [0], [0], [1], [0, 0, 1, 1], [], []>} : vector<8x64xbf16>, vector<64x256xbf16>, vector<8x256xf32> -> vector<8x256xf32>
    %161 = arith.addf %158, %160 : vector<8x256xf32>
    %162 = arith.negf %161 : vector<8x256xf32>
    %163 = math.exp %162 : vector<8x256xf32>
    %cst_54 = arith.constant 1.000000e+00 : f32
    %164 = vector.broadcast %cst_54 : f32 to vector<8x256xf32>
    %165 = arith.addf %164, %163 : vector<8x256xf32>
    %166 = arith.divf %164, %165 : vector<8x256xf32>
    %167 = math.tanh %161 : vector<8x256xf32>
    %168 = vector.extract_strided_slice %166 {offsets = [0, 32], sizes = [8, 32], strides = [1, 1]} : vector<8x256xf32> to vector<8x32xf32>
    %169 = arith.mulf %168, %129 : vector<8x32xf32>
    %170 = vector.extract_strided_slice %166 {offsets = [0, 0], sizes = [8, 32], strides = [1, 1]} : vector<8x256xf32> to vector<8x32xf32>
    %171 = vector.extract_strided_slice %167 {offsets = [0, 64], sizes = [8, 32], strides = [1, 1]} : vector<8x256xf32> to vector<8x32xf32>
    %172 = arith.mulf %170, %171 : vector<8x32xf32>
    %173 = arith.addf %169, %172 : vector<8x32xf32>
    %174 = vector.extract_strided_slice %166 {offsets = [0, 160], sizes = [8, 32], strides = [1, 1]} : vector<8x256xf32> to vector<8x32xf32>
    %175 = arith.mulf %174, %135 : vector<8x32xf32>
    %176 = vector.extract_strided_slice %166 {offsets = [0, 128], sizes = [8, 32], strides = [1, 1]} : vector<8x256xf32> to vector<8x32xf32>
    %177 = vector.extract_strided_slice %167 {offsets = [0, 192], sizes = [8, 32], strides = [1, 1]} : vector<8x256xf32> to vector<8x32xf32>
    %178 = arith.mulf %176, %177 : vector<8x32xf32>
    %179 = arith.addf %175, %178 : vector<8x32xf32>
    %180 = vector.extract_strided_slice %166 {offsets = [0, 96], sizes = [8, 32], strides = [1, 1]} : vector<8x256xf32> to vector<8x32xf32>
    %181 = math.tanh %173 : vector<8x32xf32>
    %182 = arith.mulf %180, %181 : vector<8x32xf32>
    %183 = vector.extract_strided_slice %166 {offsets = [0, 224], sizes = [8, 32], strides = [1, 1]} : vector<8x256xf32> to vector<8x32xf32>
    %184 = math.tanh %179 : vector<8x32xf32>
    %185 = arith.mulf %183, %184 : vector<8x32xf32>
    %186 = arith.index_cast %c3_i32 : i32 to index
    %c0_55 = arith.constant 0 : index
    %c0_56 = arith.constant 0 : index
    %187 = vector.load %arg5[%186, %c0_55, %c0_56] : memref<8x8x64xf32, #tpu.memory_space<vmem>>, vector<1x8x32xf32>
    %188 = vector.shape_cast %187 : vector<1x8x32xf32> to vector<8x32xf32>
    %189 = vector.shape_cast %182 : vector<8x32xf32> to vector<1x8x32xf32>
    tpu.vector_store %arg5[%186, %c0_55, %c0_56], %189 {strides = array<i32>} : memref<8x8x64xf32, #tpu.memory_space<vmem>>, vector<1x8x32xf32>,
    %190 = arith.index_cast %151 : i32 to index
    %c0_57 = arith.constant 0 : index
    %c32_58 = arith.constant 32 : index
    %191 = vector.load %arg5[%190, %c0_57, %c32_58] : memref<8x8x64xf32, #tpu.memory_space<vmem>>, vector<1x8x32xf32>
    %192 = vector.shape_cast %191 : vector<1x8x32xf32> to vector<8x32xf32>
    %193 = vector.shape_cast %185 : vector<8x32xf32> to vector<1x8x32xf32>
    tpu.vector_store %arg5[%190, %c0_57, %c32_58], %193 {strides = array<i32>} : memref<8x8x64xf32, #tpu.memory_space<vmem>>, vector<1x8x32xf32>,
    %194 = tpu.concatenate %182, %185 in 1 : vector<8x32xf32>, vector<8x32xf32> -> vector<8x64xf32>
    %c4_i32 = arith.constant 4 : i32
    %c7_i32_59 = arith.constant 7 : i32
    %195 = arith.subi %c7_i32_59, %c4_i32 : i32
    %196 = arith.index_cast %c4_i32 : i32 to index
    %c0_60 = arith.constant 0 : index
    %c0_61 = arith.constant 0 : index
    %197 = vector.load %arg9[%196, %c0_60, %c0_61] : memref<8x8x256xf32, #tpu.memory_space<vmem>>, vector<1x8x128xf32>
    %198 = vector.shape_cast %197 : vector<1x8x128xf32> to vector<8x128xf32>
    %199 = arith.index_cast %195 : i32 to index
    %c0_62 = arith.constant 0 : index
    %c128_63 = arith.constant 128 : index
    %200 = vector.load %arg9[%199, %c0_62, %c128_63] : memref<8x8x256xf32, #tpu.memory_space<vmem>>, vector<1x8x128xf32>
    %201 = vector.shape_cast %200 : vector<1x8x128xf32> to vector<8x128xf32>
    %202 = tpu.concatenate %198, %201 in 1 : vector<8x128xf32>, vector<8x128xf32> -> vector<8x256xf32>
    %203 = arith.truncf %194 : vector<8x64xf32> to vector<8x64xbf16>
    %cst_64 = arith.constant dense<0.000000e+00> : vector<8x256xf32>
    %204 = tpu.matmul %203, %15, %cst_64 {dimension_numbers = #tpu.dot_dimension_numbers<[1], [0], [0], [1], [0, 0, 1, 1], [], []>} : vector<8x64xbf16>, vector<64x256xbf16>, vector<8x256xf32> -> vector<8x256xf32>
    %205 = arith.addf %202, %204 : vector<8x256xf32>
    %206 = arith.negf %205 : vector<8x256xf32>
    %207 = math.exp %206 : vector<8x256xf32>
    %cst_65 = arith.constant 1.000000e+00 : f32
    %208 = vector.broadcast %cst_65 : f32 to vector<8x256xf32>
    %209 = arith.addf %208, %207 : vector<8x256xf32>
    %210 = arith.divf %208, %209 : vector<8x256xf32>
    %211 = math.tanh %205 : vector<8x256xf32>
    %212 = vector.extract_strided_slice %210 {offsets = [0, 32], sizes = [8, 32], strides = [1, 1]} : vector<8x256xf32> to vector<8x32xf32>
    %213 = arith.mulf %212, %173 : vector<8x32xf32>
    %214 = vector.extract_strided_slice %210 {offsets = [0, 0], sizes = [8, 32], strides = [1, 1]} : vector<8x256xf32> to vector<8x32xf32>
    %215 = vector.extract_strided_slice %211 {offsets = [0, 64], sizes = [8, 32], strides = [1, 1]} : vector<8x256xf32> to vector<8x32xf32>
    %216 = arith.mulf %214, %215 : vector<8x32xf32>
    %217 = arith.addf %213, %216 : vector<8x32xf32>
    %218 = vector.extract_strided_slice %210 {offsets = [0, 160], sizes = [8, 32], strides = [1, 1]} : vector<8x256xf32> to vector<8x32xf32>
    %219 = arith.mulf %218, %179 : vector<8x32xf32>
    %220 = vector.extract_strided_slice %210 {offsets = [0, 128], sizes = [8, 32], strides = [1, 1]} : vector<8x256xf32> to vector<8x32xf32>
    %221 = vector.extract_strided_slice %211 {offsets = [0, 192], sizes = [8, 32], strides = [1, 1]} : vector<8x256xf32> to vector<8x32xf32>
    %222 = arith.mulf %220, %221 : vector<8x32xf32>
    %223 = arith.addf %219, %222 : vector<8x32xf32>
    %224 = vector.extract_strided_slice %210 {offsets = [0, 96], sizes = [8, 32], strides = [1, 1]} : vector<8x256xf32> to vector<8x32xf32>
    %225 = math.tanh %217 : vector<8x32xf32>
    %226 = arith.mulf %224, %225 : vector<8x32xf32>
    %227 = vector.extract_strided_slice %210 {offsets = [0, 224], sizes = [8, 32], strides = [1, 1]} : vector<8x256xf32> to vector<8x32xf32>
    %228 = math.tanh %223 : vector<8x32xf32>
    %229 = arith.mulf %227, %228 : vector<8x32xf32>
    %230 = arith.index_cast %c4_i32 : i32 to index
    %c0_66 = arith.constant 0 : index
    %c0_67 = arith.constant 0 : index
    %231 = vector.load %arg5[%230, %c0_66, %c0_67] : memref<8x8x64xf32, #tpu.memory_space<vmem>>, vector<1x8x32xf32>
    %232 = vector.shape_cast %231 : vector<1x8x32xf32> to vector<8x32xf32>
    %233 = vector.shape_cast %226 : vector<8x32xf32> to vector<1x8x32xf32>
    tpu.vector_store %arg5[%230, %c0_66, %c0_67], %233 {strides = array<i32>} : memref<8x8x64xf32, #tpu.memory_space<vmem>>, vector<1x8x32xf32>,
    %234 = arith.index_cast %195 : i32 to index
    %c0_68 = arith.constant 0 : index
    %c32_69 = arith.constant 32 : index
    %235 = vector.load %arg5[%234, %c0_68, %c32_69] : memref<8x8x64xf32, #tpu.memory_space<vmem>>, vector<1x8x32xf32>
    %236 = vector.shape_cast %235 : vector<1x8x32xf32> to vector<8x32xf32>
    %237 = vector.shape_cast %229 : vector<8x32xf32> to vector<1x8x32xf32>
    tpu.vector_store %arg5[%234, %c0_68, %c32_69], %237 {strides = array<i32>} : memref<8x8x64xf32, #tpu.memory_space<vmem>>, vector<1x8x32xf32>,
    %238 = tpu.concatenate %226, %229 in 1 : vector<8x32xf32>, vector<8x32xf32> -> vector<8x64xf32>
    %c5_i32 = arith.constant 5 : i32
    %c7_i32_70 = arith.constant 7 : i32
    %239 = arith.subi %c7_i32_70, %c5_i32 : i32
    %240 = arith.index_cast %c5_i32 : i32 to index
    %c0_71 = arith.constant 0 : index
    %c0_72 = arith.constant 0 : index
    %241 = vector.load %arg9[%240, %c0_71, %c0_72] : memref<8x8x256xf32, #tpu.memory_space<vmem>>, vector<1x8x128xf32>
    %242 = vector.shape_cast %241 : vector<1x8x128xf32> to vector<8x128xf32>
    %243 = arith.index_cast %239 : i32 to index
    %c0_73 = arith.constant 0 : index
    %c128_74 = arith.constant 128 : index
    %244 = vector.load %arg9[%243, %c0_73, %c128_74] : memref<8x8x256xf32, #tpu.memory_space<vmem>>, vector<1x8x128xf32>
    %245 = vector.shape_cast %244 : vector<1x8x128xf32> to vector<8x128xf32>
    %246 = tpu.concatenate %242, %245 in 1 : vector<8x128xf32>, vector<8x128xf32> -> vector<8x256xf32>
    %247 = arith.truncf %238 : vector<8x64xf32> to vector<8x64xbf16>
    %cst_75 = arith.constant dense<0.000000e+00> : vector<8x256xf32>
    %248 = tpu.matmul %247, %15, %cst_75 {dimension_numbers = #tpu.dot_dimension_numbers<[1], [0], [0], [1], [0, 0, 1, 1], [], []>} : vector<8x64xbf16>, vector<64x256xbf16>, vector<8x256xf32> -> vector<8x256xf32>
    %249 = arith.addf %246, %248 : vector<8x256xf32>
    %250 = arith.negf %249 : vector<8x256xf32>
    %251 = math.exp %250 : vector<8x256xf32>
    %cst_76 = arith.constant 1.000000e+00 : f32
    %252 = vector.broadcast %cst_76 : f32 to vector<8x256xf32>
    %253 = arith.addf %252, %251 : vector<8x256xf32>
    %254 = arith.divf %252, %253 : vector<8x256xf32>
    %255 = math.tanh %249 : vector<8x256xf32>
    %256 = vector.extract_strided_slice %254 {offsets = [0, 32], sizes = [8, 32], strides = [1, 1]} : vector<8x256xf32> to vector<8x32xf32>
    %257 = arith.mulf %256, %217 : vector<8x32xf32>
    %258 = vector.extract_strided_slice %254 {offsets = [0, 0], sizes = [8, 32], strides = [1, 1]} : vector<8x256xf32> to vector<8x32xf32>
    %259 = vector.extract_strided_slice %255 {offsets = [0, 64], sizes = [8, 32], strides = [1, 1]} : vector<8x256xf32> to vector<8x32xf32>
    %260 = arith.mulf %258, %259 : vector<8x32xf32>
    %261 = arith.addf %257, %260 : vector<8x32xf32>
    %262 = vector.extract_strided_slice %254 {offsets = [0, 160], sizes = [8, 32], strides = [1, 1]} : vector<8x256xf32> to vector<8x32xf32>
    %263 = arith.mulf %262, %223 : vector<8x32xf32>
    %264 = vector.extract_strided_slice %254 {offsets = [0, 128], sizes = [8, 32], strides = [1, 1]} : vector<8x256xf32> to vector<8x32xf32>
    %265 = vector.extract_strided_slice %255 {offsets = [0, 192], sizes = [8, 32], strides = [1, 1]} : vector<8x256xf32> to vector<8x32xf32>
    %266 = arith.mulf %264, %265 : vector<8x32xf32>
    %267 = arith.addf %263, %266 : vector<8x32xf32>
    %268 = vector.extract_strided_slice %254 {offsets = [0, 96], sizes = [8, 32], strides = [1, 1]} : vector<8x256xf32> to vector<8x32xf32>
    %269 = math.tanh %261 : vector<8x32xf32>
    %270 = arith.mulf %268, %269 : vector<8x32xf32>
    %271 = vector.extract_strided_slice %254 {offsets = [0, 224], sizes = [8, 32], strides = [1, 1]} : vector<8x256xf32> to vector<8x32xf32>
    %272 = math.tanh %267 : vector<8x32xf32>
    %273 = arith.mulf %271, %272 : vector<8x32xf32>
    %274 = arith.index_cast %c5_i32 : i32 to index
    %c0_77 = arith.constant 0 : index
    %c0_78 = arith.constant 0 : index
    %275 = vector.load %arg5[%274, %c0_77, %c0_78] : memref<8x8x64xf32, #tpu.memory_space<vmem>>, vector<1x8x32xf32>
    %276 = vector.shape_cast %275 : vector<1x8x32xf32> to vector<8x32xf32>
    %277 = vector.shape_cast %270 : vector<8x32xf32> to vector<1x8x32xf32>
    tpu.vector_store %arg5[%274, %c0_77, %c0_78], %277 {strides = array<i32>} : memref<8x8x64xf32, #tpu.memory_space<vmem>>, vector<1x8x32xf32>,
    %278 = arith.index_cast %239 : i32 to index
    %c0_79 = arith.constant 0 : index
    %c32_80 = arith.constant 32 : index
    %279 = vector.load %arg5[%278, %c0_79, %c32_80] : memref<8x8x64xf32, #tpu.memory_space<vmem>>, vector<1x8x32xf32>
    %280 = vector.shape_cast %279 : vector<1x8x32xf32> to vector<8x32xf32>
    %281 = vector.shape_cast %273 : vector<8x32xf32> to vector<1x8x32xf32>
    tpu.vector_store %arg5[%278, %c0_79, %c32_80], %281 {strides = array<i32>} : memref<8x8x64xf32, #tpu.memory_space<vmem>>, vector<1x8x32xf32>,
    %282 = tpu.concatenate %270, %273 in 1 : vector<8x32xf32>, vector<8x32xf32> -> vector<8x64xf32>
    %c6_i32 = arith.constant 6 : i32
    %c7_i32_81 = arith.constant 7 : i32
    %283 = arith.subi %c7_i32_81, %c6_i32 : i32
    %284 = arith.index_cast %c6_i32 : i32 to index
    %c0_82 = arith.constant 0 : index
    %c0_83 = arith.constant 0 : index
    %285 = vector.load %arg9[%284, %c0_82, %c0_83] : memref<8x8x256xf32, #tpu.memory_space<vmem>>, vector<1x8x128xf32>
    %286 = vector.shape_cast %285 : vector<1x8x128xf32> to vector<8x128xf32>
    %287 = arith.index_cast %283 : i32 to index
    %c0_84 = arith.constant 0 : index
    %c128_85 = arith.constant 128 : index
    %288 = vector.load %arg9[%287, %c0_84, %c128_85] : memref<8x8x256xf32, #tpu.memory_space<vmem>>, vector<1x8x128xf32>
    %289 = vector.shape_cast %288 : vector<1x8x128xf32> to vector<8x128xf32>
    %290 = tpu.concatenate %286, %289 in 1 : vector<8x128xf32>, vector<8x128xf32> -> vector<8x256xf32>
    %291 = arith.truncf %282 : vector<8x64xf32> to vector<8x64xbf16>
    %cst_86 = arith.constant dense<0.000000e+00> : vector<8x256xf32>
    %292 = tpu.matmul %291, %15, %cst_86 {dimension_numbers = #tpu.dot_dimension_numbers<[1], [0], [0], [1], [0, 0, 1, 1], [], []>} : vector<8x64xbf16>, vector<64x256xbf16>, vector<8x256xf32> -> vector<8x256xf32>
    %293 = arith.addf %290, %292 : vector<8x256xf32>
    %294 = arith.negf %293 : vector<8x256xf32>
    %295 = math.exp %294 : vector<8x256xf32>
    %cst_87 = arith.constant 1.000000e+00 : f32
    %296 = vector.broadcast %cst_87 : f32 to vector<8x256xf32>
    %297 = arith.addf %296, %295 : vector<8x256xf32>
    %298 = arith.divf %296, %297 : vector<8x256xf32>
    %299 = math.tanh %293 : vector<8x256xf32>
    %300 = vector.extract_strided_slice %298 {offsets = [0, 32], sizes = [8, 32], strides = [1, 1]} : vector<8x256xf32> to vector<8x32xf32>
    %301 = arith.mulf %300, %261 : vector<8x32xf32>
    %302 = vector.extract_strided_slice %298 {offsets = [0, 0], sizes = [8, 32], strides = [1, 1]} : vector<8x256xf32> to vector<8x32xf32>
    %303 = vector.extract_strided_slice %299 {offsets = [0, 64], sizes = [8, 32], strides = [1, 1]} : vector<8x256xf32> to vector<8x32xf32>
    %304 = arith.mulf %302, %303 : vector<8x32xf32>
    %305 = arith.addf %301, %304 : vector<8x32xf32>
    %306 = vector.extract_strided_slice %298 {offsets = [0, 160], sizes = [8, 32], strides = [1, 1]} : vector<8x256xf32> to vector<8x32xf32>
    %307 = arith.mulf %306, %267 : vector<8x32xf32>
    %308 = vector.extract_strided_slice %298 {offsets = [0, 128], sizes = [8, 32], strides = [1, 1]} : vector<8x256xf32> to vector<8x32xf32>
    %309 = vector.extract_strided_slice %299 {offsets = [0, 192], sizes = [8, 32], strides = [1, 1]} : vector<8x256xf32> to vector<8x32xf32>
    %310 = arith.mulf %308, %309 : vector<8x32xf32>
    %311 = arith.addf %307, %310 : vector<8x32xf32>
    %312 = vector.extract_strided_slice %298 {offsets = [0, 96], sizes = [8, 32], strides = [1, 1]} : vector<8x256xf32> to vector<8x32xf32>
    %313 = math.tanh %305 : vector<8x32xf32>
    %314 = arith.mulf %312, %313 : vector<8x32xf32>
    %315 = vector.extract_strided_slice %298 {offsets = [0, 224], sizes = [8, 32], strides = [1, 1]} : vector<8x256xf32> to vector<8x32xf32>
    %316 = math.tanh %311 : vector<8x32xf32>
    %317 = arith.mulf %315, %316 : vector<8x32xf32>
    %318 = arith.index_cast %c6_i32 : i32 to index
    %c0_88 = arith.constant 0 : index
    %c0_89 = arith.constant 0 : index
    %319 = vector.load %arg5[%318, %c0_88, %c0_89] : memref<8x8x64xf32, #tpu.memory_space<vmem>>, vector<1x8x32xf32>
    %320 = vector.shape_cast %319 : vector<1x8x32xf32> to vector<8x32xf32>
    %321 = vector.shape_cast %314 : vector<8x32xf32> to vector<1x8x32xf32>
    tpu.vector_store %arg5[%318, %c0_88, %c0_89], %321 {strides = array<i32>} : memref<8x8x64xf32, #tpu.memory_space<vmem>>, vector<1x8x32xf32>,
    %322 = arith.index_cast %283 : i32 to index
    %c0_90 = arith.constant 0 : index
    %c32_91 = arith.constant 32 : index
    %323 = vector.load %arg5[%322, %c0_90, %c32_91] : memref<8x8x64xf32, #tpu.memory_space<vmem>>, vector<1x8x32xf32>
    %324 = vector.shape_cast %323 : vector<1x8x32xf32> to vector<8x32xf32>
    %325 = vector.shape_cast %317 : vector<8x32xf32> to vector<1x8x32xf32>
    tpu.vector_store %arg5[%322, %c0_90, %c32_91], %325 {strides = array<i32>} : memref<8x8x64xf32, #tpu.memory_space<vmem>>, vector<1x8x32xf32>,
    %326 = tpu.concatenate %314, %317 in 1 : vector<8x32xf32>, vector<8x32xf32> -> vector<8x64xf32>
    %c7_i32_92 = arith.constant 7 : i32
    %c7_i32_93 = arith.constant 7 : i32
    %327 = arith.subi %c7_i32_93, %c7_i32_92 : i32
    %328 = arith.index_cast %c7_i32_92 : i32 to index
    %c0_94 = arith.constant 0 : index
    %c0_95 = arith.constant 0 : index
    %329 = vector.load %arg9[%328, %c0_94, %c0_95] : memref<8x8x256xf32, #tpu.memory_space<vmem>>, vector<1x8x128xf32>
    %330 = vector.shape_cast %329 : vector<1x8x128xf32> to vector<8x128xf32>
    %331 = arith.index_cast %327 : i32 to index
    %c0_96 = arith.constant 0 : index
    %c128_97 = arith.constant 128 : index
    %332 = vector.load %arg9[%331, %c0_96, %c128_97] : memref<8x8x256xf32, #tpu.memory_space<vmem>>, vector<1x8x128xf32>
    %333 = vector.shape_cast %332 : vector<1x8x128xf32> to vector<8x128xf32>
    %334 = tpu.concatenate %330, %333 in 1 : vector<8x128xf32>, vector<8x128xf32> -> vector<8x256xf32>
    %335 = arith.truncf %326 : vector<8x64xf32> to vector<8x64xbf16>
    %cst_98 = arith.constant dense<0.000000e+00> : vector<8x256xf32>
    %336 = tpu.matmul %335, %15, %cst_98 {dimension_numbers = #tpu.dot_dimension_numbers<[1], [0], [0], [1], [0, 0, 1, 1], [], []>} : vector<8x64xbf16>, vector<64x256xbf16>, vector<8x256xf32> -> vector<8x256xf32>
    %337 = arith.addf %334, %336 : vector<8x256xf32>
    %338 = arith.negf %337 : vector<8x256xf32>
    %339 = math.exp %338 : vector<8x256xf32>
    %cst_99 = arith.constant 1.000000e+00 : f32
    %340 = vector.broadcast %cst_99 : f32 to vector<8x256xf32>
    %341 = arith.addf %340, %339 : vector<8x256xf32>
    %342 = arith.divf %340, %341 : vector<8x256xf32>
    %343 = math.tanh %337 : vector<8x256xf32>
    %344 = vector.extract_strided_slice %342 {offsets = [0, 32], sizes = [8, 32], strides = [1, 1]} : vector<8x256xf32> to vector<8x32xf32>
    %345 = arith.mulf %344, %305 : vector<8x32xf32>
    %346 = vector.extract_strided_slice %342 {offsets = [0, 0], sizes = [8, 32], strides = [1, 1]} : vector<8x256xf32> to vector<8x32xf32>
    %347 = vector.extract_strided_slice %343 {offsets = [0, 64], sizes = [8, 32], strides = [1, 1]} : vector<8x256xf32> to vector<8x32xf32>
    %348 = arith.mulf %346, %347 : vector<8x32xf32>
    %349 = arith.addf %345, %348 : vector<8x32xf32>
    %350 = vector.extract_strided_slice %342 {offsets = [0, 160], sizes = [8, 32], strides = [1, 1]} : vector<8x256xf32> to vector<8x32xf32>
    %351 = arith.mulf %350, %311 : vector<8x32xf32>
    %352 = vector.extract_strided_slice %342 {offsets = [0, 128], sizes = [8, 32], strides = [1, 1]} : vector<8x256xf32> to vector<8x32xf32>
    %353 = vector.extract_strided_slice %343 {offsets = [0, 192], sizes = [8, 32], strides = [1, 1]} : vector<8x256xf32> to vector<8x32xf32>
    %354 = arith.mulf %352, %353 : vector<8x32xf32>
    %355 = arith.addf %351, %354 : vector<8x32xf32>
    %356 = vector.extract_strided_slice %342 {offsets = [0, 96], sizes = [8, 32], strides = [1, 1]} : vector<8x256xf32> to vector<8x32xf32>
    %357 = math.tanh %349 : vector<8x32xf32>
    %358 = arith.mulf %356, %357 : vector<8x32xf32>
    %359 = vector.extract_strided_slice %342 {offsets = [0, 224], sizes = [8, 32], strides = [1, 1]} : vector<8x256xf32> to vector<8x32xf32>
    %360 = math.tanh %355 : vector<8x32xf32>
    %361 = arith.mulf %359, %360 : vector<8x32xf32>
    %362 = arith.index_cast %c7_i32_92 : i32 to index
    %c0_100 = arith.constant 0 : index
    %c0_101 = arith.constant 0 : index
    %363 = vector.load %arg5[%362, %c0_100, %c0_101] : memref<8x8x64xf32, #tpu.memory_space<vmem>>, vector<1x8x32xf32>
    %364 = vector.shape_cast %363 : vector<1x8x32xf32> to vector<8x32xf32>
    %365 = vector.shape_cast %358 : vector<8x32xf32> to vector<1x8x32xf32>
    tpu.vector_store %arg5[%362, %c0_100, %c0_101], %365 {strides = array<i32>} : memref<8x8x64xf32, #tpu.memory_space<vmem>>, vector<1x8x32xf32>,
    %366 = arith.index_cast %327 : i32 to index
    %c0_102 = arith.constant 0 : index
    %c32_103 = arith.constant 32 : index
    %367 = vector.load %arg5[%366, %c0_102, %c32_103] : memref<8x8x64xf32, #tpu.memory_space<vmem>>, vector<1x8x32xf32>
    %368 = vector.shape_cast %367 : vector<1x8x32xf32> to vector<8x32xf32>
    %369 = vector.shape_cast %361 : vector<8x32xf32> to vector<1x8x32xf32>
    tpu.vector_store %arg5[%366, %c0_102, %c32_103], %369 {strides = array<i32>} : memref<8x8x64xf32, #tpu.memory_space<vmem>>, vector<1x8x32xf32>,
    %370 = tpu.concatenate %358, %361 in 1 : vector<8x32xf32>, vector<8x32xf32> -> vector<8x64xf32>
    %c8_i32 = arith.constant 8 : i32
    %c0_104 = arith.constant 0 : index
    %c0_105 = arith.constant 0 : index
    %371 = vector.load %arg6[%c0_104, %c0_105] : memref<8x64xf32, #tpu.memory_space<vmem>>, vector<8x64xf32>
    tpu.vector_store %arg6[%c0_104, %c0_105], %370 {strides = array<i32>} : memref<8x64xf32, #tpu.memory_space<vmem>>, vector<8x64xf32>,
    %c0_106 = arith.constant 0 : index
    %c0_107 = arith.constant 0 : index
    %372 = vector.load %arg7[%c0_106, %c0_107] : memref<8x32xf32, #tpu.memory_space<vmem>>, vector<8x32xf32>
    tpu.vector_store %arg7[%c0_106, %c0_107], %349 {strides = array<i32>} : memref<8x32xf32, #tpu.memory_space<vmem>>, vector<8x32xf32>,
    %c0_108 = arith.constant 0 : index
    %c0_109 = arith.constant 0 : index
    %373 = vector.load %arg8[%c0_108, %c0_109] : memref<8x32xf32, #tpu.memory_space<vmem>>, vector<8x32xf32>
    tpu.vector_store %arg8[%c0_108, %c0_109], %355 {strides = array<i32>} : memref<8x32xf32, #tpu.memory_space<vmem>>, vector<8x32xf32>,
    return
  }
  func.func @transform_0(%arg0: i32) -> (i32, i32, i32) {
    %c0_i32 = arith.constant 0 : i32
    %c0_i32_0 = arith.constant 0 : i32
    %c0_i32_1 = arith.constant 0 : i32
    %c0_i32_2 = arith.constant 0 : i32
    return %c0_i32, %c0_i32_0, %c0_i32_1 : i32, i32, i32
  }
  func.func @transform_1(%arg0: i32) -> (i32, i32) {
    %c0_i32 = arith.constant 0 : i32
    %c0_i32_0 = arith.constant 0 : i32
    %c0_i32_1 = arith.constant 0 : i32
    return %c0_i32, %c0_i32_0 : i32, i32
  }
  func.func @transform_2(%arg0: i32) -> (i32, i32) {
    %c0_i32 = arith.constant 0 : i32
    %c0_i32_0 = arith.constant 0 : i32
    %c0_i32_1 = arith.constant 0 : i32
    return %c0_i32, %c0_i32_0 : i32, i32
  }
  func.func @transform_3(%arg0: i32) -> (i32, i32) {
    %c0_i32 = arith.constant 0 : i32
    %c0_i32_0 = arith.constant 0 : i32
    %c0_i32_1 = arith.constant 0 : i32
    return %c0_i32, %c0_i32_0 : i32, i32
  }
  func.func @transform_4(%arg0: i32) -> (i32, i32, i32) {
    %c0_i32 = arith.constant 0 : i32
    %c0_i32_0 = arith.constant 0 : i32
    %c0_i32_1 = arith.constant 0 : i32
    %c0_i32_2 = arith.constant 0 : i32
    return %c0_i32, %c0_i32_0, %c0_i32_1 : i32, i32, i32
  }
}

</mosaic_0001>

<bundles_post_ra>
// kernel: lstm_forward.7
= control target key start
LH: loop header
LB: loop body
LE: loop exit
PB: predicated region body
PF: predicated region fallthrough
CT: control target
= control target key end

     0   :  { %vm39_vm0 = vcmask 523264   ;;  %v182_v3 = vmov 0   ;;  %v90_v33 = vlaneseq  ;;  %vm124_vm1 = vcmask 1041409   ;;  %s244_s0 = inlined_call_operand.vmem [shape: f32[8,8,64], index: 0, kind: input, shape index: {}]   ;;  %s245_s1 = inlined_call_operand.vmem [shape: f32[1,64], index: 1, kind: input, shape index: {}]   ;;  %s246_s2 = inlined_call_operand.<no memory space> [shape: f32[1,1], index: 2, kind: input, shape index: {}]   ;;  %s247_s3 = inlined_call_operand.vmem [shape: f32[8,8], index: 3, kind: output, shape index: {}]  }
   0x1   :  { %v16_v0 = vld [vmem:[%s244_s0] sm:$0xff]  ;;  %v17_v2 = vld [vmem:[%s244_s0 + $0x8] sm:$0xff]  ;;  %181 = vset.pattern.permute.xlu0 %v182_v3  ;;  %v8_v4 = vstv %s246_s2  ;;  %v18_v7 = vld [vmem:[%s244_s0 + $0x10] sm:$0xff]  ;;  %vm126_vm2 = vcmask 1042434   ;;  %vm128_vm3 = vcmask 1043459   ;;  %vm130_vm4 = vcmask 1044484  }
   0x2   :  { %v177_v1 = vld [vmem:[%s245_s1] ss:$0 sm:$0xff]  ;;  %v19_v8 = vld [vmem:[%s244_s0 + $0x18] sm:$0xff]  ;;  %9 = vst [vmem:[#allocation2] sm:$0x1] %v8_v4  ;;  %v21_v13 = vld [vmem:[%s244_s0 + $0x28] sm:$0xff] }
   0x3   :  { %v31_v5 = vmul.f32 %v177_v1, %v16_v0  ;;  %v32_v6 = vmul.f32 %v177_v1, %v17_v2  ;;  %v33_v9 = vmul.f32 %v177_v1, %v18_v7  ;;  %v20_v10 = vld [vmem:[%s244_s0 + $0x20] sm:$0xff]  ;;  %v34_v11 = vmul.f32 %v177_v1, %v19_v8  ;;  %v22_v18 = vld [vmem:[%s244_s0 + $0x30] sm:$0xff]  ;;  %v23_v20 = vld [vmem:[%s244_s0 + $0x38] sm:$0xff] }
   0x4   :  { %v35_v16 = vmul.f32 %v177_v1, %v20_v10  ;;  %v36_v19 = vmul.f32 %v177_v1, %v21_v13  ;;  %v37_v22 = vmul.f32 %v177_v1, %v22_v18  ;;  %v38_v24 = vmul.f32 %v177_v1, %v23_v20 }
   0x5   :  { %v40_v12 = vsel %vm39_vm0, %v31_v5, 0.0  ;;  %v46_v14 = vsel %vm39_vm0, %v33_v9, 0.0  ;;  %v43_v15 = vsel %vm39_vm0, %v32_v6, 0.0  ;;  %v49_v17 = vsel %vm39_vm0, %v34_v11, 0.0 }
   0x6   :  { %41 = vadd.xlane.f32.xlu0 %v40_v12  ;;  %47 = vadd.xlane.f32.xlu1 %v46_v14  ;;  %v52_v21 = vsel %vm39_vm0, %v35_v16, 0.0  ;;  %v55_v23 = vsel %vm39_vm0, %v36_v19, 0.0  ;;  %v58_v25 = vsel %vm39_vm0, %v37_v22, 0.0  ;;  %v61_v26 = vsel %vm39_vm0, %v38_v24, 0.0 }
   0x7   :  { %v91_v34 = vand.u32 127, %v90_v33  ;;  %v93_v35 = vshrl.u32 %v90_v33, 7  ;;  %vm132_vm5 = vcmask 1045509   ;;  %vm134_vm6 = vcmask 1046534  }
   0x8   :  { %vm136_vm7 = vcmask 1047559   ;;  %vm171_vm8 = vcmask 64512  }
   0x9   :  { %v178_v27 = vld [vmem:[#allocation2] ss:$0 sm:$0xff]  ;;  %v94_v38 = vsub.s32 %v91_v34, %v93_v35 }
   0xa   :  { %44 = vadd.xlane.f32.xlu0 %v43_v15  ;;  %50 = vadd.xlane.f32.xlu1 %v49_v17 }
   0xe   :  { %53 = vadd.xlane.f32.xlu0 %v52_v21  ;;  %56 = vadd.xlane.f32.xlu1 %v55_v23 }
  0x12   :  { %59 = vadd.xlane.f32.xlu0 %v58_v25  ;;  %62 = vadd.xlane.f32.xlu1 %v61_v26 }
  0x28   :  { %71 = vperm.xlu0 %181, %v178_v27  }
  0x8f   :  { %v42_v28 = vpop.xlane.xlu0 %41  ;;  %v48_v30 = vpop.xlane.xlu1 %47 }
  0x93   :  { %v45_v29 = vpop.xlane.xlu0 %44  ;;  %v51_v32 = vpop.xlane.xlu1 %50 }
  0x97   :  { %v54_v31 = vpop.xlane.xlu0 %53  ;;  %v57_v37 = vpop.xlane.xlu1 %56 }
  0x9b   :  { %v60_v36 = vpop.xlane.xlu0 %59  ;;  %v63_v44 = vpop.xlane.xlu1 %62 }
  0xa3   :  { %v72_v39 = vpop.permute.xlu0 %71 }
  0xa4   :  { %v74_v40 = vadd.f32 %v72_v39, %v42_v28  ;;  %v75_v41 = vadd.f32 %v72_v39, %v45_v29  ;;  %v76_v42 = vadd.f32 %v72_v39, %v48_v30  ;;  %v77_v43 = vadd.f32 %v72_v39, %v51_v32 }
  0xa5   :  { %v78_v45 = vadd.f32 %v72_v39, %v54_v31  ;;  %v79_v48 = vadd.f32 %v72_v39, %v57_v37  ;;  %v80_v50 = vadd.f32 %v72_v39, %v60_v36  ;;  %v81_v51 = vadd.f32 %v72_v39, %v63_v44 }
  0xa6   :  { %v95_v46 = vrot.slane %v74_v40, %v94_v38  ;;  %v99_v47 = vrot.slane %v75_v41, %v94_v38  ;;  %v103_v49 = vrot.slane %v76_v42, %v94_v38  ;;  %v107_v52 = vrot.slane %v77_v43, %v94_v38 }
  0xa7   :  { %v111_v54 = vrot.slane %v78_v45, %v94_v38  ;;  %v115_v56 = vrot.slane %v79_v48, %v94_v38  ;;  %v119_v58 = vrot.slane %v80_v50, %v94_v38  ;;  %v123_v60 = vrot.slane %v81_v51, %v94_v38 }
  0xa8   :  { %v125_v53 = vsel %vm124_vm1, %v99_v47, %v95_v46 }
  0xa9   :  { %v127_v55 = vsel %vm126_vm2, %v103_v49, %v125_v53 }
  0xaa   :  { %v129_v57 = vsel %vm128_vm3, %v107_v52, %v127_v55 }
  0xab   :  { %v131_v59 = vsel %vm130_vm4, %v111_v54, %v129_v57 }
  0xac   :  { %v133_v61 = vsel %vm132_vm5, %v115_v56, %v131_v59 }
  0xad   :  { %v135_v62 = vsel %vm134_vm6, %v119_v58, %v133_v61 }
  0xae   :  { %v137_v63 = vsel %vm136_vm7, %v123_v60, %v135_v62 }
  0xaf   :  { %139 = vxpose.xlu1.b32.start.end [1/1] (short) (narrow) %v137_v63, 8 }
 0x12b   :  { %v155_v0 = vpop.trf.xlu1 }
 0x12c   :  { %172 = vst.msk [vmem:[%s247_s3] sm:$0xff] %vm171_vm8, %v155_v0 }

// kernel: lstm_forward.5
= control target key start
LH: loop header
LB: loop body
LE: loop exit
PB: predicated region body
PF: predicated region fallthrough
CT: control target
= control target key end

     0   :  { %vm22_vm0 = vcmask 523264   ;;  %vm24_vm1 = vcmask 261120   ;;  %v1386_v1 = vmov 0   ;;  %v1387_v2 = vmov 0.0   ;;  %s1785_s1 = inlined_call_operand.vmem [shape: bf16[64,256], index: 1, kind: input, shape index: {}]   ;;  %s1786_s2 = inlined_call_operand.vmem [shape: bf16[64,256], index: 2, kind: input, shape index: {}]   ;;  %s1787_s0 = inlined_call_operand.vmem [shape: f32[8,8,64], index: 0, kind: input, shape index: {}]   ;;  %s1788_s3 = inlined_call_operand.vmem [shape: f32[1,256], index: 3, kind: input, shape index: {}]   ;;  %s1789_s4 = inlined_call_operand.vmem [shape: f32[8,8,64], index: 4, kind: output, shape index: {}]  }
   0x1   :  { %v1234_v0 = vld [vmem:[%s1785_s1 + $0x34] ss:$8 sps:$4 sm:$0xff]   ;;  %133 = vmatprep.mubr.bf16.mxu0 %v1386_v1  ;;  %307 = vmatprep.mubr.bf16.mxu1 %v1386_v1  ;;  %23 = vst.msk [vmem:[#allocation2] sm:$0xff] %vm22_vm0, %v1387_v2  ;;  %v1236_v3 = vld [vmem:[%s1785_s1 + $0x30] ss:$8 sps:$4 sm:$0xff]   ;;  %v36_v17 = vld [vmem:[%s1787_s0] sm:$0xff]  ;;  %v175_v34 = vlaneseq }
   0x2   :  { %25 = vst.msk [vmem:[#allocation3] sm:$0xff] %vm24_vm1, %v1387_v2  ;;  %26 = vst.msk [vmem:[#allocation4] sm:$0xff] %vm24_vm1, %v1387_v2  ;;  %109 = vmatprep.subr.bf16.mxu0 %v1234_v0  ;;  %v1430_v4 = vld [vmem:[%s1786_s2 + $0x34] ss:$8 sps:$4 sm:$0xff]   ;;  %v1435_v5 = vld [vmem:[%s1786_s2 + $0x30] ss:$8 sps:$4 sm:$0xff]  }
   0x3   :  { %110 = vmatpush1.bf16.msra.mxu0 %v1236_v3  ;;  %v1240_v6 = vld [vmem:[%s1785_s1 + $0x24] ss:$8 sps:$4 sm:$0xff]   ;;  %v1242_v7 = vld [vmem:[%s1785_s1 + $0x20] ss:$8 sps:$4 sm:$0xff]   ;;  %283 = vmatprep.subr.bf16.mxu1 %v1430_v4  ;;  %v1246_v10 = vld [vmem:[%s1785_s1 + $0x14] ss:$8 sps:$4 sm:$0xff]  }
   0x4   :  { %v1447_v8 = vld [vmem:[%s1786_s2 + $0x24] ss:$8 sps:$4 sm:$0xff]   ;;  %284 = vmatpush1.bf16.msra.mxu1 %v1435_v5  ;;  %111 = vmatprep.subr.bf16.mxu0 %v1240_v6  ;;  %v1453_v9 = vld [vmem:[%s1786_s2 + $0x20] ss:$8 sps:$4 sm:$0xff]   ;;  %v1248_v11 = vld [vmem:[%s1785_s1 + $0x10] ss:$8 sps:$4 sm:$0xff]  }
   0x5   :  { %285 = vmatprep.subr.bf16.mxu1 %v1447_v8  ;;  %v1465_v12 = vld [vmem:[%s1786_s2 + $0x14] ss:$8 sps:$4 sm:$0xff]   ;;  %v1252_v13 = vld [vmem:[%s1785_s1 + $0x4] ss:$8 sps:$4 sm:$0xff]   ;;  %v1474_v14 = vld [vmem:[%s1786_s2 + $0x10] ss:$8 sps:$4 sm:$0xff]  }
   0x6   :  { %v1480_v15 = vld [vmem:[%s1786_s2 + $0x4] ss:$8 sps:$4 sm:$0xff]   ;;  %v1254_v16 = vld [vmem:[%s1785_s1] ss:$8 sps:$4 sm:$0xff]   ;;  %s1388_s1 = smov 32   ;;  %v38_v25 = vld [vmem:[%s1787_s0 + $0x10] sm:$0xff] }
   0x7   :  { %112 = vmatpush1.bf16.msra.mxu0 %v1242_v7  ;;  %v37_v18 = vld [vmem:[%s1787_s0 + $0x8] sm:$0xff]  ;;  %v39_v26 = vld [vmem:[%s1787_s0 + $0x18] sm:$0xff]  ;;  %v40_v28 = vld [vmem:[%s1787_s0 + $0x20] sm:$0xff]  ;;  %v176_v35 = vshrl.u32 %v175_v34, 7  ;;  %vm385_vm2 = vcmask 523520  }
   0x8   :  { %113 = vmatprep.subr.bf16.mxu0 %v1246_v10  ;;  %286 = vmatpush1.bf16.msra.mxu1 %v1453_v9  ;;  %v1495_v19 = vld [vmem:[%s1786_s2] ss:$8 sps:$4 sm:$0xff]   ;;  %v44_v22 = vpack.c.bf16 %v37_v18, %v36_v17  ;;  %v45_v27 = vpack.c.bf16 %v39_v26, %v38_v25  ;;  %v42_v31 = vld [vmem:[%s1787_s0 + $0x30] sm:$0xff]  ;;  %v43_v32 = vld [vmem:[%s1787_s0 + $0x38] sm:$0xff] }
   0x9   :  { %287 = vmatprep.subr.bf16.mxu1 %v1465_v12  ;;  %v225_v20 = vld [vmem:[#allocation2] sm:$0xff]  ;;  %v226_v21 = vld [vmem:[#allocation3] sm:$0xff]  ;;  %v227_v23 = vld [vmem:[#allocation4] sm:$0xff]  ;;  %v47_v33 = vpack.c.bf16 %v43_v32, %v42_v31  ;;  %v177_v36 = vsub.s32 0, %v176_v35  ;;  %v181_v38 = vsub.s32 1, %v176_v35 }
   0xa   :  { %333 = vrot.lane.b32.xlu1 %v226_v21, %s1388_s1  ;;  %v231_v24 = vpack.c.bf16 %v225_v20, %v225_v20  ;;  %v41_v29 = vld [vmem:[%s1787_s0 + $0x28] sm:$0xff]  ;;  %v35_v37 = vld [vmem:[%s1788_s3] sm:$0x3]  ;;  %s1389_s0 = smov 64   ;;  %s1390_s3 = smov 96  }
   0xb   :  { %114 = vmatpush1.bf16.msra.mxu0 %v1248_v11  ;;  %v46_v30 = vpack.c.bf16 %v41_v29, %v40_v28  ;;  %v178_v39 = vrot.slane %v35_v37, %v177_v36  ;;  %v182_v40 = vrot.slane %v35_v37, %v181_v38 }
   0xc   :  { %115 = vmatprep.subr.bf16.mxu0 %v1252_v13  ;;  %288 = vmatpush1.bf16.msra.mxu1 %v1474_v14 }
   0xd   :  { %289 = vmatprep.subr.bf16.mxu1 %v1480_v15 }
   0xe   :  { %348 = vrot.lane.b32.xlu1 %v227_v23, %s1388_s1 }
   0xf   :  { %116 = vmatpush1.bf16.msra.mxu0 %v1254_v16 }
  0x10   :  { %516 = vmatprep.subr.bf16.mxu0 %v1430_v4  ;;  %290 = vmatpush1.bf16.msra.mxu1 %v1495_v19 }
  0x11   :  { %404 = vmatprep.subr.bf16.mxu1 %v1430_v4 }
  0x12   :  { %1179 = vmatmul.mubr.msk.bf16.vlgmr.msra.gmra.mxu0 %vm22_vm0, %v44_v22 }
  0x13   :  { %143 = vmatprep.mubr.bf16.mxu0 %v1386_v1  ;;  %1191 = vmatmul.mubr.msk.bf16.vlgmr.msra.gmra.mxu1 %vm22_vm0, %v231_v24 }
  0x14   :  { %517 = vmatpush1.bf16.msra.mxu0 %v1435_v5  ;;  %405 = vmatpush1.bf16.msra.mxu1 %v1435_v5 }
  0x15   :  { %428 = vmatprep.mubr.bf16.mxu1 %v1386_v1  ;;  %406 = vmatprep.subr.bf16.mxu1 %v1447_v8 }
  0x16   :  { %518 = vmatprep.subr.bf16.mxu0 %v1447_v8 }
  0x18   :  { %519 = vmatpush1.bf16.msra.mxu0 %v1453_v9  ;;  %407 = vmatpush1.bf16.msra.mxu1 %v1453_v9 }
  0x19   :  { %520 = vmatprep.subr.bf16.mxu0 %v1465_v12  ;;  %408 = vmatprep.subr.bf16.mxu1 %v1465_v12 }
  0x1a   :  { %1180 = vmatmul.mubr.msk.bf16.gmra.mxu0 %vm22_vm0, %v45_v27 }
  0x1b   :  { %153 = vmatprep.mubr.bf16.mxu0 %v1386_v1 }
  0x1c   :  { %521 = vmatpush1.bf16.msra.mxu0 %v1474_v14  ;;  %409 = vmatpush1.bf16.msra.mxu1 %v1474_v14 }
  0x1d   :  { %522 = vmatprep.subr.bf16.mxu0 %v1480_v15  ;;  %410 = vmatprep.subr.bf16.mxu1 %v1480_v15 }
  0x20   :  { %523 = vmatpush1.bf16.msra.mxu0 %v1495_v19  ;;  %411 = vmatpush1.bf16.msra.mxu1 %v1495_v19 }
  0x21   :  { %738 = vmatprep.subr.bf16.mxu0 %v1430_v4  ;;  %628 = vmatprep.subr.bf16.mxu1 %v1430_v4 }
  0x22   :  { %1181 = vmatmul.mubr.msk.bf16.gmra.mxu0 %vm22_vm0, %v46_v30 }
  0x23   :  { %163 = vmatprep.mubr.bf16.mxu0 %v1386_v1 }
  0x2a   :  { %1182 = vmatmul.mubr.msk.bf16.gmra.mxu0 %vm22_vm0, %v47_v33 }
  0x2b   :  { %540 = vmatprep.mubr.bf16.mxu0 %v1386_v1 }
  0x7c   :  { %v334_v38 = vpop.permute.xlu1 %333 }
  0xd2   :  { %v135_v41 = vpop.f32.mrf.mxu0 }
  0xd3   :  { %v185_v42 = vadd.f32 %v178_v39, %v135_v41  ;;  %v309_v44 = vpop.f32.mrf.mxu1 }
  0xd4   :  { %v137_v43 = vpop.f32.mrf.mxu0 }
  0xd5   :  { %v1550_v45 = vadd.f32 %v182_v40, %v137_v43  ;;  %v316_v46 = vadd.f32 %v309_v44, %v185_v42  ;;  %v311_v48 = vpop.f32.mrf.mxu1  ;;  %v349_v43 = vpop.permute.xlu1 %348 }
  0xd6   :  { %v139_v47 = vpop.f32.mrf.mxu0 }
  0xd7   :  { %1258 = vtanh.f32 %v316_v46  ;;  %v1552_v49 = vadd.f32 %v178_v39, %v139_v47  ;;  %v313_v51 = vpop.f32.mrf.mxu1  ;;  %v1192_v26 = vmul.f32 -1.442695, %v316_v46 }
  0xd8   :  { %v141_v50 = vpop.f32.mrf.mxu0 }
  0xd9   :  { %v1554_v52 = vadd.f32 %v182_v40, %v141_v50  ;;  %v314_v54 = vpop.f32.mrf.mxu1 }
  0xda   :  { %v145_v53 = vpop.f32.mrf.mxu0 }
  0xdb   :  { %v1556_v55 = vadd.f32 %v178_v39, %v145_v53 }
  0xdc   :  { %v147_v56 = vpop.f32.mrf.mxu0 }
  0xdd   :  { %v1558_v57 = vadd.f32 %v182_v40, %v147_v56 }
  0xde   :  { %v149_v58 = vpop.f32.mrf.mxu0 }
  0xdf   :  { %v1560_v59 = vadd.f32 %v178_v39, %v149_v58 }
  0xe0   :  { %v151_v60 = vpop.f32.mrf.mxu0 }
  0xe1   :  { %v1562_v61 = vadd.f32 %v182_v40, %v151_v60 }
  0xe2   :  { %v155_v62 = vpop.f32.mrf.mxu0 }
  0xe3   :  { %v1564_v63 = vadd.f32 %v178_v39, %v155_v62 }
  0xe4   :  { %v1259_v0 = vpop.eup %1258  ;;  %v157_v2 = vpop.f32.mrf.mxu0 }
  0xe5   :  { %v1566_v3 = vadd.f32 %v182_v40, %v157_v2  ;;  %338 = vrot.lane.b32.xlu0 %v1259_v0, %s1389_s0 }
  0xe6   :  { %v159_v6 = vpop.f32.mrf.mxu0 }
  0xe7   :  { %v1569_v7 = vadd.f32 %v178_v39, %v159_v6 }
  0xe8   :  { %v161_v10 = vpop.f32.mrf.mxu0 }
  0xe9   :  { %v1571_v11 = vadd.f32 %v182_v40, %v161_v10 }
  0xea   :  { %v165_v13 = vpop.f32.mrf.mxu0 }
  0xeb   :  { %v1573_v16 = vadd.f32 %v178_v39, %v165_v13 }
  0xec   :  { %v167_v17 = vpop.f32.mrf.mxu0 }
  0xed   :  { %v1575_v18 = vadd.f32 %v182_v40, %v167_v17 }
  0xee   :  { %v169_v20 = vpop.f32.mrf.mxu0 }
  0xef   :  { %v1577_v21 = vadd.f32 %v178_v39, %v169_v20 }
  0xf0   :  { %v171_v22 = vpop.f32.mrf.mxu0 }
  0xf1   :  { %v200_v23 = vadd.f32 %v182_v40, %v171_v22 }
  0xf3   :  { %v317_v24 = vadd.f32 %v311_v48, %v200_v23 }
  0xf5   :  { %1260 = vtanh.f32 %v317_v24  ;;  %v1193_v29 = vmul.f32 -1.442695, %v317_v24 }
  0xf6   :  { %1262 = vpow2.f32 %v1192_v26 }
 0x102   :  { %v1261_v25 = vpop.eup %1260 }
 0x103   :  { %353 = vrot.lane.b32.xlu0 %v1261_v25, %s1389_s0  ;;  %v1263_v27 = vpop.eup %1262 }
 0x104   :  { %v324_v28 = vadd.f32 1.0, %v1263_v27 }
 0x106   :  { %1264 = vrcp.f32 %v324_v28 }
 0x107   :  { %1266 = vpow2.f32 %v1193_v29 }
 0x113   :  { %v1265_v30 = vpop.eup %1264 }
 0x114   :  { %v1267_v33 = vpop.eup %1266  ;;  %v336_v39 = vmul.f32 %v1265_v30, %v334_v38 }
 0x115   :  { %v325_v34 = vadd.f32 1.0, %v1267_v33 }
 0x117   :  { %1268 = vrcp.f32 %v325_v34 }
 0x124   :  { %v1269_v35 = vpop.eup %1268 }
 0x125   :  { %v351_v44 = vmul.f32 %v1269_v35, %v349_v43 }
 0x157   :  { %v339_v31 = vpop.permute.xlu0 %338 }
 0x158   :  { %v341_v32 = vmul.f32 %v1265_v30, %v339_v31 }
 0x15a   :  { %343 = vrot.lane.b32.xlu0 %v341_v32, %s1388_s1 }
 0x175   :  { %v354_v36 = vpop.permute.xlu0 %353 }
 0x176   :  { %v356_v37 = vmul.f32 %v1269_v35, %v354_v36 }
 0x178   :  { %358 = vrot.lane.b32.xlu1 %v356_v37, %s1388_s1 }
 0x1cc   :  { %v344_v40 = vpop.permute.xlu0 %343 }
 0x1cd   :  { %v1582_v41 = vadd.f32 %v344_v40, %v336_v39 }
 0x1cf   :  { %1270 = vtanh.f32 %v1582_v41 }
 0x1dc   :  { %v1271_v42 = vpop.eup %1270 }
 0x1dd   :  { %364 = vrot.lane.b32.xlu0 %v1271_v42, %s1389_s0 }
 0x1ea   :  { %v359_v46 = vpop.permute.xlu1 %358 }
 0x1eb   :  { %v361_v47 = vadd.f32 %v359_v46, %v351_v44 }
 0x1ed   :  { %1272 = vtanh.f32 %v361_v47 }
 0x1fa   :  { %v1273_v48 = vpop.eup %1272 }
 0x1fb   :  { %370 = vrot.lane.b32.xlu1 %v1273_v48, %s1389_s0 }
 0x24f   :  { %v365_v50 = vpop.permute.xlu0 %364 }
 0x250   :  { %v367_v51 = vmul.f32 %v1265_v30, %v365_v50 }
 0x252   :  { %375 = vrot.lane.b32.xlu0 %v367_v51, %s1388_s1 }
 0x26d   :  { %v371_v53 = vpop.permute.xlu1 %370 }
 0x26e   :  { %v373_v54 = vmul.f32 %v1269_v35, %v371_v53 }
 0x270   :  { %381 = vrot.lane.b32.xlu1 %v373_v54, %s1389_s0 }
 0x2c4   :  { %v376_v56 = vpop.permute.xlu0 %375 }
 0x2c5   :  { %379 = vst.msk [vmem:[%s1789_s4] sm:$0xff] %vm24_vm1, %v376_v56 }
 0x2e2   :  { %v382_v58 = vpop.permute.xlu1 %381 }
 0x2e3   :  { %1194 = vst.msk [vmem:[%s1789_s4 + $0x38] sm:$0xff] %vm385_vm2, %v382_v58  ;;  %v387_v60 = vsel %vm24_vm1, %v376_v56, %v382_v58 }
 0x2e4   :  { %v392_v62 = vpack.c.bf16 %v387_v60, %v387_v60 }
 0x2e6   :  { %1195 = vmatmul.mubr.msk.bf16.vlgmr.msra.gmra.mxu1 %vm22_vm0, %v392_v62 }
 0x2e7   :  { %629 = vmatpush1.bf16.msra.mxu1 %v1435_v5  ;;  %652 = vmatprep.mubr.bf16.mxu1 %v1386_v1 }
 0x2e8   :  { %630 = vmatprep.subr.bf16.mxu1 %v1447_v8 }
 0x2eb   :  { %631 = vmatpush1.bf16.msra.mxu1 %v1453_v9 }
 0x2ec   :  { %632 = vmatprep.subr.bf16.mxu1 %v1465_v12 }
 0x2ef   :  { %633 = vmatpush1.bf16.msra.mxu1 %v1474_v14 }
 0x2f0   :  { %634 = vmatprep.subr.bf16.mxu1 %v1480_v15 }
 0x2f3   :  { %635 = vmatpush1.bf16.msra.mxu1 %v1495_v19 }
 0x2f4   :  { %846 = vmatprep.subr.bf16.mxu1 %v1430_v4 }
 0x3a6   :  { %v430_v0 = vpop.f32.mrf.mxu1 }
 0x3a7   :  { %v437_v2 = vadd.f32 %v430_v0, %v1552_v49 }
 0x3a8   :  { %v432_v6 = vpop.f32.mrf.mxu1 }
 0x3a9   :  { %1274 = vtanh.f32 %v437_v2  ;;  %v438_v10 = vadd.f32 %v432_v6, %v1575_v18  ;;  %v1196_v23 = vmul.f32 -1.442695, %v437_v2 }
 0x3aa   :  { %v434_v13 = vpop.f32.mrf.mxu1 }
 0x3ab   :  { %1276 = vtanh.f32 %v438_v10  ;;  %v1197_v24 = vmul.f32 -1.442695, %v438_v10 }
 0x3ac   :  { %v435_v17 = vpop.f32.mrf.mxu1  ;;  %1278 = vpow2.f32 %v1196_v23 }
 0x3ad   :  { %1280 = vpow2.f32 %v1197_v24 }
 0x3b6   :  { %v1275_v20 = vpop.eup %1274 }
 0x3b7   :  { %455 = vrot.lane.b32.xlu0 %v1275_v20, %s1389_s0 }
 0x3b8   :  { %v1277_v22 = vpop.eup %1276 }
 0x3b9   :  { %466 = vrot.lane.b32.xlu1 %v1277_v22, %s1389_s0  ;;  %v1279_v25 = vpop.eup %1278 }
 0x3ba   :  { %v1281_v26 = vpop.eup %1280  ;;  %v445_v49 = vadd.f32 1.0, %v1279_v25 }
 0x3bb   :  { %v446_v27 = vadd.f32 1.0, %v1281_v26 }
 0x3bc   :  { %1282 = vrcp.f32 %v445_v49 }
 0x3bd   :  { %1284 = vrcp.f32 %v446_v27 }
 0x3c9   :  { %v1283_v18 = vpop.eup %1282 }
 0x3ca   :  { %v1285_v30 = vpop.eup %1284  ;;  %v453_v33 = vmul.f32 %v1283_v18, %v1582_v41 }
 0x3cb   :  { %v464_v36 = vmul.f32 %v1285_v30, %v361_v47 }
 0x429   :  { %v456_v28 = vpop.permute.xlu0 %455 }
 0x42a   :  { %v458_v29 = vmul.f32 %v1283_v18, %v456_v28 }
 0x42b   :  { %v467_v31 = vpop.permute.xlu1 %466 }
 0x42c   :  { %460 = vrot.lane.b32.xlu0 %v458_v29, %s1388_s1  ;;  %v469_v32 = vmul.f32 %v1285_v30, %v467_v31 }
 0x42e   :  { %471 = vrot.lane.b32.xlu1 %v469_v32, %s1388_s1 }
 0x49e   :  { %v461_v34 = vpop.permute.xlu0 %460 }
 0x49f   :  { %v463_v35 = vadd.f32 %v461_v34, %v453_v33 }
 0x4a0   :  { %v472_v37 = vpop.permute.xlu1 %471 }
 0x4a1   :  { %1286 = vtanh.f32 %v463_v35  ;;  %v474_v38 = vadd.f32 %v472_v37, %v464_v36 }
 0x4a3   :  { %1288 = vtanh.f32 %v474_v38 }
 0x4ae   :  { %v1287_v39 = vpop.eup %1286 }
 0x4af   :  { %477 = vrot.lane.b32.xlu0 %v1287_v39, %s1389_s0 }
 0x4b0   :  { %v1289_v40 = vpop.eup %1288 }
 0x4b1   :  { %483 = vrot.lane.b32.xlu1 %v1289_v40, %s1389_s0 }
 0x521   :  { %v478_v42 = vpop.permute.xlu0 %477 }
 0x522   :  { %v480_v43 = vmul.f32 %v1283_v18, %v478_v42 }
 0x523   :  { %v484_v44 = vpop.permute.xlu1 %483 }
 0x524   :  { %488 = vrot.lane.b32.xlu0 %v480_v43, %s1388_s1  ;;  %v486_v46 = vmul.f32 %v1285_v30, %v484_v44 }
 0x526   :  { %494 = vrot.lane.b32.xlu1 %v486_v46, %s1389_s0 }
 0x596   :  { %v489_v41 = vpop.permute.xlu0 %488 }
 0x597   :  { %1198 = vst.msk [vmem:[%s1789_s4 + $0x8] sm:$0xff] %vm24_vm1, %v489_v41 }
 0x598   :  { %v495_v47 = vpop.permute.xlu1 %494 }
 0x599   :  { %1199 = vst.msk [vmem:[%s1789_s4 + $0x30] sm:$0xff] %vm385_vm2, %v495_v47  ;;  %v499_v48 = vsel %vm24_vm1, %v489_v41, %v495_v47 }
 0x59a   :  { %v504_v50 = vpack.c.bf16 %v499_v48, %v499_v48 }
 0x59c   :  { %1200 = vmatmul.mubr.msk.bf16.vlgmr.msra.gmra.mxu0 %vm22_vm0, %v504_v50 }
 0x59d   :  { %739 = vmatpush1.bf16.msra.mxu0 %v1435_v5  ;;  %762 = vmatprep.mubr.bf16.mxu0 %v1386_v1 }
 0x59e   :  { %740 = vmatprep.subr.bf16.mxu0 %v1447_v8 }
 0x5a1   :  { %741 = vmatpush1.bf16.msra.mxu0 %v1453_v9 }
 0x5a2   :  { %742 = vmatprep.subr.bf16.mxu0 %v1465_v12 }
 0x5a5   :  { %743 = vmatpush1.bf16.msra.mxu0 %v1474_v14 }
 0x5a6   :  { %744 = vmatprep.subr.bf16.mxu0 %v1480_v15 }
 0x5a9   :  { %745 = vmatpush1.bf16.msra.mxu0 %v1495_v19 }
 0x5aa   :  { %954 = vmatprep.subr.bf16.mxu0 %v1430_v4 }
 0x65c   :  { %v542_v51 = vpop.f32.mrf.mxu0 }
 0x65d   :  { %v549_v53 = vadd.f32 %v542_v51, %v1556_v55 }
 0x65e   :  { %v544_v54 = vpop.f32.mrf.mxu0 }
 0x65f   :  { %1290 = vtanh.f32 %v549_v53  ;;  %v550_v56 = vadd.f32 %v544_v54, %v1571_v11  ;;  %v1201_v2 = vmul.f32 -1.442695, %v549_v53 }
 0x660   :  { %v546_v58 = vpop.f32.mrf.mxu0 }
 0x661   :  { %1292 = vtanh.f32 %v550_v56  ;;  %v1202_v6 = vmul.f32 -1.442695, %v550_v56 }
 0x662   :  { %v547_v60 = vpop.f32.mrf.mxu0  ;;  %1294 = vpow2.f32 %v1201_v2 }
 0x663   :  { %1296 = vpow2.f32 %v1202_v6 }
 0x66c   :  { %v1291_v62 = vpop.eup %1290 }
 0x66d   :  { %567 = vrot.lane.b32.xlu0 %v1291_v62, %s1389_s0 }
 0x66e   :  { %v1293_v0 = vpop.eup %1292 }
 0x66f   :  { %578 = vrot.lane.b32.xlu1 %v1293_v0, %s1389_s0  ;;  %v1295_v10 = vpop.eup %1294 }
 0x670   :  { %v1297_v13 = vpop.eup %1296  ;;  %v557_v55 = vadd.f32 1.0, %v1295_v10 }
 0x671   :  { %v558_v17 = vadd.f32 1.0, %v1297_v13 }
 0x672   :  { %1298 = vrcp.f32 %v557_v55 }
 0x673   :  { %1300 = vrcp.f32 %v558_v17 }
 0x67f   :  { %v1299_v11 = vpop.eup %1298 }
 0x680   :  { %v1301_v23 = vpop.eup %1300  ;;  %v565_v26 = vmul.f32 %v1299_v11, %v463_v35 }
 0x681   :  { %v576_v18 = vmul.f32 %v1301_v23, %v474_v38 }
 0x6df   :  { %v568_v20 = vpop.permute.xlu0 %567 }
 0x6e0   :  { %v570_v22 = vmul.f32 %v1299_v11, %v568_v20 }
 0x6e1   :  { %v579_v24 = vpop.permute.xlu1 %578 }
 0x6e2   :  { %572 = vrot.lane.b32.xlu0 %v570_v22, %s1388_s1  ;;  %v581_v25 = vmul.f32 %v1301_v23, %v579_v24 }
 0x6e4   :  { %583 = vrot.lane.b32.xlu1 %v581_v25, %s1388_s1 }
 0x754   :  { %v573_v49 = vpop.permute.xlu0 %572 }
 0x755   :  { %v575_v27 = vadd.f32 %v573_v49, %v565_v26 }
 0x756   :  { %v584_v28 = vpop.permute.xlu1 %583 }
 0x757   :  { %1302 = vtanh.f32 %v575_v27  ;;  %v586_v29 = vadd.f32 %v584_v28, %v576_v18 }
 0x759   :  { %1304 = vtanh.f32 %v586_v29 }
 0x764   :  { %v1303_v30 = vpop.eup %1302 }
 0x765   :  { %589 = vrot.lane.b32.xlu0 %v1303_v30, %s1389_s0 }
 0x766   :  { %v1305_v31 = vpop.eup %1304 }
 0x767   :  { %595 = vrot.lane.b32.xlu1 %v1305_v31, %s1389_s0 }
 0x7d7   :  { %v590_v32 = vpop.permute.xlu0 %589 }
 0x7d8   :  { %v592_v33 = vmul.f32 %v1299_v11, %v590_v32 }
 0x7d9   :  { %v596_v34 = vpop.permute.xlu1 %595 }
 0x7da   :  { %600 = vrot.lane.b32.xlu0 %v592_v33, %s1388_s1  ;;  %v598_v36 = vmul.f32 %v1301_v23, %v596_v34 }
 0x7dc   :  { %606 = vrot.lane.b32.xlu1 %v598_v36, %s1389_s0 }
 0x84c   :  { %v601_v35 = vpop.permute.xlu0 %600 }
 0x84d   :  { %1203 = vst.msk [vmem:[%s1789_s4 + $0x10] sm:$0xff] %vm24_vm1, %v601_v35 }
 0x84e   :  { %v607_v37 = vpop.permute.xlu1 %606 }
 0x84f   :  { %1204 = vst.msk [vmem:[%s1789_s4 + $0x28] sm:$0xff] %vm385_vm2, %v607_v37  ;;  %v611_v38 = vsel %vm24_vm1, %v601_v35, %v607_v37 }
 0x850   :  { %v616_v39 = vpack.c.bf16 %v611_v38, %v611_v38 }
 0x852   :  { %1205 = vmatmul.mubr.msk.bf16.vlgmr.msra.gmra.mxu1 %vm22_vm0, %v616_v39 }
 0x853   :  { %847 = vmatpush1.bf16.msra.mxu1 %v1435_v5  ;;  %870 = vmatprep.mubr.bf16.mxu1 %v1386_v1 }
 0x854   :  { %848 = vmatprep.subr.bf16.mxu1 %v1447_v8 }
 0x857   :  { %849 = vmatpush1.bf16.msra.mxu1 %v1453_v9 }
 0x858   :  { %850 = vmatprep.subr.bf16.mxu1 %v1465_v12 }
 0x85b   :  { %851 = vmatpush1.bf16.msra.mxu1 %v1474_v14 }
 0x85c   :  { %852 = vmatprep.subr.bf16.mxu1 %v1480_v15 }
 0x85f   :  { %853 = vmatpush1.bf16.msra.mxu1 %v1495_v19 }
 0x860   :  { %1062 = vmatprep.subr.bf16.mxu1 %v1430_v4 }
 0x912   :  { %v654_v40 = vpop.f32.mrf.mxu1 }
 0x913   :  { %v661_v42 = vadd.f32 %v654_v40, %v1560_v59 }
 0x914   :  { %v656_v43 = vpop.f32.mrf.mxu1 }
 0x915   :  { %1306 = vtanh.f32 %v661_v42  ;;  %v662_v44 = vadd.f32 %v656_v43, %v1566_v3  ;;  %v1206_v50 = vmul.f32 -1.442695, %v661_v42 }
 0x916   :  { %v658_v46 = vpop.f32.mrf.mxu1 }
 0x917   :  { %1308 = vtanh.f32 %v662_v44  ;;  %v1207_v51 = vmul.f32 -1.442695, %v662_v44 }
 0x918   :  { %v659_v41 = vpop.f32.mrf.mxu1  ;;  %1310 = vpow2.f32 %v1206_v50 }
 0x919   :  { %1312 = vpow2.f32 %v1207_v51 }
 0x922   :  { %v1307_v47 = vpop.eup %1306 }
 0x923   :  { %679 = vrot.lane.b32.xlu0 %v1307_v47, %s1389_s0 }
 0x924   :  { %v1309_v48 = vpop.eup %1308 }
 0x925   :  { %690 = vrot.lane.b32.xlu1 %v1309_v48, %s1389_s0  ;;  %v1311_v4 = vpop.eup %1310 }
 0x926   :  { %v1313_v53 = vpop.eup %1312  ;;  %v669_v59 = vadd.f32 1.0, %v1311_v4 }
 0x927   :  { %v670_v54 = vadd.f32 1.0, %v1313_v53 }
 0x928   :  { %1314 = vrcp.f32 %v669_v59 }
 0x929   :  { %1316 = vrcp.f32 %v670_v54 }
 0x935   :  { %v1315_v3 = vpop.eup %1314 }
 0x936   :  { %v1317_v60 = vpop.eup %1316  ;;  %v677_v2 = vmul.f32 %v1315_v3, %v575_v27 }
 0x937   :  { %v688_v13 = vmul.f32 %v1317_v60, %v586_v29 }
 0x995   :  { %v680_v56 = vpop.permute.xlu0 %679 }
 0x996   :  { %v682_v58 = vmul.f32 %v1315_v3, %v680_v56 }
 0x997   :  { %v691_v62 = vpop.permute.xlu1 %690 }
 0x998   :  { %684 = vrot.lane.b32.xlu0 %v682_v58, %s1388_s1  ;;  %v693_v0 = vmul.f32 %v1317_v60, %v691_v62 }
 0x99a   :  { %695 = vrot.lane.b32.xlu1 %v693_v0, %s1388_s1 }
 0xa0a   :  { %v685_v6 = vpop.permute.xlu0 %684 }
 0xa0b   :  { %v687_v10 = vadd.f32 %v685_v6, %v677_v2 }
 0xa0c   :  { %v696_v55 = vpop.permute.xlu1 %695 }
 0xa0d   :  { %1318 = vtanh.f32 %v687_v10  ;;  %v698_v17 = vadd.f32 %v696_v55, %v688_v13 }
 0xa0f   :  { %1320 = vtanh.f32 %v698_v17 }
 0xa1a   :  { %v1319_v11 = vpop.eup %1318 }
 0xa1b   :  { %701 = vrot.lane.b32.xlu0 %v1319_v11, %s1389_s0 }
 0xa1c   :  { %v1321_v20 = vpop.eup %1320 }
 0xa1d   :  { %707 = vrot.lane.b32.xlu1 %v1321_v20, %s1389_s0 }
 0xa8d   :  { %v702_v22 = vpop.permute.xlu0 %701 }
 0xa8e   :  { %v704_v23 = vmul.f32 %v1315_v3, %v702_v22 }
 0xa8f   :  { %v708_v24 = vpop.permute.xlu1 %707 }
 0xa90   :  { %712 = vrot.lane.b32.xlu0 %v704_v23, %s1388_s1  ;;  %v710_v25 = vmul.f32 %v1317_v60, %v708_v24 }
 0xa92   :  { %718 = vrot.lane.b32.xlu1 %v710_v25, %s1389_s0 }
 0xb02   :  { %v713_v26 = vpop.permute.xlu0 %712 }
 0xb03   :  { %1208 = vst.msk [vmem:[%s1789_s4 + $0x18] sm:$0xff] %vm24_vm1, %v713_v26 }
 0xb04   :  { %v719_v49 = vpop.permute.xlu1 %718 }
 0xb05   :  { %1209 = vst.msk [vmem:[%s1789_s4 + $0x20] sm:$0xff] %vm385_vm2, %v719_v49  ;;  %v723_v27 = vsel %vm24_vm1, %v713_v26, %v719_v49 }
 0xb06   :  { %v726_v18 = vpack.c.bf16 %v723_v27, %v723_v27 }
 0xb08   :  { %1210 = vmatmul.mubr.msk.bf16.vlgmr.msra.gmra.mxu0 %vm22_vm0, %v726_v18 }
 0xb09   :  { %955 = vmatpush1.bf16.msra.mxu0 %v1435_v5  ;;  %978 = vmatprep.mubr.bf16.mxu0 %v1386_v1 }
 0xb0a   :  { %956 = vmatprep.subr.bf16.mxu0 %v1447_v8 }
 0xb0d   :  { %957 = vmatpush1.bf16.msra.mxu0 %v1453_v9 }
 0xb0e   :  { %958 = vmatprep.subr.bf16.mxu0 %v1465_v12 }
 0xb11   :  { %959 = vmatpush1.bf16.msra.mxu0 %v1474_v14 }
 0xb12   :  { %960 = vmatprep.subr.bf16.mxu0 %v1480_v15 }
 0xb15   :  { %961 = vmatpush1.bf16.msra.mxu0 %v1495_v19 }
 0xbc8   :  { %v764_v28 = vpop.f32.mrf.mxu0 }
 0xbc9   :  { %v771_v29 = vadd.f32 %v764_v28, %v1564_v63 }
 0xbca   :  { %v766_v30 = vpop.f32.mrf.mxu0 }
 0xbcb   :  { %1322 = vtanh.f32 %v771_v29  ;;  %v772_v31 = vadd.f32 %v766_v30, %v1562_v61  ;;  %v1211_v35 = vmul.f32 -1.442695, %v771_v29 }
 0xbcc   :  { %v768_v32 = vpop.f32.mrf.mxu0 }
 0xbcd   :  { %1324 = vtanh.f32 %v772_v31  ;;  %v1212_v37 = vmul.f32 -1.442695, %v772_v31 }
 0xbce   :  { %v769_v33 = vpop.f32.mrf.mxu0  ;;  %1326 = vpow2.f32 %v1211_v35 }
 0xbcf   :  { %1328 = vpow2.f32 %v1212_v37 }
 0xbd8   :  { %v1323_v34 = vpop.eup %1322 }
 0xbd9   :  { %789 = vrot.lane.b32.xlu0 %v1323_v34, %s1389_s0 }
 0xbda   :  { %v1325_v36 = vpop.eup %1324 }
 0xbdb   :  { %800 = vrot.lane.b32.xlu1 %v1325_v36, %s1389_s0  ;;  %v1327_v38 = vpop.eup %1326 }
 0xbdc   :  { %v1329_v39 = vpop.eup %1328  ;;  %v779_v63 = vadd.f32 1.0, %v1327_v38 }
 0xbdd   :  { %v780_v40 = vadd.f32 1.0, %v1329_v39 }
 0xbde   :  { %1330 = vrcp.f32 %v779_v63 }
 0xbdf   :  { %1332 = vrcp.f32 %v780_v40 }
 0xbeb   :  { %v1331_v61 = vpop.eup %1330 }
 0xbec   :  { %v1333_v44 = vpop.eup %1332  ;;  %v787_v47 = vmul.f32 %v1331_v61, %v687_v10 }
 0xbed   :  { %v798_v51 = vmul.f32 %v1333_v44, %v698_v17 }
 0xc4b   :  { %v790_v42 = vpop.permute.xlu0 %789 }
 0xc4c   :  { %v792_v43 = vmul.f32 %v1331_v61, %v790_v42 }
 0xc4d   :  { %v801_v46 = vpop.permute.xlu1 %800 }
 0xc4e   :  { %794 = vrot.lane.b32.xlu0 %v792_v43, %s1388_s1  ;;  %v803_v41 = vmul.f32 %v1333_v44, %v801_v46 }
 0xc50   :  { %805 = vrot.lane.b32.xlu1 %v803_v41, %s1388_s1 }
 0xcc0   :  { %v795_v48 = vpop.permute.xlu0 %794 }
 0xcc1   :  { %v797_v50 = vadd.f32 %v795_v48, %v787_v47 }
 0xcc2   :  { %v806_v4 = vpop.permute.xlu1 %805 }
 0xcc3   :  { %1334 = vtanh.f32 %v797_v50  ;;  %v808_v53 = vadd.f32 %v806_v4, %v798_v51 }
 0xcc5   :  { %1336 = vtanh.f32 %v808_v53 }
 0xcd0   :  { %v1335_v59 = vpop.eup %1334 }
 0xcd1   :  { %811 = vrot.lane.b32.xlu0 %v1335_v59, %s1389_s0 }
 0xcd2   :  { %v1337_v54 = vpop.eup %1336 }
 0xcd3   :  { %817 = vrot.lane.b32.xlu1 %v1337_v54, %s1389_s0 }
 0xd43   :  { %v812_v3 = vpop.permute.xlu0 %811 }
 0xd44   :  { %v814_v56 = vmul.f32 %v1331_v61, %v812_v3 }
 0xd45   :  { %v818_v58 = vpop.permute.xlu1 %817 }
 0xd46   :  { %822 = vrot.lane.b32.xlu0 %v814_v56, %s1388_s1  ;;  %v820_v60 = vmul.f32 %v1333_v44, %v818_v58 }
 0xd48   :  { %827 = vrot.lane.b32.xlu1 %v820_v60, %s1389_s0 }
 0xdb8   :  { %v823_v62 = vpop.permute.xlu0 %822 }
 0xdb9   :  { %1213 = vst.msk [vmem:[%s1789_s4 + $0x20] sm:$0xff] %vm24_vm1, %v823_v62 }
 0xdba   :  { %v828_v0 = vpop.permute.xlu1 %827 }
 0xdbb   :  { %1214 = vst.msk [vmem:[%s1789_s4 + $0x18] sm:$0xff] %vm385_vm2, %v828_v0  ;;  %v831_v2 = vsel %vm24_vm1, %v823_v62, %v828_v0 }
 0xdbc   :  { %v834_v6 = vpack.c.bf16 %v831_v2, %v831_v2 }
 0xdbe   :  { %1215 = vmatmul.mubr.msk.bf16.vlgmr.msra.gmra.mxu1 %vm22_vm0, %v834_v6 }
 0xdbf   :  { %1063 = vmatpush1.bf16.msra.mxu1 %v1435_v5  ;;  %1086 = vmatprep.mubr.bf16.mxu1 %v1386_v1 }
 0xdc0   :  { %1064 = vmatprep.subr.bf16.mxu1 %v1447_v8 }
 0xdc3   :  { %1065 = vmatpush1.bf16.msra.mxu1 %v1453_v9 }
 0xdc4   :  { %1066 = vmatprep.subr.bf16.mxu1 %v1465_v12 }
 0xdc7   :  { %1067 = vmatpush1.bf16.msra.mxu1 %v1474_v14 }
 0xdc8   :  { %1068 = vmatprep.subr.bf16.mxu1 %v1480_v15 }
 0xdcb   :  { %1069 = vmatpush1.bf16.msra.mxu1 %v1495_v19 }
 0xe7e   :  { %v872_v10 = vpop.f32.mrf.mxu1 }
 0xe7f   :  { %v879_v13 = vadd.f32 %v872_v10, %v1569_v7 }
 0xe80   :  { %v874_v55 = vpop.f32.mrf.mxu1 }
 0xe81   :  { %1338 = vtanh.f32 %v879_v13  ;;  %v880_v5 = vadd.f32 %v874_v55, %v1558_v57  ;;  %v1216_v12 = vmul.f32 -1.442695, %v879_v13 }
 0xe82   :  { %v876_v1 = vpop.f32.mrf.mxu1 }
 0xe83   :  { %1340 = vtanh.f32 %v880_v5  ;;  %v1217_v14 = vmul.f32 -1.442695, %v880_v5 }
 0xe84   :  { %v877_v8 = vpop.f32.mrf.mxu1  ;;  %1342 = vpow2.f32 %v1216_v12 }
 0xe85   :  { %1344 = vpow2.f32 %v1217_v14 }
 0xe8e   :  { %v1339_v17 = vpop.eup %1338 }
 0xe8f   :  { %897 = vrot.lane.b32.xlu0 %v1339_v17, %s1389_s0 }
 0xe90   :  { %v1341_v9 = vpop.eup %1340 }
 0xe91   :  { %908 = vrot.lane.b32.xlu1 %v1341_v9, %s1389_s0  ;;  %v1343_v15 = vpop.eup %1342 }
 0xe92   :  { %v1345_v19 = vpop.eup %1344  ;;  %v887_v7 = vadd.f32 1.0, %v1343_v15 }
 0xe93   :  { %v888_v11 = vadd.f32 1.0, %v1345_v19 }
 0xe94   :  { %1346 = vrcp.f32 %v887_v7 }
 0xe95   :  { %1348 = vrcp.f32 %v888_v11 }
 0xea1   :  { %v1347_v57 = vpop.eup %1346 }
 0xea2   :  { %v1349_v23 = vpop.eup %1348  ;;  %v895_v26 = vmul.f32 %v1347_v57, %v797_v50 }
 0xea3   :  { %v906_v18 = vmul.f32 %v1349_v23, %v808_v53 }
 0xf01   :  { %v898_v20 = vpop.permute.xlu0 %897 }
 0xf02   :  { %v900_v22 = vmul.f32 %v1347_v57, %v898_v20 }
 0xf03   :  { %v909_v24 = vpop.permute.xlu1 %908 }
 0xf04   :  { %902 = vrot.lane.b32.xlu0 %v900_v22, %s1388_s1  ;;  %v911_v25 = vmul.f32 %v1349_v23, %v909_v24 }
 0xf06   :  { %913 = vrot.lane.b32.xlu1 %v911_v25, %s1388_s1 }
 0xf76   :  { %v903_v49 = vpop.permute.xlu0 %902 }
 0xf77   :  { %v905_v27 = vadd.f32 %v903_v49, %v895_v26 }
 0xf78   :  { %v914_v28 = vpop.permute.xlu1 %913 }
 0xf79   :  { %1350 = vtanh.f32 %v905_v27  ;;  %v916_v29 = vadd.f32 %v914_v28, %v906_v18 }
 0xf7b   :  { %1352 = vtanh.f32 %v916_v29 }
 0xf86   :  { %v1351_v30 = vpop.eup %1350 }
 0xf87   :  { %919 = vrot.lane.b32.xlu0 %v1351_v30, %s1389_s0 }
 0xf88   :  { %v1353_v31 = vpop.eup %1352 }
 0xf89   :  { %925 = vrot.lane.b32.xlu1 %v1353_v31, %s1389_s0 }
 0xff9   :  { %v920_v32 = vpop.permute.xlu0 %919 }
 0xffa   :  { %v922_v33 = vmul.f32 %v1347_v57, %v920_v32 }
 0xffb   :  { %v926_v34 = vpop.permute.xlu1 %925 }
 0xffc   :  { %930 = vrot.lane.b32.xlu0 %v922_v33, %s1388_s1  ;;  %v928_v36 = vmul.f32 %v1349_v23, %v926_v34 }
 0xffe   :  { %935 = vrot.lane.b32.xlu1 %v928_v36, %s1389_s0 }
0x106e   :  { %v931_v35 = vpop.permute.xlu0 %930 }
0x106f   :  { %1218 = vst.msk [vmem:[%s1789_s4 + $0x28] sm:$0xff] %vm24_vm1, %v931_v35 }
0x1070   :  { %v936_v37 = vpop.permute.xlu1 %935 }
0x1071   :  { %1219 = vst.msk [vmem:[%s1789_s4 + $0x10] sm:$0xff] %vm385_vm2, %v936_v37  ;;  %v939_v38 = vsel %vm24_vm1, %v931_v35, %v936_v37 }
0x1072   :  { %v942_v39 = vpack.c.bf16 %v939_v38, %v939_v38 }
0x1074   :  { %1220 = vmatmul.mubr.msk.bf16.vlgmr.msra.gmra.mxu0 %vm22_vm0, %v942_v39 }
0x1134   :  { %v980_v63 = vpop.f32.mrf.mxu0 }
0x1135   :  { %v987_v40 = vadd.f32 %v980_v63, %v1573_v16 }
0x1136   :  { %v982_v61 = vpop.f32.mrf.mxu0 }
0x1137   :  { %1354 = vtanh.f32 %v987_v40  ;;  %v988_v42 = vadd.f32 %v982_v61, %v1554_v52  ;;  %v1221_v47 = vmul.f32 -1.442695, %v987_v40 }
0x1138   :  { %v984_v43 = vpop.f32.mrf.mxu0 }
0x1139   :  { %1356 = vtanh.f32 %v988_v42  ;;  %v1222_v48 = vmul.f32 -1.442695, %v988_v42 }
0x113a   :  { %v985_v44 = vpop.f32.mrf.mxu0  ;;  %1358 = vpow2.f32 %v1221_v47 }
0x113b   :  { %1360 = vpow2.f32 %v1222_v48 }
0x1144   :  { %v1355_v46 = vpop.eup %1354 }
0x1145   :  { %1005 = vrot.lane.b32.xlu0 %v1355_v46, %s1389_s0 }
0x1146   :  { %v1357_v41 = vpop.eup %1356 }
0x1147   :  { %1016 = vrot.lane.b32.xlu1 %v1357_v41, %s1389_s0  ;;  %v1359_v50 = vpop.eup %1358 }
0x1148   :  { %v1361_v51 = vpop.eup %1360  ;;  %v995_v16 = vadd.f32 1.0, %v1359_v50 }
0x1149   :  { %v996_v4 = vadd.f32 1.0, %v1361_v51 }
0x114a   :  { %1362 = vrcp.f32 %v995_v16 }
0x114b   :  { %1364 = vrcp.f32 %v996_v4 }
0x1157   :  { %v1363_v52 = vpop.eup %1362 }
0x1158   :  { %v1365_v54 = vpop.eup %1364  ;;  %v1003_v58 = vmul.f32 %v1363_v52, %v905_v27 }
0x1159   :  { %v1014_v0 = vmul.f32 %v1365_v54, %v916_v29 }
0x11b7   :  { %v1006_v53 = vpop.permute.xlu0 %1005 }
0x11b8   :  { %v1008_v59 = vmul.f32 %v1363_v52, %v1006_v53 }
0x11b9   :  { %v1017_v3 = vpop.permute.xlu1 %1016 }
0x11ba   :  { %1010 = vrot.lane.b32.xlu0 %v1008_v59, %s1388_s1  ;;  %v1019_v56 = vmul.f32 %v1365_v54, %v1017_v3 }
0x11bc   :  { %1021 = vrot.lane.b32.xlu1 %v1019_v56, %s1388_s1 }
0x122c   :  { %v1011_v60 = vpop.permute.xlu0 %1010 }
0x122d   :  { %v1013_v62 = vadd.f32 %v1011_v60, %v1003_v58 }
0x122e   :  { %v1022_v2 = vpop.permute.xlu1 %1021 }
0x122f   :  { %1366 = vtanh.f32 %v1013_v62  ;;  %v1024_v6 = vadd.f32 %v1022_v2, %v1014_v0 }
0x1231   :  { %1368 = vtanh.f32 %v1024_v6 }
0x123c   :  { %v1367_v10 = vpop.eup %1366 }
0x123d   :  { %1027 = vrot.lane.b32.xlu0 %v1367_v10, %s1389_s0 }
0x123e   :  { %v1369_v13 = vpop.eup %1368 }
0x123f   :  { %1033 = vrot.lane.b32.xlu1 %v1369_v13, %s1389_s0 }
0x12af   :  { %v1028_v55 = vpop.permute.xlu0 %1027 }
0x12b0   :  { %v1030_v5 = vmul.f32 %v1363_v52, %v1028_v55 }
0x12b1   :  { %v1034_v1 = vpop.permute.xlu1 %1033 }
0x12b2   :  { %1038 = vrot.lane.b32.xlu0 %v1030_v5, %s1388_s1  ;;  %v1036_v8 = vmul.f32 %v1365_v54, %v1034_v1 }
0x12b4   :  { %1043 = vrot.lane.b32.xlu1 %v1036_v8, %s1389_s0 }
0x1324   :  { %v1039_v17 = vpop.permute.xlu0 %1038 }
0x1325   :  { %1223 = vst.msk [vmem:[%s1789_s4 + $0x30] sm:$0xff] %vm24_vm1, %v1039_v17 }
0x1326   :  { %v1044_v9 = vpop.permute.xlu1 %1043 }
0x1327   :  { %1224 = vst.msk [vmem:[%s1789_s4 + $0x8] sm:$0xff] %vm385_vm2, %v1044_v9  ;;  %v1047_v12 = vsel %vm24_vm1, %v1039_v17, %v1044_v9 }
0x1328   :  { %v1050_v14 = vpack.c.bf16 %v1047_v12, %v1047_v12 }
0x132a   :  { %1225 = vmatmul.mubr.msk.bf16.vlgmr.msra.gmra.mxu1 %vm22_vm0, %v1050_v14 }
0x13ea   :  { %v1088_v15 = vpop.f32.mrf.mxu1 }
0x13eb   :  { %v1095_v19 = vadd.f32 %v1088_v15, %v1577_v21 }
0x13ec   :  { %v1090_v7 = vpop.f32.mrf.mxu1 }
0x13ed   :  { %1370 = vtanh.f32 %v1095_v19  ;;  %v1096_v11 = vadd.f32 %v1090_v7, %v1550_v45  ;;  %v1226_v24 = vmul.f32 -1.442695, %v1095_v19 }
0x13ee   :  { %v1092_v57 = vpop.f32.mrf.mxu1 }
0x13ef   :  { %1372 = vtanh.f32 %v1096_v11  ;;  %v1227_v25 = vmul.f32 -1.442695, %v1096_v11 }
0x13f0   :  { %v1093_v20 = vpop.f32.mrf.mxu1  ;;  %1374 = vpow2.f32 %v1226_v24 }
0x13f1   :  { %1376 = vpow2.f32 %v1227_v25 }
0x13fa   :  { %v1371_v22 = vpop.eup %1370 }
0x13fb   :  { %1113 = vrot.lane.b32.xlu0 %v1371_v22, %s1389_s0 }
0x13fc   :  { %v1373_v23 = vpop.eup %1372 }
0x13fd   :  { %1124 = vrot.lane.b32.xlu1 %v1373_v23, %s1389_s0  ;;  %v1375_v26 = vpop.eup %1374 }
0x13fe   :  { %v1377_v49 = vpop.eup %1376  ;;  %v1103_v21 = vadd.f32 1.0, %v1375_v26 }
0x13ff   :  { %v1104_v27 = vadd.f32 1.0, %v1377_v49 }
0x1400   :  { %1378 = vrcp.f32 %v1103_v21 }
0x1401   :  { %1380 = vrcp.f32 %v1104_v27 }
0x140d   :  { %v1379_v45 = vpop.eup %1378 }
0x140e   :  { %v1381_v29 = vpop.eup %1380  ;;  %v1111_v32 = vmul.f32 %v1379_v45, %v1013_v62 }
0x140f   :  { %v1122_v36 = vmul.f32 %v1381_v29, %v1024_v6 }
0x146d   :  { %v1114_v18 = vpop.permute.xlu0 %1113 }
0x146e   :  { %v1116_v28 = vmul.f32 %v1379_v45, %v1114_v18 }
0x146f   :  { %v1125_v30 = vpop.permute.xlu1 %1124 }
0x1470   :  { %1118 = vrot.lane.b32.xlu0 %v1116_v28, %s1388_s1  ;;  %v1127_v31 = vmul.f32 %v1381_v29, %v1125_v30 }
0x1472   :  { %1129 = vrot.lane.b32.xlu1 %v1127_v31, %s1388_s1 }
0x14e2   :  { %v1119_v33 = vpop.permute.xlu0 %1118 }
0x14e3   :  { %v1121_v34 = vadd.f32 %v1119_v33, %v1111_v32 }
0x14e4   :  { %v1130_v35 = vpop.permute.xlu1 %1129 }
0x14e5   :  { %1382 = vtanh.f32 %v1121_v34  ;;  %v1132_v37 = vadd.f32 %v1130_v35, %v1122_v36 }
0x14e7   :  { %1384 = vtanh.f32 %v1132_v37 }
0x14f2   :  { %v1383_v38 = vpop.eup %1382 }
0x14f3   :  { %1135 = vrot.lane.b32.xlu0 %v1383_v38, %s1389_s0 }
0x14f4   :  { %v1385_v39 = vpop.eup %1384 }
0x14f5   :  { %1141 = vrot.lane.b32.xlu1 %v1385_v39, %s1389_s0 }
0x1565   :  { %v1136_v63 = vpop.permute.xlu0 %1135 }
0x1566   :  { %v1138_v40 = vmul.f32 %v1379_v45, %v1136_v63 }
0x1567   :  { %v1142_v61 = vpop.permute.xlu1 %1141 }
0x1568   :  { %1146 = vrot.lane.b32.xlu0 %v1138_v40, %s1388_s1  ;;  %v1144_v42 = vmul.f32 %v1381_v29, %v1142_v61 }
0x156a   :  { %1151 = vrot.lane.b32.xlu1 %v1144_v42, %s1389_s0 }
0x156c   :  { %1158 = vrot.lane.b32.xlu0 %v1121_v34, %s1390_s3 }
0x156e   :  { %1163 = vrot.lane.b32.xlu1 %v1132_v37, %s1390_s3 }
0x15da   :  { %v1147_v43 = vpop.permute.xlu0 %1146 }
0x15db   :  { %1228 = vst.msk [vmem:[%s1789_s4 + $0x38] sm:$0xff] %vm24_vm1, %v1147_v43 }
0x15dc   :  { %v1152_v44 = vpop.permute.xlu1 %1151 }
0x15dd   :  { %1154 = vst.msk [vmem:[%s1789_s4] sm:$0xff] %vm385_vm2, %v1152_v44  ;;  %v1155_v46 = vsel %vm24_vm1, %v1147_v43, %v1152_v44 }
0x15de   :  { %v1159_v41 = vpop.permute.xlu0 %1158  ;;  %1156 = vst.msk [vmem:[#allocation2] sm:$0xff] %vm22_vm0, %v1155_v46 }
0x15df   :  { %1161 = vst.msk [vmem:[#allocation3] sm:$0xff] %vm24_vm1, %v1159_v41 }
0x15e0   :  { %v1164_v47 = vpop.permute.xlu1 %1163 }
0x15e1   :  { %1166 = vst.msk [vmem:[#allocation4] sm:$0xff] %vm24_vm1, %v1164_v47 }

// kernel: lstm_forward.4
= control target key start
LH: loop header
LB: loop body
LE: loop exit
PB: predicated region body
PF: predicated region fallthrough
CT: control target
= control target key end

     0   :  { %vm22_vm0 = vcmask 523264   ;;  %vm24_vm1 = vcmask 261120   ;;  %v1304_v1 = vmov 0   ;;  %v1305_v2 = vmov 0.0   ;;  %s1306_s9 = smov 32   ;;  %s1308_s24 = smov 96   ;;  %s1742_s2 = inlined_call_operand.vmem [shape: bf16[64,256], index: 2, kind: input, shape index: {}]   ;;  %s1743_s0 = inlined_call_operand.vmem [shape: f32[8,8,1], index: 0, kind: input, shape index: {}]   ;;  %s1744_s1 = inlined_call_operand.vmem [shape: bf16[1,256], index: 1, kind: input, shape index: {}]   ;;  %s1745_s3 = inlined_call_operand.vmem [shape: f32[1,256], index: 3, kind: input, shape index: {}]   ;;  %s1746_s4 = inlined_call_operand.vmem [shape: f32[8,8,64], index: 4, kind: output, shape index: {}]  }
   0x1   :  { %v1337_v0 = vld [vmem:[%s1742_s2 + $0x34] ss:$8 sps:$4 sm:$0xff]   ;;  %247 = vmatprep.mubr.bf16.mxu0 %v1304_v1  ;;  %23 = vst.msk [vmem:[#allocation2] sm:$0xff] %vm22_vm0, %v1305_v2  ;;  %1162 = vset.pattern.permute.xlu0 %v1304_v1  ;;  %v1347_v3 = vld [vmem:[%s1742_s2 + $0x30] ss:$8 sps:$4 sm:$0xff]   ;;  %v29_v7 = vld [vmem:[%s1743_s0] sm:$0xff]  ;;  %v79_v15 = vlaneseq }
   0x2   :  { %25 = vst.msk [vmem:[#allocation3] sm:$0xff] %vm24_vm1, %v1305_v2  ;;  %26 = vst.msk [vmem:[#allocation4] sm:$0xff] %vm24_vm1, %v1305_v2  ;;  %368 = vmatprep.mubr.bf16.mxu1 %v1304_v1  ;;  %1163 = vset.pattern.permute.xlu1 %v1304_v1  ;;  %v1355_v4 = vld [vmem:[%s1742_s2 + $0x24] ss:$8 sps:$4 sm:$0xff]   ;;  %v1362_v5 = vld [vmem:[%s1742_s2 + $0x20] ss:$8 sps:$4 sm:$0xff]  }
   0x3   :  { %223 = vmatprep.subr.bf16.mxu0 %v1337_v0  ;;  %344 = vmatprep.subr.bf16.mxu1 %v1337_v0  ;;  %v1369_v6 = vld [vmem:[%s1742_s2 + $0x14] ss:$8 sps:$4 sm:$0xff]   ;;  %v1379_v8 = vld [vmem:[%s1742_s2 + $0x10] ss:$8 sps:$4 sm:$0xff]   ;;  %v1389_v10 = vld [vmem:[%s1742_s2 + $0x4] ss:$8 sps:$4 sm:$0xff]  }
   0x4   :  { %224 = vmatpush1.bf16.msra.mxu0 %v1347_v3  ;;  %345 = vmatpush1.bf16.msra.mxu1 %v1347_v3  ;;  %v36_v9 = vld [vmem:[%s1743_s0 + $0x38] sm:$0xff]  ;;  %v1396_v11 = vld [vmem:[%s1742_s2] ss:$8 sps:$4 sm:$0xff]   ;;  %v80_v16 = vshrl.u32 %v79_v15, 7  ;;  %vm325_vm2 = vcmask 523520  }
   0x5   :  { %225 = vmatprep.subr.bf16.mxu0 %v1355_v4  ;;  %346 = vmatprep.subr.bf16.mxu1 %v1355_v4  ;;  %v27_v17 = vld [vmem:[%s1744_s1] sm:$0x3]  ;;  %s1307_s1 = smov 64  }
   0x6   :  { %40 = vperm.xlu0 %1162, %v29_v7   ;;  %v37_v18 = vunpack.c.l.bf16 %v27_v17  ;;  %v81_v19 = vsub.s32 0, %v80_v16  ;;  %v85_v21 = vsub.s32 2, %v80_v16  ;;  %v28_v25 = vld [vmem:[%s1745_s3] sm:$0x3]  ;;  %v120_v29 = vsub.s32 1, %v80_v16  ;;  %v35_v16 = vld [vmem:[%s1743_s0 + $0x30] sm:$0xff] }
   0x8   :  { %226 = vmatpush1.bf16.msra.mxu0 %v1362_v5  ;;  %347 = vmatpush1.bf16.msra.mxu1 %v1362_v5  ;;  %v164_v12 = vld [vmem:[#allocation2] sm:$0xff]  ;;  %v82_v20 = vrot.slane %v37_v18, %v81_v19  ;;  %v86_v23 = vrot.slane %v37_v18, %v85_v21  ;;  %v1430_v28 = vrot.slane %v28_v25, %v81_v19 }
   0x9   :  { %227 = vmatprep.subr.bf16.mxu0 %v1369_v6  ;;  %348 = vmatprep.subr.bf16.mxu1 %v1369_v6  ;;  %v165_v13 = vld [vmem:[#allocation3] sm:$0xff]  ;;  %v170_v14 = vpack.c.bf16 %v164_v12, %v164_v12  ;;  %v1437_v33 = vrot.slane %v28_v25, %v120_v29  ;;  %v166_v43 = vld [vmem:[#allocation4] sm:$0xff] }
   0xa   :  { %75 = vperm.xlu0 %1162, %v36_v9   ;;  %v1421_v24 = vrot.slane %v82_v20, %v81_v19  ;;  %v1426_v26 = vrot.slane %v86_v23, %v81_v19 }
   0xc   :  { %228 = vmatpush1.bf16.msra.mxu0 %v1379_v8  ;;  %349 = vmatpush1.bf16.msra.mxu1 %v1379_v8 }
   0xd   :  { %229 = vmatprep.subr.bf16.mxu0 %v1389_v10  ;;  %350 = vmatprep.subr.bf16.mxu1 %v1389_v10 }
   0xe   :  { %273 = vrot.lane.b32.xlu0 %v165_v13, %s1306_s9 }
  0x10   :  { %230 = vmatpush1.bf16.msra.mxu0 %v1396_v11  ;;  %351 = vmatpush1.bf16.msra.mxu1 %v1396_v11 }
  0x11   :  { %456 = vmatprep.subr.bf16.mxu0 %v1337_v0  ;;  %568 = vmatprep.subr.bf16.mxu1 %v1337_v0 }
  0x13   :  { %1119 = vmatmul.mubr.msk.bf16.vlgmr.msra.gmra.mxu0 %vm22_vm0, %v170_v14  ;;  %v30_v14 = vld [vmem:[%s1743_s0 + $0x8] sm:$0xff] }
  0x14   :  { %457 = vmatpush1.bf16.msra.mxu0 %v1347_v3  ;;  %480 = vmatprep.mubr.bf16.mxu0 %v1304_v1 }
  0x15   :  { %458 = vmatprep.subr.bf16.mxu0 %v1355_v4 }
  0x18   :  { %459 = vmatpush1.bf16.msra.mxu0 %v1362_v5 }
  0x19   :  { %460 = vmatprep.subr.bf16.mxu0 %v1369_v6 }
  0x1c   :  { %461 = vmatpush1.bf16.msra.mxu0 %v1379_v8 }
  0x1d   :  { %462 = vmatprep.subr.bf16.mxu0 %v1389_v10 }
  0x20   :  { %463 = vmatpush1.bf16.msra.mxu0 %v1396_v11 }
  0x21   :  { %678 = vmatprep.subr.bf16.mxu0 %v1337_v0 }
  0x81   :  { %v1419_v22 = vpop.permute.xlu0 %40 }
  0x82   :  { %v97_v27 = vmul.f32 %v1421_v24, %v1419_v22 }
  0x84   :  { %v124_v32 = vadd.f32 %v1430_v28, %v97_v27 }
  0x85   :  { %v1432_v30 = vpop.permute.xlu0 %75 }
  0x86   :  { %v112_v31 = vmul.f32 %v1426_v26, %v1432_v30 }
  0x88   :  { %v139_v36 = vadd.f32 %v1437_v33, %v112_v31 }
  0x89   :  { %v274_v56 = vpop.permute.xlu0 %273 }
  0xd3   :  { %v249_v34 = vpop.f32.mrf.mxu0 }
  0xd4   :  { %v256_v35 = vadd.f32 %v249_v34, %v124_v32 }
  0xd5   :  { %v251_v37 = vpop.f32.mrf.mxu0 }
  0xd6   :  { %1176 = vtanh.f32 %v256_v35  ;;  %v257_v38 = vadd.f32 %v251_v37, %v139_v36  ;;  %v1120_v44 = vmul.f32 -1.442695, %v256_v35 }
  0xd7   :  { %v253_v39 = vpop.f32.mrf.mxu0 }
  0xd8   :  { %1178 = vtanh.f32 %v257_v38  ;;  %v1121_v45 = vmul.f32 -1.442695, %v257_v38 }
  0xd9   :  { %v254_v40 = vpop.f32.mrf.mxu0  ;;  %1180 = vpow2.f32 %v1120_v44 }
  0xda   :  { %1182 = vpow2.f32 %v1121_v45 }
  0xe3   :  { %v1177_v41 = vpop.eup %1176 }
  0xe4   :  { %278 = vrot.lane.b32.xlu1 %v1177_v41, %s1307_s1 }
  0xe5   :  { %v1179_v42 = vpop.eup %1178 }
  0xe6   :  { %v1181_v46 = vpop.eup %1180 }
  0xe7   :  { %v264_v47 = vadd.f32 1.0, %v1181_v46  ;;  %v1183_v48 = vpop.eup %1182 }
  0xe8   :  { %293 = vrot.lane.b32.xlu1 %v1179_v42, %s1307_s1  ;;  %v265_v49 = vadd.f32 1.0, %v1183_v48 }
  0xe9   :  { %1184 = vrcp.f32 %v264_v47 }
  0xea   :  { %1186 = vrcp.f32 %v265_v49 }
  0xec   :  { %288 = vrot.lane.b32.xlu1 %v166_v43, %s1306_s9 }
  0xf6   :  { %v1185_v50 = vpop.eup %1184 }
  0xf7   :  { %v1187_v53 = vpop.eup %1186  ;;  %v276_v57 = vmul.f32 %v1185_v50, %v274_v56 }
 0x156   :  { %v279_v51 = vpop.permute.xlu1 %278 }
 0x157   :  { %v281_v52 = vmul.f32 %v1185_v50, %v279_v51 }
 0x159   :  { %283 = vrot.lane.b32.xlu0 %v281_v52, %s1306_s9 }
 0x15a   :  { %v294_v54 = vpop.permute.xlu1 %293 }
 0x15b   :  { %v296_v55 = vmul.f32 %v1187_v53, %v294_v54 }
 0x15d   :  { %298 = vrot.lane.b32.xlu1 %v296_v55, %s1306_s9 }
 0x15e   :  { %v289_v58 = vpop.permute.xlu1 %288 }
 0x15f   :  { %v291_v61 = vmul.f32 %v1187_v53, %v289_v58 }
 0x1cb   :  { %v284_v59 = vpop.permute.xlu0 %283 }
 0x1cc   :  { %v1445_v60 = vadd.f32 %v284_v59, %v276_v57 }
 0x1ce   :  { %1188 = vtanh.f32 %v1445_v60 }
 0x1cf   :  { %v299_v62 = vpop.permute.xlu1 %298 }
 0x1d0   :  { %v1448_v63 = vadd.f32 %v299_v62, %v291_v61 }
 0x1d2   :  { %1190 = vtanh.f32 %v1448_v63 }
 0x1db   :  { %v1189_v2 = vpop.eup %1188 }
 0x1dc   :  { %304 = vrot.lane.b32.xlu0 %v1189_v2, %s1307_s1 }
 0x1df   :  { %v1191_v7 = vpop.eup %1190 }
 0x1e0   :  { %310 = vrot.lane.b32.xlu1 %v1191_v7, %s1307_s1 }
 0x24e   :  { %v305_v9 = vpop.permute.xlu0 %304 }
 0x24f   :  { %v307_v12 = vmul.f32 %v1185_v50, %v305_v9  ;;  %v34_v9 = vld [vmem:[%s1743_s0 + $0x28] sm:$0xff] }
 0x251   :  { %315 = vrot.lane.b32.xlu0 %v307_v12, %s1306_s9 }
 0x252   :  { %v311_v13 = vpop.permute.xlu1 %310 }
 0x253   :  { %v313_v15 = vmul.f32 %v1187_v53, %v311_v13 }
 0x255   :  { %321 = vrot.lane.b32.xlu1 %v313_v15, %s1307_s1  ;;  %45 = vperm.xlu0 %1162, %v30_v14  }
 0x259   :  { %70 = vperm.xlu1 %1163, %v35_v16  }
 0x2c3   :  { %v316_v17 = vpop.permute.xlu0 %315 }
 0x2c4   :  { %319 = vst.msk [vmem:[%s1746_s4] sm:$0xff] %vm24_vm1, %v316_v17 }
 0x2c7   :  { %v322_v18 = vpop.permute.xlu1 %321 }
 0x2c8   :  { %1122 = vst.msk [vmem:[%s1746_s4 + $0x38] sm:$0xff] %vm325_vm2, %v322_v18  ;;  %v327_v19 = vsel %vm24_vm1, %v316_v17, %v322_v18 }
 0x2c9   :  { %v332_v20 = vpack.c.bf16 %v327_v19, %v327_v19 }
 0x2cb   :  { %1123 = vmatmul.mubr.msk.bf16.vlgmr.msra.gmra.mxu1 %vm22_vm0, %v332_v20 }
 0x2cc   :  { %569 = vmatpush1.bf16.msra.mxu1 %v1347_v3  ;;  %592 = vmatprep.mubr.bf16.mxu1 %v1304_v1 }
 0x2cd   :  { %570 = vmatprep.subr.bf16.mxu1 %v1355_v4 }
 0x2d0   :  { %571 = vmatpush1.bf16.msra.mxu1 %v1362_v5  ;;  %v1480_v21 = vpop.permute.xlu0 %45 }
 0x2d1   :  { %572 = vmatprep.subr.bf16.mxu1 %v1369_v6  ;;  %v99_v25 = vmul.f32 %v1421_v24, %v1480_v21 }
 0x2d3   :  { %v126_v29 = vadd.f32 %v1430_v28, %v99_v25 }
 0x2d4   :  { %573 = vmatpush1.bf16.msra.mxu1 %v1379_v8  ;;  %v1482_v23 = vpop.permute.xlu1 %70 }
 0x2d5   :  { %574 = vmatprep.subr.bf16.mxu1 %v1389_v10  ;;  %v110_v27 = vmul.f32 %v1426_v26, %v1482_v23 }
 0x2d7   :  { %v137_v31 = vadd.f32 %v1437_v33, %v110_v27 }
 0x2d8   :  { %575 = vmatpush1.bf16.msra.mxu1 %v1396_v11 }
 0x2d9   :  { %786 = vmatprep.subr.bf16.mxu1 %v1337_v0 }
 0x38b   :  { %v370_v32 = vpop.f32.mrf.mxu1 }
 0x38c   :  { %v377_v34 = vadd.f32 %v370_v32, %v126_v29 }
 0x38d   :  { %v372_v35 = vpop.f32.mrf.mxu1 }
 0x38e   :  { %1192 = vtanh.f32 %v377_v34  ;;  %v378_v36 = vadd.f32 %v372_v35, %v137_v31  ;;  %v1124_v41 = vmul.f32 -1.442695, %v377_v34 }
 0x38f   :  { %v374_v37 = vpop.f32.mrf.mxu1 }
 0x390   :  { %1194 = vtanh.f32 %v378_v36  ;;  %v1125_v42 = vmul.f32 -1.442695, %v378_v36 }
 0x391   :  { %v375_v38 = vpop.f32.mrf.mxu1  ;;  %1196 = vpow2.f32 %v1124_v41 }
 0x392   :  { %1198 = vpow2.f32 %v1125_v42 }
 0x39b   :  { %v1193_v39 = vpop.eup %1192 }
 0x39c   :  { %395 = vrot.lane.b32.xlu0 %v1193_v39, %s1307_s1 }
 0x39d   :  { %v1195_v40 = vpop.eup %1194 }
 0x39e   :  { %406 = vrot.lane.b32.xlu1 %v1195_v40, %s1307_s1  ;;  %v1197_v43 = vpop.eup %1196 }
 0x39f   :  { %v1199_v44 = vpop.eup %1198  ;;  %v385_v45 = vadd.f32 1.0, %v1197_v43 }
 0x3a0   :  { %v386_v46 = vadd.f32 1.0, %v1199_v44 }
 0x3a1   :  { %1200 = vrcp.f32 %v385_v45 }
 0x3a2   :  { %1202 = vrcp.f32 %v386_v46 }
 0x3ae   :  { %v1201_v47 = vpop.eup %1200 }
 0x3af   :  { %v1203_v50 = vpop.eup %1202  ;;  %v393_v53 = vmul.f32 %v1201_v47, %v1445_v60 }
 0x3b0   :  { %v404_v56 = vmul.f32 %v1203_v50, %v1448_v63  ;;  %v31_v63 = vld [vmem:[%s1743_s0 + $0x10] sm:$0xff] }
 0x40e   :  { %v396_v48 = vpop.permute.xlu0 %395 }
 0x40f   :  { %v398_v49 = vmul.f32 %v1201_v47, %v396_v48 }
 0x410   :  { %v407_v51 = vpop.permute.xlu1 %406 }
 0x411   :  { %400 = vrot.lane.b32.xlu0 %v398_v49, %s1306_s9  ;;  %v409_v52 = vmul.f32 %v1203_v50, %v407_v51 }
 0x413   :  { %411 = vrot.lane.b32.xlu1 %v409_v52, %s1306_s9 }
 0x483   :  { %v401_v54 = vpop.permute.xlu0 %400 }
 0x484   :  { %v1495_v55 = vadd.f32 %v401_v54, %v393_v53 }
 0x485   :  { %v412_v57 = vpop.permute.xlu1 %411 }
 0x486   :  { %1204 = vtanh.f32 %v1495_v55  ;;  %v1499_v58 = vadd.f32 %v412_v57, %v404_v56 }
 0x488   :  { %1206 = vtanh.f32 %v1499_v58 }
 0x493   :  { %v1205_v59 = vpop.eup %1204 }
 0x494   :  { %417 = vrot.lane.b32.xlu0 %v1205_v59, %s1307_s1 }
 0x495   :  { %v1207_v61 = vpop.eup %1206 }
 0x496   :  { %423 = vrot.lane.b32.xlu1 %v1207_v61, %s1307_s1 }
 0x506   :  { %v418_v62 = vpop.permute.xlu0 %417 }
 0x507   :  { %v420_v60 = vmul.f32 %v1201_v47, %v418_v62 }
 0x508   :  { %v424_v2 = vpop.permute.xlu1 %423 }
 0x509   :  { %428 = vrot.lane.b32.xlu0 %v420_v60, %s1306_s9  ;;  %v426_v7 = vmul.f32 %v1203_v50, %v424_v2  ;;  %v33_v2 = vld [vmem:[%s1743_s0 + $0x20] sm:$0xff] }
 0x50b   :  { %434 = vrot.lane.b32.xlu1 %v426_v7, %s1307_s1 }
 0x50d   :  { %50 = vperm.xlu0 %1162, %v31_v63  }
 0x50f   :  { %65 = vperm.xlu1 %1163, %v34_v9  }
 0x57b   :  { %v429_v12 = vpop.permute.xlu0 %428 }
 0x57c   :  { %1126 = vst.msk [vmem:[%s1746_s4 + $0x8] sm:$0xff] %vm24_vm1, %v429_v12 }
 0x57d   :  { %v435_v13 = vpop.permute.xlu1 %434 }
 0x57e   :  { %1127 = vst.msk [vmem:[%s1746_s4 + $0x30] sm:$0xff] %vm325_vm2, %v435_v13  ;;  %v439_v14 = vsel %vm24_vm1, %v429_v12, %v435_v13 }
 0x57f   :  { %v444_v15 = vpack.c.bf16 %v439_v14, %v439_v14 }
 0x581   :  { %1128 = vmatmul.mubr.msk.bf16.vlgmr.msra.gmra.mxu0 %vm22_vm0, %v444_v15 }
 0x582   :  { %679 = vmatpush1.bf16.msra.mxu0 %v1347_v3  ;;  %702 = vmatprep.mubr.bf16.mxu0 %v1304_v1 }
 0x583   :  { %680 = vmatprep.subr.bf16.mxu0 %v1355_v4 }
 0x586   :  { %681 = vmatpush1.bf16.msra.mxu0 %v1362_v5 }
 0x587   :  { %682 = vmatprep.subr.bf16.mxu0 %v1369_v6 }
 0x588   :  { %v1531_v16 = vpop.permute.xlu0 %50 }
 0x589   :  { %v101_v18 = vmul.f32 %v1421_v24, %v1531_v16 }
 0x58a   :  { %683 = vmatpush1.bf16.msra.mxu0 %v1379_v8  ;;  %v1533_v17 = vpop.permute.xlu1 %65 }
 0x58b   :  { %684 = vmatprep.subr.bf16.mxu0 %v1389_v10  ;;  %v108_v19 = vmul.f32 %v1426_v26, %v1533_v17  ;;  %v128_v20 = vadd.f32 %v1430_v28, %v101_v18 }
 0x58d   :  { %v135_v29 = vadd.f32 %v1437_v33, %v108_v19 }
 0x58e   :  { %685 = vmatpush1.bf16.msra.mxu0 %v1396_v11 }
 0x58f   :  { %894 = vmatprep.subr.bf16.mxu0 %v1337_v0 }
 0x641   :  { %v482_v25 = vpop.f32.mrf.mxu0 }
 0x642   :  { %v489_v27 = vadd.f32 %v482_v25, %v128_v20 }
 0x643   :  { %v484_v31 = vpop.f32.mrf.mxu0 }
 0x644   :  { %1208 = vtanh.f32 %v489_v27  ;;  %v490_v32 = vadd.f32 %v484_v31, %v135_v29  ;;  %v1129_v38 = vmul.f32 -1.442695, %v489_v27 }
 0x645   :  { %v486_v34 = vpop.f32.mrf.mxu0 }
 0x646   :  { %1210 = vtanh.f32 %v490_v32  ;;  %v1130_v39 = vmul.f32 -1.442695, %v490_v32 }
 0x647   :  { %v487_v35 = vpop.f32.mrf.mxu0  ;;  %1212 = vpow2.f32 %v1129_v38 }
 0x648   :  { %1214 = vpow2.f32 %v1130_v39 }
 0x651   :  { %v1209_v36 = vpop.eup %1208 }
 0x652   :  { %507 = vrot.lane.b32.xlu0 %v1209_v36, %s1307_s1 }
 0x653   :  { %v1211_v37 = vpop.eup %1210 }
 0x654   :  { %518 = vrot.lane.b32.xlu1 %v1211_v37, %s1307_s1  ;;  %v1213_v40 = vpop.eup %1212 }
 0x655   :  { %v1215_v41 = vpop.eup %1214  ;;  %v497_v42 = vadd.f32 1.0, %v1213_v40 }
 0x656   :  { %v498_v43 = vadd.f32 1.0, %v1215_v41 }
 0x657   :  { %1216 = vrcp.f32 %v497_v42 }
 0x658   :  { %1218 = vrcp.f32 %v498_v43 }
 0x664   :  { %v1217_v44 = vpop.eup %1216 }
 0x665   :  { %v1219_v47 = vpop.eup %1218  ;;  %v505_v50 = vmul.f32 %v1217_v44, %v1495_v55 }
 0x666   :  { %v516_v53 = vmul.f32 %v1219_v47, %v1499_v58  ;;  %v32_v58 = vld [vmem:[%s1743_s0 + $0x18] sm:$0xff] }
 0x6c4   :  { %v508_v45 = vpop.permute.xlu0 %507 }
 0x6c5   :  { %v510_v46 = vmul.f32 %v1217_v44, %v508_v45 }
 0x6c6   :  { %v519_v48 = vpop.permute.xlu1 %518 }
 0x6c7   :  { %512 = vrot.lane.b32.xlu0 %v510_v46, %s1306_s9  ;;  %v521_v49 = vmul.f32 %v1219_v47, %v519_v48 }
 0x6c9   :  { %523 = vrot.lane.b32.xlu1 %v521_v49, %s1306_s9 }
 0x739   :  { %v513_v51 = vpop.permute.xlu0 %512 }
 0x73a   :  { %v1546_v52 = vadd.f32 %v513_v51, %v505_v50 }
 0x73b   :  { %v524_v54 = vpop.permute.xlu1 %523 }
 0x73c   :  { %1220 = vtanh.f32 %v1546_v52  ;;  %v1550_v56 = vadd.f32 %v524_v54, %v516_v53 }
 0x73e   :  { %1222 = vtanh.f32 %v1550_v56 }
 0x749   :  { %v1221_v57 = vpop.eup %1220 }
 0x74a   :  { %529 = vrot.lane.b32.xlu0 %v1221_v57, %s1307_s1 }
 0x74b   :  { %v1223_v59 = vpop.eup %1222 }
 0x74c   :  { %535 = vrot.lane.b32.xlu1 %v1223_v59, %s1307_s1 }
 0x7bc   :  { %v530_v61 = vpop.permute.xlu0 %529 }
 0x7bd   :  { %v532_v55 = vmul.f32 %v1217_v44, %v530_v61 }
 0x7be   :  { %v536_v62 = vpop.permute.xlu1 %535 }
 0x7bf   :  { %540 = vrot.lane.b32.xlu0 %v532_v55, %s1306_s9  ;;  %v538_v60 = vmul.f32 %v1219_v47, %v536_v62 }
 0x7c1   :  { %546 = vrot.lane.b32.xlu1 %v538_v60, %s1307_s1 }
 0x7c3   :  { %55 = vperm.xlu0 %1162, %v32_v58  }
 0x7c5   :  { %60 = vperm.xlu1 %1163, %v33_v2  }
 0x831   :  { %v541_v7 = vpop.permute.xlu0 %540 }
 0x832   :  { %1131 = vst.msk [vmem:[%s1746_s4 + $0x10] sm:$0xff] %vm24_vm1, %v541_v7 }
 0x833   :  { %v547_v63 = vpop.permute.xlu1 %546 }
 0x834   :  { %1132 = vst.msk [vmem:[%s1746_s4 + $0x28] sm:$0xff] %vm325_vm2, %v547_v63  ;;  %v551_v9 = vsel %vm24_vm1, %v541_v7, %v547_v63 }
 0x835   :  { %v556_v12 = vpack.c.bf16 %v551_v9, %v551_v9 }
 0x837   :  { %1133 = vmatmul.mubr.msk.bf16.vlgmr.msra.gmra.mxu1 %vm22_vm0, %v556_v12 }
 0x838   :  { %787 = vmatpush1.bf16.msra.mxu1 %v1347_v3  ;;  %810 = vmatprep.mubr.bf16.mxu1 %v1304_v1 }
 0x839   :  { %788 = vmatprep.subr.bf16.mxu1 %v1355_v4 }
 0x83c   :  { %789 = vmatpush1.bf16.msra.mxu1 %v1362_v5 }
 0x83d   :  { %790 = vmatprep.subr.bf16.mxu1 %v1369_v6 }
 0x83e   :  { %v1582_v13 = vpop.permute.xlu0 %55 }
 0x83f   :  { %v103_v15 = vmul.f32 %v1421_v24, %v1582_v13  ;;  %v104_v63 = vmul.f32 %v1426_v26, %v1582_v13 }
 0x840   :  { %791 = vmatpush1.bf16.msra.mxu1 %v1379_v8  ;;  %v1584_v14 = vpop.permute.xlu1 %60 }
 0x841   :  { %792 = vmatprep.subr.bf16.mxu1 %v1389_v10  ;;  %v106_v18 = vmul.f32 %v1426_v26, %v1584_v14  ;;  %v130_v19 = vadd.f32 %v1430_v28, %v103_v15  ;;  %v105_v7 = vmul.f32 %v1421_v24, %v1584_v14 }
 0x843   :  { %v133_v27 = vadd.f32 %v1437_v33, %v106_v18  ;;  %v132_v9 = vadd.f32 %v1430_v28, %v105_v7  ;;  %v131_v18 = vadd.f32 %v1437_v33, %v104_v63 }
 0x844   :  { %793 = vmatpush1.bf16.msra.mxu1 %v1396_v11 }
 0x845   :  { %1002 = vmatprep.subr.bf16.mxu1 %v1337_v0 }
 0x8f7   :  { %v594_v20 = vpop.f32.mrf.mxu1 }
 0x8f8   :  { %v601_v25 = vadd.f32 %v594_v20, %v130_v19 }
 0x8f9   :  { %v596_v29 = vpop.f32.mrf.mxu1 }
 0x8fa   :  { %1224 = vtanh.f32 %v601_v25  ;;  %v602_v31 = vadd.f32 %v596_v29, %v133_v27  ;;  %v1134_v36 = vmul.f32 -1.442695, %v601_v25 }
 0x8fb   :  { %v598_v0 = vpop.f32.mrf.mxu1 }
 0x8fc   :  { %1226 = vtanh.f32 %v602_v31  ;;  %v1135_v37 = vmul.f32 -1.442695, %v602_v31 }
 0x8fd   :  { %v599_v32 = vpop.f32.mrf.mxu1  ;;  %1228 = vpow2.f32 %v1134_v36 }
 0x8fe   :  { %1230 = vpow2.f32 %v1135_v37 }
 0x907   :  { %v1225_v34 = vpop.eup %1224 }
 0x908   :  { %619 = vrot.lane.b32.xlu0 %v1225_v34, %s1307_s1 }
 0x909   :  { %v1227_v35 = vpop.eup %1226 }
 0x90a   :  { %630 = vrot.lane.b32.xlu1 %v1227_v35, %s1307_s1  ;;  %v1229_v38 = vpop.eup %1228 }
 0x90b   :  { %v1231_v39 = vpop.eup %1230  ;;  %v609_v40 = vadd.f32 1.0, %v1229_v38 }
 0x90c   :  { %v610_v41 = vadd.f32 1.0, %v1231_v39 }
 0x90d   :  { %1232 = vrcp.f32 %v609_v40 }
 0x90e   :  { %1234 = vrcp.f32 %v610_v41 }
 0x91a   :  { %v1233_v42 = vpop.eup %1232 }
 0x91b   :  { %v1235_v45 = vpop.eup %1234  ;;  %v617_v48 = vmul.f32 %v1233_v42, %v1546_v52 }
 0x91c   :  { %v628_v51 = vmul.f32 %v1235_v45, %v1550_v56 }
 0x97a   :  { %v620_v43 = vpop.permute.xlu0 %619 }
 0x97b   :  { %v622_v44 = vmul.f32 %v1233_v42, %v620_v43 }
 0x97c   :  { %v631_v46 = vpop.permute.xlu1 %630 }
 0x97d   :  { %624 = vrot.lane.b32.xlu0 %v622_v44, %s1306_s9  ;;  %v633_v47 = vmul.f32 %v1235_v45, %v631_v46 }
 0x97f   :  { %635 = vrot.lane.b32.xlu1 %v633_v47, %s1306_s9 }
 0x9ef   :  { %v625_v49 = vpop.permute.xlu0 %624 }
 0x9f0   :  { %v1597_v50 = vadd.f32 %v625_v49, %v617_v48 }
 0x9f1   :  { %v636_v53 = vpop.permute.xlu1 %635 }
 0x9f2   :  { %1236 = vtanh.f32 %v1597_v50  ;;  %v1601_v54 = vadd.f32 %v636_v53, %v628_v51 }
 0x9f4   :  { %1238 = vtanh.f32 %v1601_v54 }
 0x9ff   :  { %v1237_v57 = vpop.eup %1236 }
 0xa00   :  { %641 = vrot.lane.b32.xlu0 %v1237_v57, %s1307_s1 }
 0xa01   :  { %v1239_v59 = vpop.eup %1238 }
 0xa02   :  { %647 = vrot.lane.b32.xlu1 %v1239_v59, %s1307_s1 }
 0xa72   :  { %v642_v61 = vpop.permute.xlu0 %641 }
 0xa73   :  { %v644_v52 = vmul.f32 %v1233_v42, %v642_v61 }
 0xa74   :  { %v648_v55 = vpop.permute.xlu1 %647 }
 0xa75   :  { %652 = vrot.lane.b32.xlu0 %v644_v52, %s1306_s9  ;;  %v650_v62 = vmul.f32 %v1235_v45, %v648_v55  ;;  %v107_v55 = vmul.f32 %v1421_v24, %v1533_v17 }
 0xa77   :  { %658 = vrot.lane.b32.xlu1 %v650_v62, %s1307_s1 }
 0xae7   :  { %v653_v56 = vpop.permute.xlu0 %652 }
 0xae8   :  { %1136 = vst.msk [vmem:[%s1746_s4 + $0x18] sm:$0xff] %vm24_vm1, %v653_v56 }
 0xae9   :  { %v659_v60 = vpop.permute.xlu1 %658 }
 0xaea   :  { %1137 = vst.msk [vmem:[%s1746_s4 + $0x20] sm:$0xff] %vm325_vm2, %v659_v60  ;;  %v663_v58 = vsel %vm24_vm1, %v653_v56, %v659_v60 }
 0xaeb   :  { %v666_v2 = vpack.c.bf16 %v663_v58, %v663_v58 }
 0xaed   :  { %1138 = vmatmul.mubr.msk.bf16.vlgmr.msra.gmra.mxu0 %vm22_vm0, %v666_v2 }
 0xaee   :  { %895 = vmatpush1.bf16.msra.mxu0 %v1347_v3  ;;  %918 = vmatprep.mubr.bf16.mxu0 %v1304_v1 }
 0xaef   :  { %896 = vmatprep.subr.bf16.mxu0 %v1355_v4 }
 0xaf2   :  { %897 = vmatpush1.bf16.msra.mxu0 %v1362_v5 }
 0xaf3   :  { %898 = vmatprep.subr.bf16.mxu0 %v1369_v6 }
 0xaf6   :  { %899 = vmatpush1.bf16.msra.mxu0 %v1379_v8 }
 0xaf7   :  { %900 = vmatprep.subr.bf16.mxu0 %v1389_v10 }
 0xafa   :  { %901 = vmatpush1.bf16.msra.mxu0 %v1396_v11 }
 0xbad   :  { %v704_v12 = vpop.f32.mrf.mxu0 }
 0xbae   :  { %v711_v15 = vadd.f32 %v704_v12, %v132_v9 }
 0xbaf   :  { %v706_v19 = vpop.f32.mrf.mxu0 }
 0xbb0   :  { %1240 = vtanh.f32 %v711_v15  ;;  %v712_v20 = vadd.f32 %v706_v19, %v131_v18  ;;  %v1139_v14 = vmul.f32 -1.442695, %v711_v15 }
 0xbb1   :  { %v708_v25 = vpop.f32.mrf.mxu0 }
 0xbb2   :  { %1242 = vtanh.f32 %v712_v20  ;;  %v1140_v13 = vmul.f32 -1.442695, %v712_v20 }
 0xbb3   :  { %v709_v27 = vpop.f32.mrf.mxu0  ;;  %1244 = vpow2.f32 %v1139_v14 }
 0xbb4   :  { %1246 = vpow2.f32 %v1140_v13 }
 0xbbd   :  { %v1241_v29 = vpop.eup %1240 }
 0xbbe   :  { %729 = vrot.lane.b32.xlu0 %v1241_v29, %s1307_s1 }
 0xbbf   :  { %v1243_v31 = vpop.eup %1242 }
 0xbc0   :  { %740 = vrot.lane.b32.xlu1 %v1243_v31, %s1307_s1  ;;  %v1245_v0 = vpop.eup %1244 }
 0xbc1   :  { %v1247_v32 = vpop.eup %1246  ;;  %v719_v34 = vadd.f32 1.0, %v1245_v0 }
 0xbc2   :  { %v720_v35 = vadd.f32 1.0, %v1247_v32 }
 0xbc3   :  { %1248 = vrcp.f32 %v719_v34 }
 0xbc4   :  { %1250 = vrcp.f32 %v720_v35 }
 0xbd0   :  { %v1249_v36 = vpop.eup %1248 }
 0xbd1   :  { %v1251_v39 = vpop.eup %1250  ;;  %v727_v42 = vmul.f32 %v1249_v36, %v1597_v50 }
 0xbd2   :  { %v738_v45 = vmul.f32 %v1251_v39, %v1601_v54 }
 0xc30   :  { %v730_v37 = vpop.permute.xlu0 %729 }
 0xc31   :  { %v732_v38 = vmul.f32 %v1249_v36, %v730_v37 }
 0xc32   :  { %v741_v40 = vpop.permute.xlu1 %740 }
 0xc33   :  { %734 = vrot.lane.b32.xlu0 %v732_v38, %s1306_s9  ;;  %v743_v41 = vmul.f32 %v1251_v39, %v741_v40 }
 0xc35   :  { %745 = vrot.lane.b32.xlu1 %v743_v41, %s1306_s9 }
 0xca5   :  { %v735_v43 = vpop.permute.xlu0 %734 }
 0xca6   :  { %v1637_v44 = vadd.f32 %v735_v43, %v727_v42  ;;  %v109_v42 = vmul.f32 %v1421_v24, %v1482_v23  ;;  %v100_v43 = vmul.f32 %v1426_v26, %v1480_v21 }
 0xca7   :  { %v746_v46 = vpop.permute.xlu1 %745 }
 0xca8   :  { %1252 = vtanh.f32 %v1637_v44  ;;  %v1641_v47 = vadd.f32 %v746_v46, %v738_v45 }
 0xcaa   :  { %1254 = vtanh.f32 %v1641_v47 }
 0xcb5   :  { %v1253_v48 = vpop.eup %1252 }
 0xcb6   :  { %751 = vrot.lane.b32.xlu0 %v1253_v48, %s1307_s1 }
 0xcb7   :  { %v1255_v49 = vpop.eup %1254 }
 0xcb8   :  { %757 = vrot.lane.b32.xlu1 %v1255_v49, %s1307_s1 }
 0xd28   :  { %v752_v51 = vpop.permute.xlu0 %751 }
 0xd29   :  { %v754_v50 = vmul.f32 %v1249_v36, %v752_v51 }
 0xd2a   :  { %v758_v53 = vpop.permute.xlu1 %757 }
 0xd2b   :  { %762 = vrot.lane.b32.xlu0 %v754_v50, %s1306_s9  ;;  %v760_v57 = vmul.f32 %v1251_v39, %v758_v53 }
 0xd2d   :  { %767 = vrot.lane.b32.xlu1 %v760_v57, %s1307_s1 }
 0xd9d   :  { %v763_v54 = vpop.permute.xlu0 %762 }
 0xd9e   :  { %1141 = vst.msk [vmem:[%s1746_s4 + $0x20] sm:$0xff] %vm24_vm1, %v763_v54 }
 0xd9f   :  { %v768_v59 = vpop.permute.xlu1 %767 }
 0xda0   :  { %1142 = vst.msk [vmem:[%s1746_s4 + $0x18] sm:$0xff] %vm325_vm2, %v768_v59  ;;  %v771_v61 = vsel %vm24_vm1, %v763_v54, %v768_v59 }
 0xda1   :  { %v774_v52 = vpack.c.bf16 %v771_v61, %v771_v61 }
 0xda3   :  { %1143 = vmatmul.mubr.msk.bf16.vlgmr.msra.gmra.mxu1 %vm22_vm0, %v774_v52 }
 0xda4   :  { %1003 = vmatpush1.bf16.msra.mxu1 %v1347_v3  ;;  %1026 = vmatprep.mubr.bf16.mxu1 %v1304_v1  ;;  %v102_v3 = vmul.f32 %v1426_v26, %v1531_v16  ;;  %v134_v1 = vadd.f32 %v1430_v28, %v107_v55 }
 0xda5   :  { %1004 = vmatprep.subr.bf16.mxu1 %v1355_v4 }
 0xda8   :  { %1005 = vmatpush1.bf16.msra.mxu1 %v1362_v5  ;;  %v129_v5 = vadd.f32 %v1437_v33, %v102_v3 }
 0xda9   :  { %1006 = vmatprep.subr.bf16.mxu1 %v1369_v6 }
 0xdac   :  { %1007 = vmatpush1.bf16.msra.mxu1 %v1379_v8 }
 0xdad   :  { %1008 = vmatprep.subr.bf16.mxu1 %v1389_v10 }
 0xdb0   :  { %1009 = vmatpush1.bf16.msra.mxu1 %v1396_v11 }
 0xe63   :  { %v812_v62 = vpop.f32.mrf.mxu1 }
 0xe64   :  { %v819_v4 = vadd.f32 %v812_v62, %v134_v1 }
 0xe65   :  { %v814_v56 = vpop.f32.mrf.mxu1 }
 0xe66   :  { %1256 = vtanh.f32 %v819_v4  ;;  %v820_v6 = vadd.f32 %v814_v56, %v129_v5  ;;  %v1144_v17 = vmul.f32 -1.442695, %v819_v4 }
 0xe67   :  { %v816_v8 = vpop.f32.mrf.mxu1 }
 0xe68   :  { %1258 = vtanh.f32 %v820_v6  ;;  %v1145_v16 = vmul.f32 -1.442695, %v820_v6 }
 0xe69   :  { %v817_v10 = vpop.f32.mrf.mxu1  ;;  %1260 = vpow2.f32 %v1144_v17 }
 0xe6a   :  { %1262 = vpow2.f32 %v1145_v16 }
 0xe73   :  { %v1257_v60 = vpop.eup %1256 }
 0xe74   :  { %837 = vrot.lane.b32.xlu0 %v1257_v60, %s1307_s1 }
 0xe75   :  { %v1259_v11 = vpop.eup %1258 }
 0xe76   :  { %848 = vrot.lane.b32.xlu1 %v1259_v11, %s1307_s1  ;;  %v1261_v58 = vpop.eup %1260 }
 0xe77   :  { %v1263_v2 = vpop.eup %1262  ;;  %v827_v7 = vadd.f32 1.0, %v1261_v58 }
 0xe78   :  { %v828_v63 = vadd.f32 1.0, %v1263_v2 }
 0xe79   :  { %1264 = vrcp.f32 %v827_v7 }
 0xe7a   :  { %1266 = vrcp.f32 %v828_v63 }
 0xe86   :  { %v1265_v9 = vpop.eup %1264 }
 0xe87   :  { %v1267_v18 = vpop.eup %1266  ;;  %v835_v25 = vmul.f32 %v1265_v9, %v1637_v44  ;;  %v136_v44 = vadd.f32 %v1430_v28, %v109_v42 }
 0xe88   :  { %v846_v31 = vmul.f32 %v1267_v18, %v1641_v47  ;;  %v127_v47 = vadd.f32 %v1437_v33, %v100_v43 }
 0xee6   :  { %v838_v12 = vpop.permute.xlu0 %837 }
 0xee7   :  { %v840_v15 = vmul.f32 %v1265_v9, %v838_v12 }
 0xee8   :  { %v849_v19 = vpop.permute.xlu1 %848 }
 0xee9   :  { %842 = vrot.lane.b32.xlu0 %v840_v15, %s1306_s9  ;;  %v851_v20 = vmul.f32 %v1267_v18, %v849_v19  ;;  %v111_v19 = vmul.f32 %v1421_v24, %v1432_v30 }
 0xeeb   :  { %853 = vrot.lane.b32.xlu1 %v851_v20, %s1306_s9  ;;  %v98_v20 = vmul.f32 %v1426_v26, %v1419_v22 }
 0xf5b   :  { %v843_v27 = vpop.permute.xlu0 %842 }
 0xf5c   :  { %v845_v29 = vadd.f32 %v843_v27, %v835_v25  ;;  %v138_v25 = vadd.f32 %v1430_v28, %v111_v19 }
 0xf5d   :  { %v854_v14 = vpop.permute.xlu1 %853 }
 0xf5e   :  { %1268 = vtanh.f32 %v845_v29  ;;  %v856_v13 = vadd.f32 %v854_v14, %v846_v31  ;;  %v125_v31 = vadd.f32 %v1437_v33, %v98_v20 }
 0xf60   :  { %1270 = vtanh.f32 %v856_v13 }
 0xf6b   :  { %v1269_v0 = vpop.eup %1268 }
 0xf6c   :  { %859 = vrot.lane.b32.xlu0 %v1269_v0, %s1307_s1 }
 0xf6d   :  { %v1271_v32 = vpop.eup %1270 }
 0xf6e   :  { %865 = vrot.lane.b32.xlu1 %v1271_v32, %s1307_s1 }
 0xfde   :  { %v860_v34 = vpop.permute.xlu0 %859 }
 0xfdf   :  { %v862_v35 = vmul.f32 %v1265_v9, %v860_v34 }
 0xfe0   :  { %v866_v36 = vpop.permute.xlu1 %865 }
 0xfe1   :  { %870 = vrot.lane.b32.xlu0 %v862_v35, %s1306_s9  ;;  %v868_v37 = vmul.f32 %v1267_v18, %v866_v36 }
 0xfe3   :  { %875 = vrot.lane.b32.xlu1 %v868_v37, %s1307_s1 }
0x1053   :  { %v871_v38 = vpop.permute.xlu0 %870 }
0x1054   :  { %1146 = vst.msk [vmem:[%s1746_s4 + $0x28] sm:$0xff] %vm24_vm1, %v871_v38 }
0x1055   :  { %v876_v39 = vpop.permute.xlu1 %875 }
0x1056   :  { %1147 = vst.msk [vmem:[%s1746_s4 + $0x10] sm:$0xff] %vm325_vm2, %v876_v39  ;;  %v879_v40 = vsel %vm24_vm1, %v871_v38, %v876_v39 }
0x1057   :  { %v882_v41 = vpack.c.bf16 %v879_v40, %v879_v40 }
0x1059   :  { %1148 = vmatmul.mubr.msk.bf16.vlgmr.msra.gmra.mxu0 %vm22_vm0, %v882_v41 }
0x1119   :  { %v920_v45 = vpop.f32.mrf.mxu0 }
0x111a   :  { %v927_v46 = vadd.f32 %v920_v45, %v136_v44 }
0x111b   :  { %v922_v48 = vpop.f32.mrf.mxu0 }
0x111c   :  { %1272 = vtanh.f32 %v927_v46  ;;  %v928_v49 = vadd.f32 %v922_v48, %v127_v47  ;;  %v1149_v23 = vmul.f32 -1.442695, %v927_v46 }
0x111d   :  { %v924_v51 = vpop.f32.mrf.mxu0 }
0x111e   :  { %1274 = vtanh.f32 %v928_v49  ;;  %v1150_v21 = vmul.f32 -1.442695, %v928_v49 }
0x111f   :  { %v925_v50 = vpop.f32.mrf.mxu0  ;;  %1276 = vpow2.f32 %v1149_v23 }
0x1120   :  { %1278 = vpow2.f32 %v1150_v21 }
0x1129   :  { %v1273_v53 = vpop.eup %1272 }
0x112a   :  { %945 = vrot.lane.b32.xlu0 %v1273_v53, %s1307_s1 }
0x112b   :  { %v1275_v57 = vpop.eup %1274 }
0x112c   :  { %956 = vrot.lane.b32.xlu1 %v1275_v57, %s1307_s1  ;;  %v1277_v54 = vpop.eup %1276 }
0x112d   :  { %v1279_v59 = vpop.eup %1278  ;;  %v935_v61 = vadd.f32 1.0, %v1277_v54 }
0x112e   :  { %v936_v52 = vadd.f32 1.0, %v1279_v59 }
0x112f   :  { %1280 = vrcp.f32 %v935_v61 }
0x1130   :  { %1282 = vrcp.f32 %v936_v52 }
0x113c   :  { %v1281_v55 = vpop.eup %1280 }
0x113d   :  { %v1283_v62 = vpop.eup %1282  ;;  %v943_v56 = vmul.f32 %v1281_v55, %v845_v29 }
0x113e   :  { %v954_v10 = vmul.f32 %v1283_v62, %v856_v13 }
0x119c   :  { %v946_v3 = vpop.permute.xlu0 %945 }
0x119d   :  { %v948_v1 = vmul.f32 %v1281_v55, %v946_v3 }
0x119e   :  { %v957_v4 = vpop.permute.xlu1 %956 }
0x119f   :  { %950 = vrot.lane.b32.xlu0 %v948_v1, %s1306_s9  ;;  %v959_v5 = vmul.f32 %v1283_v62, %v957_v4 }
0x11a1   :  { %961 = vrot.lane.b32.xlu1 %v959_v5, %s1306_s9 }
0x1211   :  { %v951_v6 = vpop.permute.xlu0 %950 }
0x1212   :  { %v953_v8 = vadd.f32 %v951_v6, %v943_v56 }
0x1213   :  { %v962_v60 = vpop.permute.xlu1 %961 }
0x1214   :  { %1284 = vtanh.f32 %v953_v8  ;;  %v964_v11 = vadd.f32 %v962_v60, %v954_v10 }
0x1216   :  { %1286 = vtanh.f32 %v964_v11 }
0x1221   :  { %v1285_v17 = vpop.eup %1284 }
0x1222   :  { %967 = vrot.lane.b32.xlu0 %v1285_v17, %s1307_s1 }
0x1223   :  { %v1287_v16 = vpop.eup %1286 }
0x1224   :  { %973 = vrot.lane.b32.xlu1 %v1287_v16, %s1307_s1 }
0x1294   :  { %v968_v58 = vpop.permute.xlu0 %967 }
0x1295   :  { %v970_v2 = vmul.f32 %v1281_v55, %v968_v58 }
0x1296   :  { %v974_v7 = vpop.permute.xlu1 %973 }
0x1297   :  { %978 = vrot.lane.b32.xlu0 %v970_v2, %s1306_s9  ;;  %v976_v63 = vmul.f32 %v1283_v62, %v974_v7 }
0x1299   :  { %983 = vrot.lane.b32.xlu1 %v976_v63, %s1307_s1 }
0x1309   :  { %v979_v9 = vpop.permute.xlu0 %978 }
0x130a   :  { %1151 = vst.msk [vmem:[%s1746_s4 + $0x30] sm:$0xff] %vm24_vm1, %v979_v9 }
0x130b   :  { %v984_v12 = vpop.permute.xlu1 %983 }
0x130c   :  { %1152 = vst.msk [vmem:[%s1746_s4 + $0x8] sm:$0xff] %vm325_vm2, %v984_v12  ;;  %v987_v15 = vsel %vm24_vm1, %v979_v9, %v984_v12 }
0x130d   :  { %v990_v18 = vpack.c.bf16 %v987_v15, %v987_v15 }
0x130f   :  { %1153 = vmatmul.mubr.msk.bf16.vlgmr.msra.gmra.mxu1 %vm22_vm0, %v990_v18 }
0x13cf   :  { %v1028_v27 = vpop.f32.mrf.mxu1 }
0x13d0   :  { %v1035_v29 = vadd.f32 %v1028_v27, %v138_v25 }
0x13d1   :  { %v1030_v14 = vpop.f32.mrf.mxu1 }
0x13d2   :  { %1288 = vtanh.f32 %v1035_v29  ;;  %v1036_v13 = vadd.f32 %v1030_v14, %v125_v31  ;;  %v1154_v24 = vmul.f32 -1.442695, %v1035_v29 }
0x13d3   :  { %v1032_v0 = vpop.f32.mrf.mxu1 }
0x13d4   :  { %1290 = vtanh.f32 %v1036_v13  ;;  %v1155_v22 = vmul.f32 -1.442695, %v1036_v13 }
0x13d5   :  { %v1033_v32 = vpop.f32.mrf.mxu1  ;;  %1292 = vpow2.f32 %v1154_v24 }
0x13d6   :  { %1294 = vpow2.f32 %v1155_v22 }
0x13df   :  { %v1289_v34 = vpop.eup %1288 }
0x13e0   :  { %1053 = vrot.lane.b32.xlu0 %v1289_v34, %s1307_s1 }
0x13e1   :  { %v1291_v35 = vpop.eup %1290 }
0x13e2   :  { %1064 = vrot.lane.b32.xlu1 %v1291_v35, %s1307_s1  ;;  %v1293_v26 = vpop.eup %1292 }
0x13e3   :  { %v1295_v28 = vpop.eup %1294  ;;  %v1043_v30 = vadd.f32 1.0, %v1293_v26 }
0x13e4   :  { %v1044_v33 = vadd.f32 1.0, %v1295_v28 }
0x13e5   :  { %1296 = vrcp.f32 %v1043_v30 }
0x13e6   :  { %1298 = vrcp.f32 %v1044_v33 }
0x13f2   :  { %v1297_v36 = vpop.eup %1296 }
0x13f3   :  { %v1299_v39 = vpop.eup %1298  ;;  %v1051_v42 = vmul.f32 %v1297_v36, %v953_v8 }
0x13f4   :  { %v1062_v45 = vmul.f32 %v1299_v39, %v964_v11 }
0x1452   :  { %v1054_v37 = vpop.permute.xlu0 %1053 }
0x1453   :  { %v1056_v38 = vmul.f32 %v1297_v36, %v1054_v37 }
0x1454   :  { %v1065_v40 = vpop.permute.xlu1 %1064 }
0x1455   :  { %1058 = vrot.lane.b32.xlu0 %v1056_v38, %s1306_s9  ;;  %v1067_v41 = vmul.f32 %v1299_v39, %v1065_v40 }
0x1457   :  { %1069 = vrot.lane.b32.xlu1 %v1067_v41, %s1306_s9 }
0x14c7   :  { %v1059_v43 = vpop.permute.xlu0 %1058 }
0x14c8   :  { %v1061_v44 = vadd.f32 %v1059_v43, %v1051_v42 }
0x14c9   :  { %v1070_v46 = vpop.permute.xlu1 %1069 }
0x14ca   :  { %1300 = vtanh.f32 %v1061_v44  ;;  %v1072_v47 = vadd.f32 %v1070_v46, %v1062_v45 }
0x14cc   :  { %1302 = vtanh.f32 %v1072_v47 }
0x14d7   :  { %v1301_v48 = vpop.eup %1300 }
0x14d8   :  { %1075 = vrot.lane.b32.xlu0 %v1301_v48, %s1307_s1 }
0x14d9   :  { %v1303_v49 = vpop.eup %1302 }
0x14da   :  { %1081 = vrot.lane.b32.xlu1 %v1303_v49, %s1307_s1 }
0x154a   :  { %v1076_v51 = vpop.permute.xlu0 %1075 }
0x154b   :  { %v1078_v50 = vmul.f32 %v1297_v36, %v1076_v51 }
0x154c   :  { %v1082_v53 = vpop.permute.xlu1 %1081 }
0x154d   :  { %1086 = vrot.lane.b32.xlu0 %v1078_v50, %s1306_s9  ;;  %v1084_v57 = vmul.f32 %v1299_v39, %v1082_v53 }
0x154f   :  { %1091 = vrot.lane.b32.xlu1 %v1084_v57, %s1307_s1 }
0x1551   :  { %1098 = vrot.lane.b32.xlu0 %v1061_v44, %s1308_s24 }
0x1553   :  { %1103 = vrot.lane.b32.xlu1 %v1072_v47, %s1308_s24 }
0x15bf   :  { %v1087_v23 = vpop.permute.xlu0 %1086 }
0x15c0   :  { %1156 = vst.msk [vmem:[%s1746_s4 + $0x38] sm:$0xff] %vm24_vm1, %v1087_v23 }
0x15c1   :  { %v1092_v21 = vpop.permute.xlu1 %1091 }
0x15c2   :  { %1094 = vst.msk [vmem:[%s1746_s4] sm:$0xff] %vm325_vm2, %v1092_v21  ;;  %v1095_v54 = vsel %vm24_vm1, %v1087_v23, %v1092_v21 }
0x15c3   :  { %v1099_v59 = vpop.permute.xlu0 %1098  ;;  %1096 = vst.msk [vmem:[#allocation2] sm:$0xff] %vm22_vm0, %v1095_v54 }
0x15c4   :  { %1101 = vst.msk [vmem:[#allocation3] sm:$0xff] %vm24_vm1, %v1099_v59 }
0x15c5   :  { %v1104_v61 = vpop.permute.xlu1 %1103 }
0x15c6   :  { %1106 = vst.msk [vmem:[#allocation4] sm:$0xff] %vm24_vm1, %v1104_v61 }

</bundles_post_ra>
